<compile_context>
chip_gen: v5e
topology: v5e:2x2
jax: 0.10.0
libtpu: 0.0.40
codegen_flags: <defaults>
</compile_context>

<pallas_src>
import functools

import jax
import jax.numpy as jnp
import numpy as np
from jax import lax
from jax.experimental import pallas as pl
from jax.experimental.pallas import tpu as pltpu


def _round_up(x, m):
    return (x + m - 1) // m * m


def _pick_time_chunk(T):
    for c in (16, 8, 4, 2, 1):
        if T % c == 0:
            return c
    return 1


def fused_gru2_kernel(gi0_ref, whh0_ref, bhh0_ref,
                      wih1_ref, bih1_ref, whh1_ref, bhh1_ref,
                      out_ref, hfin_ref, h0_ref, h1_ref):
    """Two stacked GRU layers, fused. Grid axis 0 = time chunk (sequential).

    gi0_ref : (TC, Bp, 3H) precomputed x @ W_ih0 + b_ih0 for this time chunk
    whh*_ref: (H, 3H)      hidden-to-hidden weights, gates (r|z|n) on lanes
    wih1_ref: (H, 3H)      layer-1 input-to-hidden weights
    b*_ref  : (1, 3H)      biases
    out_ref : (TC, Bp, H)  layer-1 hidden states for this chunk
    hfin_ref: (2, Bp, H)   final hidden state per layer (last write wins)
    h0/h1   : (Bp, H)      recurrent state, persistent VMEM scratch
    """
    c = pl.program_id(0)

    @pl.when(c == 0)
    def _():
        h0_ref[...] = jnp.zeros_like(h0_ref)
        h1_ref[...] = jnp.zeros_like(h1_ref)

    H = h0_ref.shape[-1]
    whh0 = whh0_ref[...]
    bhh0 = bhh0_ref[...]
    wih1 = wih1_ref[...]
    bih1 = bih1_ref[...]
    whh1 = whh1_ref[...]
    bhh1 = bhh1_ref[...]

    def gru_cell(gi, h, whh, bhh):
        # gi already holds W_ih x + b_ih for all three gates (r|z|n).
        gh = jnp.dot(h, whh, preferred_element_type=jnp.float32) + bhh
        r = jax.nn.sigmoid(gi[:, 0 * H:1 * H] + gh[:, 0 * H:1 * H])
        z = jax.nn.sigmoid(gi[:, 1 * H:2 * H] + gh[:, 1 * H:2 * H])
        n = jnp.tanh(gi[:, 2 * H:3 * H] + r * gh[:, 2 * H:3 * H])
        return (1.0 - z) * n + z * h

    def step(t, carry):
        h0, h1 = carry
        gi0 = gi0_ref[t]                                            # (Bp, 3H)
        h0 = gru_cell(gi0, h0, whh0, bhh0)
        gi1 = jnp.dot(h0, wih1, preferred_element_type=jnp.float32) + bih1
        h1 = gru_cell(gi1, h1, whh1, bhh1)
        out_ref[t] = h1
        return (h0, h1)

    tc = gi0_ref.shape[0]
    h0, h1 = lax.fori_loop(0, tc, step, (h0_ref[...], h1_ref[...]), unroll=True)

    h0_ref[...] = h0
    h1_ref[...] = h1
    hfin_ref[0] = h0
    hfin_ref[1] = h1


@jax.jit
def gru_encoder_forward(x, params):
    """GRUEncoder.forward: x (B, T, D) -> (output (B,T,H), hidden (L,B,H))."""
    (w_ih0, w_hh0, b_ih0, b_hh0), (w_ih1, w_hh1, b_ih1, b_hh1) = params
    B, T, D = x.shape
    H = w_hh0.shape[0]
    Bp = _round_up(B, 8)          # sublane-align the batch

    # Hoisted, parallel layer-0 input projection: one big MXU matmul over all
    # T*B rows, produced directly time-major (no separate transpose pass).
    gi0 = jnp.einsum('btd,dg->tbg', x, w_ih0,
                     preferred_element_type=jnp.float32) + b_ih0[None, None, :]
    if Bp != B:
        gi0 = jnp.pad(gi0, ((0, 0), (0, Bp - B), (0, 0)))

    tc = _pick_time_chunk(T)
    grid = (T // tc,)

    out_tbh, hfin = pl.pallas_call(
        fused_gru2_kernel,
        out_shape=(jax.ShapeDtypeStruct((T, Bp, H), jnp.float32),
                   jax.ShapeDtypeStruct((2, Bp, H), jnp.float32)),
        grid_spec=pltpu.PrefetchScalarGridSpec(
            num_scalar_prefetch=0,
            grid=grid,
            in_specs=[
                pl.BlockSpec((tc, Bp, 3 * H), lambda c: (c, 0, 0)),  # GI0 chunk
                pl.BlockSpec((H, 3 * H), lambda c: (0, 0)),          # W_hh l0
                pl.BlockSpec((1, 3 * H), lambda c: (0, 0)),          # b_hh l0
                pl.BlockSpec((H, 3 * H), lambda c: (0, 0)),          # W_ih l1
                pl.BlockSpec((1, 3 * H), lambda c: (0, 0)),          # b_ih l1
                pl.BlockSpec((H, 3 * H), lambda c: (0, 0)),          # W_hh l1
                pl.BlockSpec((1, 3 * H), lambda c: (0, 0)),          # b_hh l1
            ],
            out_specs=(
                pl.BlockSpec((tc, Bp, H), lambda c: (c, 0, 0)),      # outputs
                pl.BlockSpec((2, Bp, H), lambda c: (0, 0, 0)),       # final h
            ),
            scratch_shapes=[pltpu.VMEM((Bp, H), jnp.float32),
                            pltpu.VMEM((Bp, H), jnp.float32)],
        ),
        compiler_params=pltpu.CompilerParams(
            dimension_semantics=("arbitrary",)),   # sequential recurrence
    )(gi0,
      w_hh0, b_hh0.reshape(1, 3 * H),
      w_ih1, b_ih1.reshape(1, 3 * H),
      w_hh1, b_hh1.reshape(1, 3 * H))

    output = jnp.transpose(out_tbh, (1, 0, 2))[:B]      # (B, T, H)
    hidden = hfin[:, :B, :]                             # (L=2, B, H)
    return output, hidden


def init_gru_params(key, input_dim, hidden_dim, num_layers=2):
    """U(-1/sqrt(H), 1/sqrt(H)) init, like torch.nn.GRU.

    Per layer: w_ih (D_in, 3H), w_hh (H, 3H), b_ih (3H,), b_hh (3H,) with the
    three gates (r, z, n) concatenated along the last axis (i.e. the transpose
    of PyTorch's weight_ih_l{k} / weight_hh_l{k}).
    """
    params = []
    bound = 1.0 / np.sqrt(hidden_dim)
    for layer in range(num_layers):
        d_in = input_dim if layer == 0 else hidden_dim
        key, k0, k1, k2, k3 = jax.random.split(key, 5)
        w_ih = jax.random.uniform(k0, (d_in, 3 * hidden_dim), jnp.float32, -bound, bound)
        w_hh = jax.random.uniform(k1, (hidden_dim, 3 * hidden_dim), jnp.float32, -bound, bound)
        b_ih = jax.random.uniform(k2, (3 * hidden_dim,), jnp.float32, -bound, bound)
        b_hh = jax.random.uniform(k3, (3 * hidden_dim,), jnp.float32, -bound, bound)
        params.append((w_ih, w_hh, b_ih, b_hh))
    return tuple(params)


def gru_encoder_reference(x, params):
    """Pure-JAX reference (PyTorch nn.GRU semantics) for correctness checks."""
    B, T, _ = x.shape
    h_layers = []
    seq = x
    for (w_ih, w_hh, b_ih, b_hh) in params:
        H = w_hh.shape[0]
        h = jnp.zeros((B, H), jnp.float32)
        outs = []
        for t in range(T):
            xt = seq[:, t, :]
            gi = xt @ w_ih + b_ih
            gh = h @ w_hh + b_hh
            r = jax.nn.sigmoid(gi[:, :H] + gh[:, :H])
            z = jax.nn.sigmoid(gi[:, H:2 * H] + gh[:, H:2 * H])
            n = jnp.tanh(gi[:, 2 * H:] + r * gh[:, 2 * H:])
            h = (1.0 - z) * n + z * h
            outs.append(h)
        seq = jnp.stack(outs, axis=1)       # (B, T, H)
        h_layers.append(h)
    return seq, jnp.stack(h_layers, axis=0)


if __name__ == "__main__":
    # Module defaults: input_dim=6, hidden_dim=128, num_layers=2.
    B, T, D, H, L = 2, 8, 6, 128, 2

    key = jax.random.PRNGKey(0)
    key, xkey = jax.random.split(key)
    x = jax.random.normal(xkey, (B, T, D), jnp.float32)
    params = init_gru_params(key, D, H, L)

    output, hidden = gru_encoder_forward(x, params)
    jax.block_until_ready((output, hidden))

    out_ref, hid_ref = gru_encoder_reference(x, params)
    assert output.shape == (B, T, H) and hidden.shape == (L, B, H)
    np.testing.assert_allclose(np.asarray(output), np.asarray(out_ref), atol=1e-4, rtol=1e-4)
    np.testing.assert_allclose(np.asarray(hidden), np.asarray(hid_ref), atol=1e-4, rtol=1e-4)

    print("KERNEL_OK")
</pallas_src>

<mosaic_0001>
module attributes {stable_mosaic.version = 11 : i64} {
  func.func @fused_gru2_kernel(%arg0: i32, %arg1: memref<8x8x384xf32, #tpu.memory_space<vmem>>, %arg2: memref<128x384xf32, #tpu.memory_space<vmem>>, %arg3: memref<1x384xf32, #tpu.memory_space<vmem>>, %arg4: memref<128x384xf32, #tpu.memory_space<vmem>>, %arg5: memref<1x384xf32, #tpu.memory_space<vmem>>, %arg6: memref<128x384xf32, #tpu.memory_space<vmem>>, %arg7: memref<1x384xf32, #tpu.memory_space<vmem>>, %arg8: memref<8x8x128xf32, #tpu.memory_space<vmem>>, %arg9: memref<2x8x128xf32, #tpu.memory_space<vmem>>, %arg10: memref<8x128xf32, #tpu.memory_space<vmem>>, %arg11: memref<8x128xf32, #tpu.memory_space<vmem>>) attributes {dimension_semantics = [#tpu.dimension_semantics<arbitrary>], iteration_bounds = array<i64: 1>, scalar_prefetch = 0 : i64, scratch_operands = 2 : i64, tpu.core_type = #tpu.core_type<tc>, window_params = [{transform_indices = @transform_0, window_bounds = array<i64: 8, 8, 384>}, {pipeline_mode = #tpu.pipeline_mode<synchronous>, transform_indices = @transform_1, window_bounds = array<i64: 128, 384>}, {pipeline_mode = #tpu.pipeline_mode<synchronous>, transform_indices = @transform_2, window_bounds = array<i64: 1, 384>}, {pipeline_mode = #tpu.pipeline_mode<synchronous>, transform_indices = @transform_3, window_bounds = array<i64: 128, 384>}, {pipeline_mode = #tpu.pipeline_mode<synchronous>, transform_indices = @transform_4, window_bounds = array<i64: 1, 384>}, {pipeline_mode = #tpu.pipeline_mode<synchronous>, transform_indices = @transform_5, window_bounds = array<i64: 128, 384>}, {pipeline_mode = #tpu.pipeline_mode<synchronous>, transform_indices = @transform_6, window_bounds = array<i64: 1, 384>}, {transform_indices = @transform_7, window_bounds = array<i64: 8, 8, 128>}, {pipeline_mode = #tpu.pipeline_mode<synchronous>, transform_indices = @transform_8, window_bounds = array<i64: 2, 8, 128>}]} {
    %c0_i32 = arith.constant 0 : i32
    %0 = arith.cmpi eq, %arg0, %c0_i32 : i32
    %1 = arith.extui %0 : i1 to i32
    %c0_i32_0 = arith.constant 0 : i32
    %2 = arith.cmpi ne, %1, %c0_i32_0 : i32
    scf.if %2 {
      %cst_129 = arith.constant 0.000000e+00 : f32
      %563 = vector.broadcast %cst_129 : f32 to vector<8x128xf32>
      %c0_130 = arith.constant 0 : index
      %c0_131 = arith.constant 0 : index
      %564 = vector.load %arg10[%c0_130, %c0_131] : memref<8x128xf32, #tpu.memory_space<vmem>>, vector<8x128xf32>
      tpu.vector_store %arg10[%c0_130, %c0_131], %563 {strides = array<i32>} : memref<8x128xf32, #tpu.memory_space<vmem>>, vector<8x128xf32>,
      %cst_132 = arith.constant 0.000000e+00 : f32
      %565 = vector.broadcast %cst_132 : f32 to vector<8x128xf32>
      %c0_133 = arith.constant 0 : index
      %c0_134 = arith.constant 0 : index
      %566 = vector.load %arg11[%c0_133, %c0_134] : memref<8x128xf32, #tpu.memory_space<vmem>>, vector<8x128xf32>
      tpu.vector_store %arg11[%c0_133, %c0_134], %565 {strides = array<i32>} : memref<8x128xf32, #tpu.memory_space<vmem>>, vector<8x128xf32>,
    } else {
    }
    %c0 = arith.constant 0 : index
    %c0_1 = arith.constant 0 : index
    %3 = vector.load %arg2[%c0, %c0_1] : memref<128x384xf32, #tpu.memory_space<vmem>>, vector<128x384xf32>
    %c0_2 = arith.constant 0 : index
    %c0_3 = arith.constant 0 : index
    %4 = vector.load %arg3[%c0_2, %c0_3] : memref<1x384xf32, #tpu.memory_space<vmem>>, vector<1x384xf32>
    %c0_4 = arith.constant 0 : index
    %c0_5 = arith.constant 0 : index
    %5 = vector.load %arg4[%c0_4, %c0_5] : memref<128x384xf32, #tpu.memory_space<vmem>>, vector<128x384xf32>
    %c0_6 = arith.constant 0 : index
    %c0_7 = arith.constant 0 : index
    %6 = vector.load %arg5[%c0_6, %c0_7] : memref<1x384xf32, #tpu.memory_space<vmem>>, vector<1x384xf32>
    %c0_8 = arith.constant 0 : index
    %c0_9 = arith.constant 0 : index
    %7 = vector.load %arg6[%c0_8, %c0_9] : memref<128x384xf32, #tpu.memory_space<vmem>>, vector<128x384xf32>
    %c0_10 = arith.constant 0 : index
    %c0_11 = arith.constant 0 : index
    %8 = vector.load %arg7[%c0_10, %c0_11] : memref<1x384xf32, #tpu.memory_space<vmem>>, vector<1x384xf32>
    %c0_12 = arith.constant 0 : index
    %c0_13 = arith.constant 0 : index
    %9 = vector.load %arg10[%c0_12, %c0_13] : memref<8x128xf32, #tpu.memory_space<vmem>>, vector<8x128xf32>
    %c0_14 = arith.constant 0 : index
    %c0_15 = arith.constant 0 : index
    %10 = vector.load %arg11[%c0_14, %c0_15] : memref<8x128xf32, #tpu.memory_space<vmem>>, vector<8x128xf32>
    %c0_i32_16 = arith.constant 0 : i32
    %11 = arith.index_cast %c0_i32_16 : i32 to index
    %c0_17 = arith.constant 0 : index
    %c0_18 = arith.constant 0 : index
    %12 = vector.load %arg1[%11, %c0_17, %c0_18] : memref<8x8x384xf32, #tpu.memory_space<vmem>>, vector<1x8x384xf32>
    %13 = vector.shape_cast %12 : vector<1x8x384xf32> to vector<8x384xf32>
    %cst = arith.constant dense<0.000000e+00> : vector<8x384xf32>
    %14 = tpu.matmul %9, %3, %cst {dimension_numbers = #tpu.dot_dimension_numbers<[1], [0], [0], [1], [0, 0, 1, 1], [], []>} : vector<8x128xf32>, vector<128x384xf32>, vector<8x384xf32> -> vector<8x384xf32>
    %15 = vector.broadcast %4 : vector<1x384xf32> to vector<8x384xf32>
    %16 = arith.addf %14, %15 : vector<8x384xf32>
    %17 = vector.extract_strided_slice %13 {offsets = [0, 0], sizes = [8, 128], strides = [1, 1]} : vector<8x384xf32> to vector<8x128xf32>
    %18 = vector.extract_strided_slice %16 {offsets = [0, 0], sizes = [8, 128], strides = [1, 1]} : vector<8x384xf32> to vector<8x128xf32>
    %19 = arith.addf %17, %18 : vector<8x128xf32>
    %20 = arith.negf %19 : vector<8x128xf32>
    %21 = math.exp %20 : vector<8x128xf32>
    %cst_19 = arith.constant 1.000000e+00 : f32
    %22 = vector.broadcast %cst_19 : f32 to vector<8x128xf32>
    %23 = arith.addf %22, %21 : vector<8x128xf32>
    %24 = arith.divf %22, %23 : vector<8x128xf32>
    %25 = vector.extract_strided_slice %13 {offsets = [0, 128], sizes = [8, 128], strides = [1, 1]} : vector<8x384xf32> to vector<8x128xf32>
    %26 = vector.extract_strided_slice %16 {offsets = [0, 128], sizes = [8, 128], strides = [1, 1]} : vector<8x384xf32> to vector<8x128xf32>
    %27 = arith.addf %25, %26 : vector<8x128xf32>
    %28 = arith.negf %27 : vector<8x128xf32>
    %29 = math.exp %28 : vector<8x128xf32>
    %cst_20 = arith.constant 1.000000e+00 : f32
    %30 = vector.broadcast %cst_20 : f32 to vector<8x128xf32>
    %31 = arith.addf %30, %29 : vector<8x128xf32>
    %32 = arith.divf %30, %31 : vector<8x128xf32>
    %33 = vector.extract_strided_slice %13 {offsets = [0, 256], sizes = [8, 128], strides = [1, 1]} : vector<8x384xf32> to vector<8x128xf32>
    %34 = vector.extract_strided_slice %16 {offsets = [0, 256], sizes = [8, 128], strides = [1, 1]} : vector<8x384xf32> to vector<8x128xf32>
    %35 = arith.mulf %24, %34 : vector<8x128xf32>
    %36 = arith.addf %33, %35 : vector<8x128xf32>
    %37 = math.tanh %36 : vector<8x128xf32>
    %cst_21 = arith.constant 1.000000e+00 : f32
    %38 = vector.broadcast %cst_21 : f32 to vector<8x128xf32>
    %39 = arith.subf %38, %32 : vector<8x128xf32>
    %40 = arith.mulf %39, %37 : vector<8x128xf32>
    %41 = arith.mulf %32, %9 : vector<8x128xf32>
    %42 = arith.addf %40, %41 : vector<8x128xf32>
    %cst_22 = arith.constant dense<0.000000e+00> : vector<8x384xf32>
    %43 = tpu.matmul %42, %5, %cst_22 {dimension_numbers = #tpu.dot_dimension_numbers<[1], [0], [0], [1], [0, 0, 1, 1], [], []>} : vector<8x128xf32>, vector<128x384xf32>, vector<8x384xf32> -> vector<8x384xf32>
    %44 = vector.broadcast %6 : vector<1x384xf32> to vector<8x384xf32>
    %45 = arith.addf %43, %44 : vector<8x384xf32>
    %cst_23 = arith.constant dense<0.000000e+00> : vector<8x384xf32>
    %46 = tpu.matmul %10, %7, %cst_23 {dimension_numbers = #tpu.dot_dimension_numbers<[1], [0], [0], [1], [0, 0, 1, 1], [], []>} : vector<8x128xf32>, vector<128x384xf32>, vector<8x384xf32> -> vector<8x384xf32>
    %47 = vector.broadcast %8 : vector<1x384xf32> to vector<8x384xf32>
    %48 = arith.addf %46, %47 : vector<8x384xf32>
    %49 = vector.extract_strided_slice %45 {offsets = [0, 0], sizes = [8, 128], strides = [1, 1]} : vector<8x384xf32> to vector<8x128xf32>
    %50 = vector.extract_strided_slice %48 {offsets = [0, 0], sizes = [8, 128], strides = [1, 1]} : vector<8x384xf32> to vector<8x128xf32>
    %51 = arith.addf %49, %50 : vector<8x128xf32>
    %52 = arith.negf %51 : vector<8x128xf32>
    %53 = math.exp %52 : vector<8x128xf32>
    %cst_24 = arith.constant 1.000000e+00 : f32
    %54 = vector.broadcast %cst_24 : f32 to vector<8x128xf32>
    %55 = arith.addf %54, %53 : vector<8x128xf32>
    %56 = arith.divf %54, %55 : vector<8x128xf32>
    %57 = vector.extract_strided_slice %45 {offsets = [0, 128], sizes = [8, 128], strides = [1, 1]} : vector<8x384xf32> to vector<8x128xf32>
    %58 = vector.extract_strided_slice %48 {offsets = [0, 128], sizes = [8, 128], strides = [1, 1]} : vector<8x384xf32> to vector<8x128xf32>
    %59 = arith.addf %57, %58 : vector<8x128xf32>
    %60 = arith.negf %59 : vector<8x128xf32>
    %61 = math.exp %60 : vector<8x128xf32>
    %cst_25 = arith.constant 1.000000e+00 : f32
    %62 = vector.broadcast %cst_25 : f32 to vector<8x128xf32>
    %63 = arith.addf %62, %61 : vector<8x128xf32>
    %64 = arith.divf %62, %63 : vector<8x128xf32>
    %65 = vector.extract_strided_slice %45 {offsets = [0, 256], sizes = [8, 128], strides = [1, 1]} : vector<8x384xf32> to vector<8x128xf32>
    %66 = vector.extract_strided_slice %48 {offsets = [0, 256], sizes = [8, 128], strides = [1, 1]} : vector<8x384xf32> to vector<8x128xf32>
    %67 = arith.mulf %56, %66 : vector<8x128xf32>
    %68 = arith.addf %65, %67 : vector<8x128xf32>
    %69 = math.tanh %68 : vector<8x128xf32>
    %cst_26 = arith.constant 1.000000e+00 : f32
    %70 = vector.broadcast %cst_26 : f32 to vector<8x128xf32>
    %71 = arith.subf %70, %64 : vector<8x128xf32>
    %72 = arith.mulf %71, %69 : vector<8x128xf32>
    %73 = arith.mulf %64, %10 : vector<8x128xf32>
    %74 = arith.addf %72, %73 : vector<8x128xf32>
    %75 = arith.index_cast %c0_i32_16 : i32 to index
    %c0_27 = arith.constant 0 : index
    %c0_28 = arith.constant 0 : index
    %76 = vector.load %arg8[%75, %c0_27, %c0_28] : memref<8x8x128xf32, #tpu.memory_space<vmem>>, vector<1x8x128xf32>
    %77 = vector.shape_cast %76 : vector<1x8x128xf32> to vector<8x128xf32>
    %78 = vector.shape_cast %74 : vector<8x128xf32> to vector<1x8x128xf32>
    tpu.vector_store %arg8[%75, %c0_27, %c0_28], %78 {strides = array<i32>} : memref<8x8x128xf32, #tpu.memory_space<vmem>>, vector<1x8x128xf32>,
    %c1_i32 = arith.constant 1 : i32
    %79 = arith.index_cast %c1_i32 : i32 to index
    %c0_29 = arith.constant 0 : index
    %c0_30 = arith.constant 0 : index
    %80 = vector.load %arg1[%79, %c0_29, %c0_30] : memref<8x8x384xf32, #tpu.memory_space<vmem>>, vector<1x8x384xf32>
    %81 = vector.shape_cast %80 : vector<1x8x384xf32> to vector<8x384xf32>
    %cst_31 = arith.constant dense<0.000000e+00> : vector<8x384xf32>
    %82 = tpu.matmul %42, %3, %cst_31 {dimension_numbers = #tpu.dot_dimension_numbers<[1], [0], [0], [1], [0, 0, 1, 1], [], []>} : vector<8x128xf32>, vector<128x384xf32>, vector<8x384xf32> -> vector<8x384xf32>
    %83 = vector.broadcast %4 : vector<1x384xf32> to vector<8x384xf32>
    %84 = arith.addf %82, %83 : vector<8x384xf32>
    %85 = vector.extract_strided_slice %81 {offsets = [0, 0], sizes = [8, 128], strides = [1, 1]} : vector<8x384xf32> to vector<8x128xf32>
    %86 = vector.extract_strided_slice %84 {offsets = [0, 0], sizes = [8, 128], strides = [1, 1]} : vector<8x384xf32> to vector<8x128xf32>
    %87 = arith.addf %85, %86 : vector<8x128xf32>
    %88 = arith.negf %87 : vector<8x128xf32>
    %89 = math.exp %88 : vector<8x128xf32>
    %cst_32 = arith.constant 1.000000e+00 : f32
    %90 = vector.broadcast %cst_32 : f32 to vector<8x128xf32>
    %91 = arith.addf %90, %89 : vector<8x128xf32>
    %92 = arith.divf %90, %91 : vector<8x128xf32>
    %93 = vector.extract_strided_slice %81 {offsets = [0, 128], sizes = [8, 128], strides = [1, 1]} : vector<8x384xf32> to vector<8x128xf32>
    %94 = vector.extract_strided_slice %84 {offsets = [0, 128], sizes = [8, 128], strides = [1, 1]} : vector<8x384xf32> to vector<8x128xf32>
    %95 = arith.addf %93, %94 : vector<8x128xf32>
    %96 = arith.negf %95 : vector<8x128xf32>
    %97 = math.exp %96 : vector<8x128xf32>
    %cst_33 = arith.constant 1.000000e+00 : f32
    %98 = vector.broadcast %cst_33 : f32 to vector<8x128xf32>
    %99 = arith.addf %98, %97 : vector<8x128xf32>
    %100 = arith.divf %98, %99 : vector<8x128xf32>
    %101 = vector.extract_strided_slice %81 {offsets = [0, 256], sizes = [8, 128], strides = [1, 1]} : vector<8x384xf32> to vector<8x128xf32>
    %102 = vector.extract_strided_slice %84 {offsets = [0, 256], sizes = [8, 128], strides = [1, 1]} : vector<8x384xf32> to vector<8x128xf32>
    %103 = arith.mulf %92, %102 : vector<8x128xf32>
    %104 = arith.addf %101, %103 : vector<8x128xf32>
    %105 = math.tanh %104 : vector<8x128xf32>
    %cst_34 = arith.constant 1.000000e+00 : f32
    %106 = vector.broadcast %cst_34 : f32 to vector<8x128xf32>
    %107 = arith.subf %106, %100 : vector<8x128xf32>
    %108 = arith.mulf %107, %105 : vector<8x128xf32>
    %109 = arith.mulf %100, %42 : vector<8x128xf32>
    %110 = arith.addf %108, %109 : vector<8x128xf32>
    %cst_35 = arith.constant dense<0.000000e+00> : vector<8x384xf32>
    %111 = tpu.matmul %110, %5, %cst_35 {dimension_numbers = #tpu.dot_dimension_numbers<[1], [0], [0], [1], [0, 0, 1, 1], [], []>} : vector<8x128xf32>, vector<128x384xf32>, vector<8x384xf32> -> vector<8x384xf32>
    %112 = vector.broadcast %6 : vector<1x384xf32> to vector<8x384xf32>
    %113 = arith.addf %111, %112 : vector<8x384xf32>
    %cst_36 = arith.constant dense<0.000000e+00> : vector<8x384xf32>
    %114 = tpu.matmul %74, %7, %cst_36 {dimension_numbers = #tpu.dot_dimension_numbers<[1], [0], [0], [1], [0, 0, 1, 1], [], []>} : vector<8x128xf32>, vector<128x384xf32>, vector<8x384xf32> -> vector<8x384xf32>
    %115 = vector.broadcast %8 : vector<1x384xf32> to vector<8x384xf32>
    %116 = arith.addf %114, %115 : vector<8x384xf32>
    %117 = vector.extract_strided_slice %113 {offsets = [0, 0], sizes = [8, 128], strides = [1, 1]} : vector<8x384xf32> to vector<8x128xf32>
    %118 = vector.extract_strided_slice %116 {offsets = [0, 0], sizes = [8, 128], strides = [1, 1]} : vector<8x384xf32> to vector<8x128xf32>
    %119 = arith.addf %117, %118 : vector<8x128xf32>
    %120 = arith.negf %119 : vector<8x128xf32>
    %121 = math.exp %120 : vector<8x128xf32>
    %cst_37 = arith.constant 1.000000e+00 : f32
    %122 = vector.broadcast %cst_37 : f32 to vector<8x128xf32>
    %123 = arith.addf %122, %121 : vector<8x128xf32>
    %124 = arith.divf %122, %123 : vector<8x128xf32>
    %125 = vector.extract_strided_slice %113 {offsets = [0, 128], sizes = [8, 128], strides = [1, 1]} : vector<8x384xf32> to vector<8x128xf32>
    %126 = vector.extract_strided_slice %116 {offsets = [0, 128], sizes = [8, 128], strides = [1, 1]} : vector<8x384xf32> to vector<8x128xf32>
    %127 = arith.addf %125, %126 : vector<8x128xf32>
    %128 = arith.negf %127 : vector<8x128xf32>
    %129 = math.exp %128 : vector<8x128xf32>
    %cst_38 = arith.constant 1.000000e+00 : f32
    %130 = vector.broadcast %cst_38 : f32 to vector<8x128xf32>
    %131 = arith.addf %130, %129 : vector<8x128xf32>
    %132 = arith.divf %130, %131 : vector<8x128xf32>
    %133 = vector.extract_strided_slice %113 {offsets = [0, 256], sizes = [8, 128], strides = [1, 1]} : vector<8x384xf32> to vector<8x128xf32>
    %134 = vector.extract_strided_slice %116 {offsets = [0, 256], sizes = [8, 128], strides = [1, 1]} : vector<8x384xf32> to vector<8x128xf32>
    %135 = arith.mulf %124, %134 : vector<8x128xf32>
    %136 = arith.addf %133, %135 : vector<8x128xf32>
    %137 = math.tanh %136 : vector<8x128xf32>
    %cst_39 = arith.constant 1.000000e+00 : f32
    %138 = vector.broadcast %cst_39 : f32 to vector<8x128xf32>
    %139 = arith.subf %138, %132 : vector<8x128xf32>
    %140 = arith.mulf %139, %137 : vector<8x128xf32>
    %141 = arith.mulf %132, %74 : vector<8x128xf32>
    %142 = arith.addf %140, %141 : vector<8x128xf32>
    %143 = arith.index_cast %c1_i32 : i32 to index
    %c0_40 = arith.constant 0 : index
    %c0_41 = arith.constant 0 : index
    %144 = vector.load %arg8[%143, %c0_40, %c0_41] : memref<8x8x128xf32, #tpu.memory_space<vmem>>, vector<1x8x128xf32>
    %145 = vector.shape_cast %144 : vector<1x8x128xf32> to vector<8x128xf32>
    %146 = vector.shape_cast %142 : vector<8x128xf32> to vector<1x8x128xf32>
    tpu.vector_store %arg8[%143, %c0_40, %c0_41], %146 {strides = array<i32>} : memref<8x8x128xf32, #tpu.memory_space<vmem>>, vector<1x8x128xf32>,
    %c2_i32 = arith.constant 2 : i32
    %147 = arith.index_cast %c2_i32 : i32 to index
    %c0_42 = arith.constant 0 : index
    %c0_43 = arith.constant 0 : index
    %148 = vector.load %arg1[%147, %c0_42, %c0_43] : memref<8x8x384xf32, #tpu.memory_space<vmem>>, vector<1x8x384xf32>
    %149 = vector.shape_cast %148 : vector<1x8x384xf32> to vector<8x384xf32>
    %cst_44 = arith.constant dense<0.000000e+00> : vector<8x384xf32>
    %150 = tpu.matmul %110, %3, %cst_44 {dimension_numbers = #tpu.dot_dimension_numbers<[1], [0], [0], [1], [0, 0, 1, 1], [], []>} : vector<8x128xf32>, vector<128x384xf32>, vector<8x384xf32> -> vector<8x384xf32>
    %151 = vector.broadcast %4 : vector<1x384xf32> to vector<8x384xf32>
    %152 = arith.addf %150, %151 : vector<8x384xf32>
    %153 = vector.extract_strided_slice %149 {offsets = [0, 0], sizes = [8, 128], strides = [1, 1]} : vector<8x384xf32> to vector<8x128xf32>
    %154 = vector.extract_strided_slice %152 {offsets = [0, 0], sizes = [8, 128], strides = [1, 1]} : vector<8x384xf32> to vector<8x128xf32>
    %155 = arith.addf %153, %154 : vector<8x128xf32>
    %156 = arith.negf %155 : vector<8x128xf32>
    %157 = math.exp %156 : vector<8x128xf32>
    %cst_45 = arith.constant 1.000000e+00 : f32
    %158 = vector.broadcast %cst_45 : f32 to vector<8x128xf32>
    %159 = arith.addf %158, %157 : vector<8x128xf32>
    %160 = arith.divf %158, %159 : vector<8x128xf32>
    %161 = vector.extract_strided_slice %149 {offsets = [0, 128], sizes = [8, 128], strides = [1, 1]} : vector<8x384xf32> to vector<8x128xf32>
    %162 = vector.extract_strided_slice %152 {offsets = [0, 128], sizes = [8, 128], strides = [1, 1]} : vector<8x384xf32> to vector<8x128xf32>
    %163 = arith.addf %161, %162 : vector<8x128xf32>
    %164 = arith.negf %163 : vector<8x128xf32>
    %165 = math.exp %164 : vector<8x128xf32>
    %cst_46 = arith.constant 1.000000e+00 : f32
    %166 = vector.broadcast %cst_46 : f32 to vector<8x128xf32>
    %167 = arith.addf %166, %165 : vector<8x128xf32>
    %168 = arith.divf %166, %167 : vector<8x128xf32>
    %169 = vector.extract_strided_slice %149 {offsets = [0, 256], sizes = [8, 128], strides = [1, 1]} : vector<8x384xf32> to vector<8x128xf32>
    %170 = vector.extract_strided_slice %152 {offsets = [0, 256], sizes = [8, 128], strides = [1, 1]} : vector<8x384xf32> to vector<8x128xf32>
    %171 = arith.mulf %160, %170 : vector<8x128xf32>
    %172 = arith.addf %169, %171 : vector<8x128xf32>
    %173 = math.tanh %172 : vector<8x128xf32>
    %cst_47 = arith.constant 1.000000e+00 : f32
    %174 = vector.broadcast %cst_47 : f32 to vector<8x128xf32>
    %175 = arith.subf %174, %168 : vector<8x128xf32>
    %176 = arith.mulf %175, %173 : vector<8x128xf32>
    %177 = arith.mulf %168, %110 : vector<8x128xf32>
    %178 = arith.addf %176, %177 : vector<8x128xf32>
    %cst_48 = arith.constant dense<0.000000e+00> : vector<8x384xf32>
    %179 = tpu.matmul %178, %5, %cst_48 {dimension_numbers = #tpu.dot_dimension_numbers<[1], [0], [0], [1], [0, 0, 1, 1], [], []>} : vector<8x128xf32>, vector<128x384xf32>, vector<8x384xf32> -> vector<8x384xf32>
    %180 = vector.broadcast %6 : vector<1x384xf32> to vector<8x384xf32>
    %181 = arith.addf %179, %180 : vector<8x384xf32>
    %cst_49 = arith.constant dense<0.000000e+00> : vector<8x384xf32>
    %182 = tpu.matmul %142, %7, %cst_49 {dimension_numbers = #tpu.dot_dimension_numbers<[1], [0], [0], [1], [0, 0, 1, 1], [], []>} : vector<8x128xf32>, vector<128x384xf32>, vector<8x384xf32> -> vector<8x384xf32>
    %183 = vector.broadcast %8 : vector<1x384xf32> to vector<8x384xf32>
    %184 = arith.addf %182, %183 : vector<8x384xf32>
    %185 = vector.extract_strided_slice %181 {offsets = [0, 0], sizes = [8, 128], strides = [1, 1]} : vector<8x384xf32> to vector<8x128xf32>
    %186 = vector.extract_strided_slice %184 {offsets = [0, 0], sizes = [8, 128], strides = [1, 1]} : vector<8x384xf32> to vector<8x128xf32>
    %187 = arith.addf %185, %186 : vector<8x128xf32>
    %188 = arith.negf %187 : vector<8x128xf32>
    %189 = math.exp %188 : vector<8x128xf32>
    %cst_50 = arith.constant 1.000000e+00 : f32
    %190 = vector.broadcast %cst_50 : f32 to vector<8x128xf32>
    %191 = arith.addf %190, %189 : vector<8x128xf32>
    %192 = arith.divf %190, %191 : vector<8x128xf32>
    %193 = vector.extract_strided_slice %181 {offsets = [0, 128], sizes = [8, 128], strides = [1, 1]} : vector<8x384xf32> to vector<8x128xf32>
    %194 = vector.extract_strided_slice %184 {offsets = [0, 128], sizes = [8, 128], strides = [1, 1]} : vector<8x384xf32> to vector<8x128xf32>
    %195 = arith.addf %193, %194 : vector<8x128xf32>
    %196 = arith.negf %195 : vector<8x128xf32>
    %197 = math.exp %196 : vector<8x128xf32>
    %cst_51 = arith.constant 1.000000e+00 : f32
    %198 = vector.broadcast %cst_51 : f32 to vector<8x128xf32>
    %199 = arith.addf %198, %197 : vector<8x128xf32>
    %200 = arith.divf %198, %199 : vector<8x128xf32>
    %201 = vector.extract_strided_slice %181 {offsets = [0, 256], sizes = [8, 128], strides = [1, 1]} : vector<8x384xf32> to vector<8x128xf32>
    %202 = vector.extract_strided_slice %184 {offsets = [0, 256], sizes = [8, 128], strides = [1, 1]} : vector<8x384xf32> to vector<8x128xf32>
    %203 = arith.mulf %192, %202 : vector<8x128xf32>
    %204 = arith.addf %201, %203 : vector<8x128xf32>
    %205 = math.tanh %204 : vector<8x128xf32>
    %cst_52 = arith.constant 1.000000e+00 : f32
    %206 = vector.broadcast %cst_52 : f32 to vector<8x128xf32>
    %207 = arith.subf %206, %200 : vector<8x128xf32>
    %208 = arith.mulf %207, %205 : vector<8x128xf32>
    %209 = arith.mulf %200, %142 : vector<8x128xf32>
    %210 = arith.addf %208, %209 : vector<8x128xf32>
    %211 = arith.index_cast %c2_i32 : i32 to index
    %c0_53 = arith.constant 0 : index
    %c0_54 = arith.constant 0 : index
    %212 = vector.load %arg8[%211, %c0_53, %c0_54] : memref<8x8x128xf32, #tpu.memory_space<vmem>>, vector<1x8x128xf32>
    %213 = vector.shape_cast %212 : vector<1x8x128xf32> to vector<8x128xf32>
    %214 = vector.shape_cast %210 : vector<8x128xf32> to vector<1x8x128xf32>
    tpu.vector_store %arg8[%211, %c0_53, %c0_54], %214 {strides = array<i32>} : memref<8x8x128xf32, #tpu.memory_space<vmem>>, vector<1x8x128xf32>,
    %c3_i32 = arith.constant 3 : i32
    %215 = arith.index_cast %c3_i32 : i32 to index
    %c0_55 = arith.constant 0 : index
    %c0_56 = arith.constant 0 : index
    %216 = vector.load %arg1[%215, %c0_55, %c0_56] : memref<8x8x384xf32, #tpu.memory_space<vmem>>, vector<1x8x384xf32>
    %217 = vector.shape_cast %216 : vector<1x8x384xf32> to vector<8x384xf32>
    %cst_57 = arith.constant dense<0.000000e+00> : vector<8x384xf32>
    %218 = tpu.matmul %178, %3, %cst_57 {dimension_numbers = #tpu.dot_dimension_numbers<[1], [0], [0], [1], [0, 0, 1, 1], [], []>} : vector<8x128xf32>, vector<128x384xf32>, vector<8x384xf32> -> vector<8x384xf32>
    %219 = vector.broadcast %4 : vector<1x384xf32> to vector<8x384xf32>
    %220 = arith.addf %218, %219 : vector<8x384xf32>
    %221 = vector.extract_strided_slice %217 {offsets = [0, 0], sizes = [8, 128], strides = [1, 1]} : vector<8x384xf32> to vector<8x128xf32>
    %222 = vector.extract_strided_slice %220 {offsets = [0, 0], sizes = [8, 128], strides = [1, 1]} : vector<8x384xf32> to vector<8x128xf32>
    %223 = arith.addf %221, %222 : vector<8x128xf32>
    %224 = arith.negf %223 : vector<8x128xf32>
    %225 = math.exp %224 : vector<8x128xf32>
    %cst_58 = arith.constant 1.000000e+00 : f32
    %226 = vector.broadcast %cst_58 : f32 to vector<8x128xf32>
    %227 = arith.addf %226, %225 : vector<8x128xf32>
    %228 = arith.divf %226, %227 : vector<8x128xf32>
    %229 = vector.extract_strided_slice %217 {offsets = [0, 128], sizes = [8, 128], strides = [1, 1]} : vector<8x384xf32> to vector<8x128xf32>
    %230 = vector.extract_strided_slice %220 {offsets = [0, 128], sizes = [8, 128], strides = [1, 1]} : vector<8x384xf32> to vector<8x128xf32>
    %231 = arith.addf %229, %230 : vector<8x128xf32>
    %232 = arith.negf %231 : vector<8x128xf32>
    %233 = math.exp %232 : vector<8x128xf32>
    %cst_59 = arith.constant 1.000000e+00 : f32
    %234 = vector.broadcast %cst_59 : f32 to vector<8x128xf32>
    %235 = arith.addf %234, %233 : vector<8x128xf32>
    %236 = arith.divf %234, %235 : vector<8x128xf32>
    %237 = vector.extract_strided_slice %217 {offsets = [0, 256], sizes = [8, 128], strides = [1, 1]} : vector<8x384xf32> to vector<8x128xf32>
    %238 = vector.extract_strided_slice %220 {offsets = [0, 256], sizes = [8, 128], strides = [1, 1]} : vector<8x384xf32> to vector<8x128xf32>
    %239 = arith.mulf %228, %238 : vector<8x128xf32>
    %240 = arith.addf %237, %239 : vector<8x128xf32>
    %241 = math.tanh %240 : vector<8x128xf32>
    %cst_60 = arith.constant 1.000000e+00 : f32
    %242 = vector.broadcast %cst_60 : f32 to vector<8x128xf32>
    %243 = arith.subf %242, %236 : vector<8x128xf32>
    %244 = arith.mulf %243, %241 : vector<8x128xf32>
    %245 = arith.mulf %236, %178 : vector<8x128xf32>
    %246 = arith.addf %244, %245 : vector<8x128xf32>
    %cst_61 = arith.constant dense<0.000000e+00> : vector<8x384xf32>
    %247 = tpu.matmul %246, %5, %cst_61 {dimension_numbers = #tpu.dot_dimension_numbers<[1], [0], [0], [1], [0, 0, 1, 1], [], []>} : vector<8x128xf32>, vector<128x384xf32>, vector<8x384xf32> -> vector<8x384xf32>
    %248 = vector.broadcast %6 : vector<1x384xf32> to vector<8x384xf32>
    %249 = arith.addf %247, %248 : vector<8x384xf32>
    %cst_62 = arith.constant dense<0.000000e+00> : vector<8x384xf32>
    %250 = tpu.matmul %210, %7, %cst_62 {dimension_numbers = #tpu.dot_dimension_numbers<[1], [0], [0], [1], [0, 0, 1, 1], [], []>} : vector<8x128xf32>, vector<128x384xf32>, vector<8x384xf32> -> vector<8x384xf32>
    %251 = vector.broadcast %8 : vector<1x384xf32> to vector<8x384xf32>
    %252 = arith.addf %250, %251 : vector<8x384xf32>
    %253 = vector.extract_strided_slice %249 {offsets = [0, 0], sizes = [8, 128], strides = [1, 1]} : vector<8x384xf32> to vector<8x128xf32>
    %254 = vector.extract_strided_slice %252 {offsets = [0, 0], sizes = [8, 128], strides = [1, 1]} : vector<8x384xf32> to vector<8x128xf32>
    %255 = arith.addf %253, %254 : vector<8x128xf32>
    %256 = arith.negf %255 : vector<8x128xf32>
    %257 = math.exp %256 : vector<8x128xf32>
    %cst_63 = arith.constant 1.000000e+00 : f32
    %258 = vector.broadcast %cst_63 : f32 to vector<8x128xf32>
    %259 = arith.addf %258, %257 : vector<8x128xf32>
    %260 = arith.divf %258, %259 : vector<8x128xf32>
    %261 = vector.extract_strided_slice %249 {offsets = [0, 128], sizes = [8, 128], strides = [1, 1]} : vector<8x384xf32> to vector<8x128xf32>
    %262 = vector.extract_strided_slice %252 {offsets = [0, 128], sizes = [8, 128], strides = [1, 1]} : vector<8x384xf32> to vector<8x128xf32>
    %263 = arith.addf %261, %262 : vector<8x128xf32>
    %264 = arith.negf %263 : vector<8x128xf32>
    %265 = math.exp %264 : vector<8x128xf32>
    %cst_64 = arith.constant 1.000000e+00 : f32
    %266 = vector.broadcast %cst_64 : f32 to vector<8x128xf32>
    %267 = arith.addf %266, %265 : vector<8x128xf32>
    %268 = arith.divf %266, %267 : vector<8x128xf32>
    %269 = vector.extract_strided_slice %249 {offsets = [0, 256], sizes = [8, 128], strides = [1, 1]} : vector<8x384xf32> to vector<8x128xf32>
    %270 = vector.extract_strided_slice %252 {offsets = [0, 256], sizes = [8, 128], strides = [1, 1]} : vector<8x384xf32> to vector<8x128xf32>
    %271 = arith.mulf %260, %270 : vector<8x128xf32>
    %272 = arith.addf %269, %271 : vector<8x128xf32>
    %273 = math.tanh %272 : vector<8x128xf32>
    %cst_65 = arith.constant 1.000000e+00 : f32
    %274 = vector.broadcast %cst_65 : f32 to vector<8x128xf32>
    %275 = arith.subf %274, %268 : vector<8x128xf32>
    %276 = arith.mulf %275, %273 : vector<8x128xf32>
    %277 = arith.mulf %268, %210 : vector<8x128xf32>
    %278 = arith.addf %276, %277 : vector<8x128xf32>
    %279 = arith.index_cast %c3_i32 : i32 to index
    %c0_66 = arith.constant 0 : index
    %c0_67 = arith.constant 0 : index
    %280 = vector.load %arg8[%279, %c0_66, %c0_67] : memref<8x8x128xf32, #tpu.memory_space<vmem>>, vector<1x8x128xf32>
    %281 = vector.shape_cast %280 : vector<1x8x128xf32> to vector<8x128xf32>
    %282 = vector.shape_cast %278 : vector<8x128xf32> to vector<1x8x128xf32>
    tpu.vector_store %arg8[%279, %c0_66, %c0_67], %282 {strides = array<i32>} : memref<8x8x128xf32, #tpu.memory_space<vmem>>, vector<1x8x128xf32>,
    %c4_i32 = arith.constant 4 : i32
    %283 = arith.index_cast %c4_i32 : i32 to index
    %c0_68 = arith.constant 0 : index
    %c0_69 = arith.constant 0 : index
    %284 = vector.load %arg1[%283, %c0_68, %c0_69] : memref<8x8x384xf32, #tpu.memory_space<vmem>>, vector<1x8x384xf32>
    %285 = vector.shape_cast %284 : vector<1x8x384xf32> to vector<8x384xf32>
    %cst_70 = arith.constant dense<0.000000e+00> : vector<8x384xf32>
    %286 = tpu.matmul %246, %3, %cst_70 {dimension_numbers = #tpu.dot_dimension_numbers<[1], [0], [0], [1], [0, 0, 1, 1], [], []>} : vector<8x128xf32>, vector<128x384xf32>, vector<8x384xf32> -> vector<8x384xf32>
    %287 = vector.broadcast %4 : vector<1x384xf32> to vector<8x384xf32>
    %288 = arith.addf %286, %287 : vector<8x384xf32>
    %289 = vector.extract_strided_slice %285 {offsets = [0, 0], sizes = [8, 128], strides = [1, 1]} : vector<8x384xf32> to vector<8x128xf32>
    %290 = vector.extract_strided_slice %288 {offsets = [0, 0], sizes = [8, 128], strides = [1, 1]} : vector<8x384xf32> to vector<8x128xf32>
    %291 = arith.addf %289, %290 : vector<8x128xf32>
    %292 = arith.negf %291 : vector<8x128xf32>
    %293 = math.exp %292 : vector<8x128xf32>
    %cst_71 = arith.constant 1.000000e+00 : f32
    %294 = vector.broadcast %cst_71 : f32 to vector<8x128xf32>
    %295 = arith.addf %294, %293 : vector<8x128xf32>
    %296 = arith.divf %294, %295 : vector<8x128xf32>
    %297 = vector.extract_strided_slice %285 {offsets = [0, 128], sizes = [8, 128], strides = [1, 1]} : vector<8x384xf32> to vector<8x128xf32>
    %298 = vector.extract_strided_slice %288 {offsets = [0, 128], sizes = [8, 128], strides = [1, 1]} : vector<8x384xf32> to vector<8x128xf32>
    %299 = arith.addf %297, %298 : vector<8x128xf32>
    %300 = arith.negf %299 : vector<8x128xf32>
    %301 = math.exp %300 : vector<8x128xf32>
    %cst_72 = arith.constant 1.000000e+00 : f32
    %302 = vector.broadcast %cst_72 : f32 to vector<8x128xf32>
    %303 = arith.addf %302, %301 : vector<8x128xf32>
    %304 = arith.divf %302, %303 : vector<8x128xf32>
    %305 = vector.extract_strided_slice %285 {offsets = [0, 256], sizes = [8, 128], strides = [1, 1]} : vector<8x384xf32> to vector<8x128xf32>
    %306 = vector.extract_strided_slice %288 {offsets = [0, 256], sizes = [8, 128], strides = [1, 1]} : vector<8x384xf32> to vector<8x128xf32>
    %307 = arith.mulf %296, %306 : vector<8x128xf32>
    %308 = arith.addf %305, %307 : vector<8x128xf32>
    %309 = math.tanh %308 : vector<8x128xf32>
    %cst_73 = arith.constant 1.000000e+00 : f32
    %310 = vector.broadcast %cst_73 : f32 to vector<8x128xf32>
    %311 = arith.subf %310, %304 : vector<8x128xf32>
    %312 = arith.mulf %311, %309 : vector<8x128xf32>
    %313 = arith.mulf %304, %246 : vector<8x128xf32>
    %314 = arith.addf %312, %313 : vector<8x128xf32>
    %cst_74 = arith.constant dense<0.000000e+00> : vector<8x384xf32>
    %315 = tpu.matmul %314, %5, %cst_74 {dimension_numbers = #tpu.dot_dimension_numbers<[1], [0], [0], [1], [0, 0, 1, 1], [], []>} : vector<8x128xf32>, vector<128x384xf32>, vector<8x384xf32> -> vector<8x384xf32>
    %316 = vector.broadcast %6 : vector<1x384xf32> to vector<8x384xf32>
    %317 = arith.addf %315, %316 : vector<8x384xf32>
    %cst_75 = arith.constant dense<0.000000e+00> : vector<8x384xf32>
    %318 = tpu.matmul %278, %7, %cst_75 {dimension_numbers = #tpu.dot_dimension_numbers<[1], [0], [0], [1], [0, 0, 1, 1], [], []>} : vector<8x128xf32>, vector<128x384xf32>, vector<8x384xf32> -> vector<8x384xf32>
    %319 = vector.broadcast %8 : vector<1x384xf32> to vector<8x384xf32>
    %320 = arith.addf %318, %319 : vector<8x384xf32>
    %321 = vector.extract_strided_slice %317 {offsets = [0, 0], sizes = [8, 128], strides = [1, 1]} : vector<8x384xf32> to vector<8x128xf32>
    %322 = vector.extract_strided_slice %320 {offsets = [0, 0], sizes = [8, 128], strides = [1, 1]} : vector<8x384xf32> to vector<8x128xf32>
    %323 = arith.addf %321, %322 : vector<8x128xf32>
    %324 = arith.negf %323 : vector<8x128xf32>
    %325 = math.exp %324 : vector<8x128xf32>
    %cst_76 = arith.constant 1.000000e+00 : f32
    %326 = vector.broadcast %cst_76 : f32 to vector<8x128xf32>
    %327 = arith.addf %326, %325 : vector<8x128xf32>
    %328 = arith.divf %326, %327 : vector<8x128xf32>
    %329 = vector.extract_strided_slice %317 {offsets = [0, 128], sizes = [8, 128], strides = [1, 1]} : vector<8x384xf32> to vector<8x128xf32>
    %330 = vector.extract_strided_slice %320 {offsets = [0, 128], sizes = [8, 128], strides = [1, 1]} : vector<8x384xf32> to vector<8x128xf32>
    %331 = arith.addf %329, %330 : vector<8x128xf32>
    %332 = arith.negf %331 : vector<8x128xf32>
    %333 = math.exp %332 : vector<8x128xf32>
    %cst_77 = arith.constant 1.000000e+00 : f32
    %334 = vector.broadcast %cst_77 : f32 to vector<8x128xf32>
    %335 = arith.addf %334, %333 : vector<8x128xf32>
    %336 = arith.divf %334, %335 : vector<8x128xf32>
    %337 = vector.extract_strided_slice %317 {offsets = [0, 256], sizes = [8, 128], strides = [1, 1]} : vector<8x384xf32> to vector<8x128xf32>
    %338 = vector.extract_strided_slice %320 {offsets = [0, 256], sizes = [8, 128], strides = [1, 1]} : vector<8x384xf32> to vector<8x128xf32>
    %339 = arith.mulf %328, %338 : vector<8x128xf32>
    %340 = arith.addf %337, %339 : vector<8x128xf32>
    %341 = math.tanh %340 : vector<8x128xf32>
    %cst_78 = arith.constant 1.000000e+00 : f32
    %342 = vector.broadcast %cst_78 : f32 to vector<8x128xf32>
    %343 = arith.subf %342, %336 : vector<8x128xf32>
    %344 = arith.mulf %343, %341 : vector<8x128xf32>
    %345 = arith.mulf %336, %278 : vector<8x128xf32>
    %346 = arith.addf %344, %345 : vector<8x128xf32>
    %347 = arith.index_cast %c4_i32 : i32 to index
    %c0_79 = arith.constant 0 : index
    %c0_80 = arith.constant 0 : index
    %348 = vector.load %arg8[%347, %c0_79, %c0_80] : memref<8x8x128xf32, #tpu.memory_space<vmem>>, vector<1x8x128xf32>
    %349 = vector.shape_cast %348 : vector<1x8x128xf32> to vector<8x128xf32>
    %350 = vector.shape_cast %346 : vector<8x128xf32> to vector<1x8x128xf32>
    tpu.vector_store %arg8[%347, %c0_79, %c0_80], %350 {strides = array<i32>} : memref<8x8x128xf32, #tpu.memory_space<vmem>>, vector<1x8x128xf32>,
    %c5_i32 = arith.constant 5 : i32
    %351 = arith.index_cast %c5_i32 : i32 to index
    %c0_81 = arith.constant 0 : index
    %c0_82 = arith.constant 0 : index
    %352 = vector.load %arg1[%351, %c0_81, %c0_82] : memref<8x8x384xf32, #tpu.memory_space<vmem>>, vector<1x8x384xf32>
    %353 = vector.shape_cast %352 : vector<1x8x384xf32> to vector<8x384xf32>
    %cst_83 = arith.constant dense<0.000000e+00> : vector<8x384xf32>
    %354 = tpu.matmul %314, %3, %cst_83 {dimension_numbers = #tpu.dot_dimension_numbers<[1], [0], [0], [1], [0, 0, 1, 1], [], []>} : vector<8x128xf32>, vector<128x384xf32>, vector<8x384xf32> -> vector<8x384xf32>
    %355 = vector.broadcast %4 : vector<1x384xf32> to vector<8x384xf32>
    %356 = arith.addf %354, %355 : vector<8x384xf32>
    %357 = vector.extract_strided_slice %353 {offsets = [0, 0], sizes = [8, 128], strides = [1, 1]} : vector<8x384xf32> to vector<8x128xf32>
    %358 = vector.extract_strided_slice %356 {offsets = [0, 0], sizes = [8, 128], strides = [1, 1]} : vector<8x384xf32> to vector<8x128xf32>
    %359 = arith.addf %357, %358 : vector<8x128xf32>
    %360 = arith.negf %359 : vector<8x128xf32>
    %361 = math.exp %360 : vector<8x128xf32>
    %cst_84 = arith.constant 1.000000e+00 : f32
    %362 = vector.broadcast %cst_84 : f32 to vector<8x128xf32>
    %363 = arith.addf %362, %361 : vector<8x128xf32>
    %364 = arith.divf %362, %363 : vector<8x128xf32>
    %365 = vector.extract_strided_slice %353 {offsets = [0, 128], sizes = [8, 128], strides = [1, 1]} : vector<8x384xf32> to vector<8x128xf32>
    %366 = vector.extract_strided_slice %356 {offsets = [0, 128], sizes = [8, 128], strides = [1, 1]} : vector<8x384xf32> to vector<8x128xf32>
    %367 = arith.addf %365, %366 : vector<8x128xf32>
    %368 = arith.negf %367 : vector<8x128xf32>
    %369 = math.exp %368 : vector<8x128xf32>
    %cst_85 = arith.constant 1.000000e+00 : f32
    %370 = vector.broadcast %cst_85 : f32 to vector<8x128xf32>
    %371 = arith.addf %370, %369 : vector<8x128xf32>
    %372 = arith.divf %370, %371 : vector<8x128xf32>
    %373 = vector.extract_strided_slice %353 {offsets = [0, 256], sizes = [8, 128], strides = [1, 1]} : vector<8x384xf32> to vector<8x128xf32>
    %374 = vector.extract_strided_slice %356 {offsets = [0, 256], sizes = [8, 128], strides = [1, 1]} : vector<8x384xf32> to vector<8x128xf32>
    %375 = arith.mulf %364, %374 : vector<8x128xf32>
    %376 = arith.addf %373, %375 : vector<8x128xf32>
    %377 = math.tanh %376 : vector<8x128xf32>
    %cst_86 = arith.constant 1.000000e+00 : f32
    %378 = vector.broadcast %cst_86 : f32 to vector<8x128xf32>
    %379 = arith.subf %378, %372 : vector<8x128xf32>
    %380 = arith.mulf %379, %377 : vector<8x128xf32>
    %381 = arith.mulf %372, %314 : vector<8x128xf32>
    %382 = arith.addf %380, %381 : vector<8x128xf32>
    %cst_87 = arith.constant dense<0.000000e+00> : vector<8x384xf32>
    %383 = tpu.matmul %382, %5, %cst_87 {dimension_numbers = #tpu.dot_dimension_numbers<[1], [0], [0], [1], [0, 0, 1, 1], [], []>} : vector<8x128xf32>, vector<128x384xf32>, vector<8x384xf32> -> vector<8x384xf32>
    %384 = vector.broadcast %6 : vector<1x384xf32> to vector<8x384xf32>
    %385 = arith.addf %383, %384 : vector<8x384xf32>
    %cst_88 = arith.constant dense<0.000000e+00> : vector<8x384xf32>
    %386 = tpu.matmul %346, %7, %cst_88 {dimension_numbers = #tpu.dot_dimension_numbers<[1], [0], [0], [1], [0, 0, 1, 1], [], []>} : vector<8x128xf32>, vector<128x384xf32>, vector<8x384xf32> -> vector<8x384xf32>
    %387 = vector.broadcast %8 : vector<1x384xf32> to vector<8x384xf32>
    %388 = arith.addf %386, %387 : vector<8x384xf32>
    %389 = vector.extract_strided_slice %385 {offsets = [0, 0], sizes = [8, 128], strides = [1, 1]} : vector<8x384xf32> to vector<8x128xf32>
    %390 = vector.extract_strided_slice %388 {offsets = [0, 0], sizes = [8, 128], strides = [1, 1]} : vector<8x384xf32> to vector<8x128xf32>
    %391 = arith.addf %389, %390 : vector<8x128xf32>
    %392 = arith.negf %391 : vector<8x128xf32>
    %393 = math.exp %392 : vector<8x128xf32>
    %cst_89 = arith.constant 1.000000e+00 : f32
    %394 = vector.broadcast %cst_89 : f32 to vector<8x128xf32>
    %395 = arith.addf %394, %393 : vector<8x128xf32>
    %396 = arith.divf %394, %395 : vector<8x128xf32>
    %397 = vector.extract_strided_slice %385 {offsets = [0, 128], sizes = [8, 128], strides = [1, 1]} : vector<8x384xf32> to vector<8x128xf32>
    %398 = vector.extract_strided_slice %388 {offsets = [0, 128], sizes = [8, 128], strides = [1, 1]} : vector<8x384xf32> to vector<8x128xf32>
    %399 = arith.addf %397, %398 : vector<8x128xf32>
    %400 = arith.negf %399 : vector<8x128xf32>
    %401 = math.exp %400 : vector<8x128xf32>
    %cst_90 = arith.constant 1.000000e+00 : f32
    %402 = vector.broadcast %cst_90 : f32 to vector<8x128xf32>
    %403 = arith.addf %402, %401 : vector<8x128xf32>
    %404 = arith.divf %402, %403 : vector<8x128xf32>
    %405 = vector.extract_strided_slice %385 {offsets = [0, 256], sizes = [8, 128], strides = [1, 1]} : vector<8x384xf32> to vector<8x128xf32>
    %406 = vector.extract_strided_slice %388 {offsets = [0, 256], sizes = [8, 128], strides = [1, 1]} : vector<8x384xf32> to vector<8x128xf32>
    %407 = arith.mulf %396, %406 : vector<8x128xf32>
    %408 = arith.addf %405, %407 : vector<8x128xf32>
    %409 = math.tanh %408 : vector<8x128xf32>
    %cst_91 = arith.constant 1.000000e+00 : f32
    %410 = vector.broadcast %cst_91 : f32 to vector<8x128xf32>
    %411 = arith.subf %410, %404 : vector<8x128xf32>
    %412 = arith.mulf %411, %409 : vector<8x128xf32>
    %413 = arith.mulf %404, %346 : vector<8x128xf32>
    %414 = arith.addf %412, %413 : vector<8x128xf32>
    %415 = arith.index_cast %c5_i32 : i32 to index
    %c0_92 = arith.constant 0 : index
    %c0_93 = arith.constant 0 : index
    %416 = vector.load %arg8[%415, %c0_92, %c0_93] : memref<8x8x128xf32, #tpu.memory_space<vmem>>, vector<1x8x128xf32>
    %417 = vector.shape_cast %416 : vector<1x8x128xf32> to vector<8x128xf32>
    %418 = vector.shape_cast %414 : vector<8x128xf32> to vector<1x8x128xf32>
    tpu.vector_store %arg8[%415, %c0_92, %c0_93], %418 {strides = array<i32>} : memref<8x8x128xf32, #tpu.memory_space<vmem>>, vector<1x8x128xf32>,
    %c6_i32 = arith.constant 6 : i32
    %419 = arith.index_cast %c6_i32 : i32 to index
    %c0_94 = arith.constant 0 : index
    %c0_95 = arith.constant 0 : index
    %420 = vector.load %arg1[%419, %c0_94, %c0_95] : memref<8x8x384xf32, #tpu.memory_space<vmem>>, vector<1x8x384xf32>
    %421 = vector.shape_cast %420 : vector<1x8x384xf32> to vector<8x384xf32>
    %cst_96 = arith.constant dense<0.000000e+00> : vector<8x384xf32>
    %422 = tpu.matmul %382, %3, %cst_96 {dimension_numbers = #tpu.dot_dimension_numbers<[1], [0], [0], [1], [0, 0, 1, 1], [], []>} : vector<8x128xf32>, vector<128x384xf32>, vector<8x384xf32> -> vector<8x384xf32>
    %423 = vector.broadcast %4 : vector<1x384xf32> to vector<8x384xf32>
    %424 = arith.addf %422, %423 : vector<8x384xf32>
    %425 = vector.extract_strided_slice %421 {offsets = [0, 0], sizes = [8, 128], strides = [1, 1]} : vector<8x384xf32> to vector<8x128xf32>
    %426 = vector.extract_strided_slice %424 {offsets = [0, 0], sizes = [8, 128], strides = [1, 1]} : vector<8x384xf32> to vector<8x128xf32>
    %427 = arith.addf %425, %426 : vector<8x128xf32>
    %428 = arith.negf %427 : vector<8x128xf32>
    %429 = math.exp %428 : vector<8x128xf32>
    %cst_97 = arith.constant 1.000000e+00 : f32
    %430 = vector.broadcast %cst_97 : f32 to vector<8x128xf32>
    %431 = arith.addf %430, %429 : vector<8x128xf32>
    %432 = arith.divf %430, %431 : vector<8x128xf32>
    %433 = vector.extract_strided_slice %421 {offsets = [0, 128], sizes = [8, 128], strides = [1, 1]} : vector<8x384xf32> to vector<8x128xf32>
    %434 = vector.extract_strided_slice %424 {offsets = [0, 128], sizes = [8, 128], strides = [1, 1]} : vector<8x384xf32> to vector<8x128xf32>
    %435 = arith.addf %433, %434 : vector<8x128xf32>
    %436 = arith.negf %435 : vector<8x128xf32>
    %437 = math.exp %436 : vector<8x128xf32>
    %cst_98 = arith.constant 1.000000e+00 : f32
    %438 = vector.broadcast %cst_98 : f32 to vector<8x128xf32>
    %439 = arith.addf %438, %437 : vector<8x128xf32>
    %440 = arith.divf %438, %439 : vector<8x128xf32>
    %441 = vector.extract_strided_slice %421 {offsets = [0, 256], sizes = [8, 128], strides = [1, 1]} : vector<8x384xf32> to vector<8x128xf32>
    %442 = vector.extract_strided_slice %424 {offsets = [0, 256], sizes = [8, 128], strides = [1, 1]} : vector<8x384xf32> to vector<8x128xf32>
    %443 = arith.mulf %432, %442 : vector<8x128xf32>
    %444 = arith.addf %441, %443 : vector<8x128xf32>
    %445 = math.tanh %444 : vector<8x128xf32>
    %cst_99 = arith.constant 1.000000e+00 : f32
    %446 = vector.broadcast %cst_99 : f32 to vector<8x128xf32>
    %447 = arith.subf %446, %440 : vector<8x128xf32>
    %448 = arith.mulf %447, %445 : vector<8x128xf32>
    %449 = arith.mulf %440, %382 : vector<8x128xf32>
    %450 = arith.addf %448, %449 : vector<8x128xf32>
    %cst_100 = arith.constant dense<0.000000e+00> : vector<8x384xf32>
    %451 = tpu.matmul %450, %5, %cst_100 {dimension_numbers = #tpu.dot_dimension_numbers<[1], [0], [0], [1], [0, 0, 1, 1], [], []>} : vector<8x128xf32>, vector<128x384xf32>, vector<8x384xf32> -> vector<8x384xf32>
    %452 = vector.broadcast %6 : vector<1x384xf32> to vector<8x384xf32>
    %453 = arith.addf %451, %452 : vector<8x384xf32>
    %cst_101 = arith.constant dense<0.000000e+00> : vector<8x384xf32>
    %454 = tpu.matmul %414, %7, %cst_101 {dimension_numbers = #tpu.dot_dimension_numbers<[1], [0], [0], [1], [0, 0, 1, 1], [], []>} : vector<8x128xf32>, vector<128x384xf32>, vector<8x384xf32> -> vector<8x384xf32>
    %455 = vector.broadcast %8 : vector<1x384xf32> to vector<8x384xf32>
    %456 = arith.addf %454, %455 : vector<8x384xf32>
    %457 = vector.extract_strided_slice %453 {offsets = [0, 0], sizes = [8, 128], strides = [1, 1]} : vector<8x384xf32> to vector<8x128xf32>
    %458 = vector.extract_strided_slice %456 {offsets = [0, 0], sizes = [8, 128], strides = [1, 1]} : vector<8x384xf32> to vector<8x128xf32>
    %459 = arith.addf %457, %458 : vector<8x128xf32>
    %460 = arith.negf %459 : vector<8x128xf32>
    %461 = math.exp %460 : vector<8x128xf32>
    %cst_102 = arith.constant 1.000000e+00 : f32
    %462 = vector.broadcast %cst_102 : f32 to vector<8x128xf32>
    %463 = arith.addf %462, %461 : vector<8x128xf32>
    %464 = arith.divf %462, %463 : vector<8x128xf32>
    %465 = vector.extract_strided_slice %453 {offsets = [0, 128], sizes = [8, 128], strides = [1, 1]} : vector<8x384xf32> to vector<8x128xf32>
    %466 = vector.extract_strided_slice %456 {offsets = [0, 128], sizes = [8, 128], strides = [1, 1]} : vector<8x384xf32> to vector<8x128xf32>
    %467 = arith.addf %465, %466 : vector<8x128xf32>
    %468 = arith.negf %467 : vector<8x128xf32>
    %469 = math.exp %468 : vector<8x128xf32>
    %cst_103 = arith.constant 1.000000e+00 : f32
    %470 = vector.broadcast %cst_103 : f32 to vector<8x128xf32>
    %471 = arith.addf %470, %469 : vector<8x128xf32>
    %472 = arith.divf %470, %471 : vector<8x128xf32>
    %473 = vector.extract_strided_slice %453 {offsets = [0, 256], sizes = [8, 128], strides = [1, 1]} : vector<8x384xf32> to vector<8x128xf32>
    %474 = vector.extract_strided_slice %456 {offsets = [0, 256], sizes = [8, 128], strides = [1, 1]} : vector<8x384xf32> to vector<8x128xf32>
    %475 = arith.mulf %464, %474 : vector<8x128xf32>
    %476 = arith.addf %473, %475 : vector<8x128xf32>
    %477 = math.tanh %476 : vector<8x128xf32>
    %cst_104 = arith.constant 1.000000e+00 : f32
    %478 = vector.broadcast %cst_104 : f32 to vector<8x128xf32>
    %479 = arith.subf %478, %472 : vector<8x128xf32>
    %480 = arith.mulf %479, %477 : vector<8x128xf32>
    %481 = arith.mulf %472, %414 : vector<8x128xf32>
    %482 = arith.addf %480, %481 : vector<8x128xf32>
    %483 = arith.index_cast %c6_i32 : i32 to index
    %c0_105 = arith.constant 0 : index
    %c0_106 = arith.constant 0 : index
    %484 = vector.load %arg8[%483, %c0_105, %c0_106] : memref<8x8x128xf32, #tpu.memory_space<vmem>>, vector<1x8x128xf32>
    %485 = vector.shape_cast %484 : vector<1x8x128xf32> to vector<8x128xf32>
    %486 = vector.shape_cast %482 : vector<8x128xf32> to vector<1x8x128xf32>
    tpu.vector_store %arg8[%483, %c0_105, %c0_106], %486 {strides = array<i32>} : memref<8x8x128xf32, #tpu.memory_space<vmem>>, vector<1x8x128xf32>,
    %c7_i32 = arith.constant 7 : i32
    %487 = arith.index_cast %c7_i32 : i32 to index
    %c0_107 = arith.constant 0 : index
    %c0_108 = arith.constant 0 : index
    %488 = vector.load %arg1[%487, %c0_107, %c0_108] : memref<8x8x384xf32, #tpu.memory_space<vmem>>, vector<1x8x384xf32>
    %489 = vector.shape_cast %488 : vector<1x8x384xf32> to vector<8x384xf32>
    %cst_109 = arith.constant dense<0.000000e+00> : vector<8x384xf32>
    %490 = tpu.matmul %450, %3, %cst_109 {dimension_numbers = #tpu.dot_dimension_numbers<[1], [0], [0], [1], [0, 0, 1, 1], [], []>} : vector<8x128xf32>, vector<128x384xf32>, vector<8x384xf32> -> vector<8x384xf32>
    %491 = vector.broadcast %4 : vector<1x384xf32> to vector<8x384xf32>
    %492 = arith.addf %490, %491 : vector<8x384xf32>
    %493 = vector.extract_strided_slice %489 {offsets = [0, 0], sizes = [8, 128], strides = [1, 1]} : vector<8x384xf32> to vector<8x128xf32>
    %494 = vector.extract_strided_slice %492 {offsets = [0, 0], sizes = [8, 128], strides = [1, 1]} : vector<8x384xf32> to vector<8x128xf32>
    %495 = arith.addf %493, %494 : vector<8x128xf32>
    %496 = arith.negf %495 : vector<8x128xf32>
    %497 = math.exp %496 : vector<8x128xf32>
    %cst_110 = arith.constant 1.000000e+00 : f32
    %498 = vector.broadcast %cst_110 : f32 to vector<8x128xf32>
    %499 = arith.addf %498, %497 : vector<8x128xf32>
    %500 = arith.divf %498, %499 : vector<8x128xf32>
    %501 = vector.extract_strided_slice %489 {offsets = [0, 128], sizes = [8, 128], strides = [1, 1]} : vector<8x384xf32> to vector<8x128xf32>
    %502 = vector.extract_strided_slice %492 {offsets = [0, 128], sizes = [8, 128], strides = [1, 1]} : vector<8x384xf32> to vector<8x128xf32>
    %503 = arith.addf %501, %502 : vector<8x128xf32>
    %504 = arith.negf %503 : vector<8x128xf32>
    %505 = math.exp %504 : vector<8x128xf32>
    %cst_111 = arith.constant 1.000000e+00 : f32
    %506 = vector.broadcast %cst_111 : f32 to vector<8x128xf32>
    %507 = arith.addf %506, %505 : vector<8x128xf32>
    %508 = arith.divf %506, %507 : vector<8x128xf32>
    %509 = vector.extract_strided_slice %489 {offsets = [0, 256], sizes = [8, 128], strides = [1, 1]} : vector<8x384xf32> to vector<8x128xf32>
    %510 = vector.extract_strided_slice %492 {offsets = [0, 256], sizes = [8, 128], strides = [1, 1]} : vector<8x384xf32> to vector<8x128xf32>
    %511 = arith.mulf %500, %510 : vector<8x128xf32>
    %512 = arith.addf %509, %511 : vector<8x128xf32>
    %513 = math.tanh %512 : vector<8x128xf32>
    %cst_112 = arith.constant 1.000000e+00 : f32
    %514 = vector.broadcast %cst_112 : f32 to vector<8x128xf32>
    %515 = arith.subf %514, %508 : vector<8x128xf32>
    %516 = arith.mulf %515, %513 : vector<8x128xf32>
    %517 = arith.mulf %508, %450 : vector<8x128xf32>
    %518 = arith.addf %516, %517 : vector<8x128xf32>
    %cst_113 = arith.constant dense<0.000000e+00> : vector<8x384xf32>
    %519 = tpu.matmul %518, %5, %cst_113 {dimension_numbers = #tpu.dot_dimension_numbers<[1], [0], [0], [1], [0, 0, 1, 1], [], []>} : vector<8x128xf32>, vector<128x384xf32>, vector<8x384xf32> -> vector<8x384xf32>
    %520 = vector.broadcast %6 : vector<1x384xf32> to vector<8x384xf32>
    %521 = arith.addf %519, %520 : vector<8x384xf32>
    %cst_114 = arith.constant dense<0.000000e+00> : vector<8x384xf32>
    %522 = tpu.matmul %482, %7, %cst_114 {dimension_numbers = #tpu.dot_dimension_numbers<[1], [0], [0], [1], [0, 0, 1, 1], [], []>} : vector<8x128xf32>, vector<128x384xf32>, vector<8x384xf32> -> vector<8x384xf32>
    %523 = vector.broadcast %8 : vector<1x384xf32> to vector<8x384xf32>
    %524 = arith.addf %522, %523 : vector<8x384xf32>
    %525 = vector.extract_strided_slice %521 {offsets = [0, 0], sizes = [8, 128], strides = [1, 1]} : vector<8x384xf32> to vector<8x128xf32>
    %526 = vector.extract_strided_slice %524 {offsets = [0, 0], sizes = [8, 128], strides = [1, 1]} : vector<8x384xf32> to vector<8x128xf32>
    %527 = arith.addf %525, %526 : vector<8x128xf32>
    %528 = arith.negf %527 : vector<8x128xf32>
    %529 = math.exp %528 : vector<8x128xf32>
    %cst_115 = arith.constant 1.000000e+00 : f32
    %530 = vector.broadcast %cst_115 : f32 to vector<8x128xf32>
    %531 = arith.addf %530, %529 : vector<8x128xf32>
    %532 = arith.divf %530, %531 : vector<8x128xf32>
    %533 = vector.extract_strided_slice %521 {offsets = [0, 128], sizes = [8, 128], strides = [1, 1]} : vector<8x384xf32> to vector<8x128xf32>
    %534 = vector.extract_strided_slice %524 {offsets = [0, 128], sizes = [8, 128], strides = [1, 1]} : vector<8x384xf32> to vector<8x128xf32>
    %535 = arith.addf %533, %534 : vector<8x128xf32>
    %536 = arith.negf %535 : vector<8x128xf32>
    %537 = math.exp %536 : vector<8x128xf32>
    %cst_116 = arith.constant 1.000000e+00 : f32
    %538 = vector.broadcast %cst_116 : f32 to vector<8x128xf32>
    %539 = arith.addf %538, %537 : vector<8x128xf32>
    %540 = arith.divf %538, %539 : vector<8x128xf32>
    %541 = vector.extract_strided_slice %521 {offsets = [0, 256], sizes = [8, 128], strides = [1, 1]} : vector<8x384xf32> to vector<8x128xf32>
    %542 = vector.extract_strided_slice %524 {offsets = [0, 256], sizes = [8, 128], strides = [1, 1]} : vector<8x384xf32> to vector<8x128xf32>
    %543 = arith.mulf %532, %542 : vector<8x128xf32>
    %544 = arith.addf %541, %543 : vector<8x128xf32>
    %545 = math.tanh %544 : vector<8x128xf32>
    %cst_117 = arith.constant 1.000000e+00 : f32
    %546 = vector.broadcast %cst_117 : f32 to vector<8x128xf32>
    %547 = arith.subf %546, %540 : vector<8x128xf32>
    %548 = arith.mulf %547, %545 : vector<8x128xf32>
    %549 = arith.mulf %540, %482 : vector<8x128xf32>
    %550 = arith.addf %548, %549 : vector<8x128xf32>
    %551 = arith.index_cast %c7_i32 : i32 to index
    %c0_118 = arith.constant 0 : index
    %c0_119 = arith.constant 0 : index
    %552 = vector.load %arg8[%551, %c0_118, %c0_119] : memref<8x8x128xf32, #tpu.memory_space<vmem>>, vector<1x8x128xf32>
    %553 = vector.shape_cast %552 : vector<1x8x128xf32> to vector<8x128xf32>
    %554 = vector.shape_cast %550 : vector<8x128xf32> to vector<1x8x128xf32>
    tpu.vector_store %arg8[%551, %c0_118, %c0_119], %554 {strides = array<i32>} : memref<8x8x128xf32, #tpu.memory_space<vmem>>, vector<1x8x128xf32>,
    %c8_i32 = arith.constant 8 : i32
    %c0_120 = arith.constant 0 : index
    %c0_121 = arith.constant 0 : index
    %555 = vector.load %arg10[%c0_120, %c0_121] : memref<8x128xf32, #tpu.memory_space<vmem>>, vector<8x128xf32>
    tpu.vector_store %arg10[%c0_120, %c0_121], %518 {strides = array<i32>} : memref<8x128xf32, #tpu.memory_space<vmem>>, vector<8x128xf32>,
    %c0_122 = arith.constant 0 : index
    %c0_123 = arith.constant 0 : index
    %556 = vector.load %arg11[%c0_122, %c0_123] : memref<8x128xf32, #tpu.memory_space<vmem>>, vector<8x128xf32>
    tpu.vector_store %arg11[%c0_122, %c0_123], %550 {strides = array<i32>} : memref<8x128xf32, #tpu.memory_space<vmem>>, vector<8x128xf32>,
    %c0_124 = arith.constant 0 : index
    %c0_125 = arith.constant 0 : index
    %c0_126 = arith.constant 0 : index
    %557 = vector.load %arg9[%c0_124, %c0_125, %c0_126] : memref<2x8x128xf32, #tpu.memory_space<vmem>>, vector<1x8x128xf32>
    %558 = vector.shape_cast %557 : vector<1x8x128xf32> to vector<8x128xf32>
    %559 = vector.shape_cast %518 : vector<8x128xf32> to vector<1x8x128xf32>
    tpu.vector_store %arg9[%c0_124, %c0_125, %c0_126], %559 {strides = array<i32>} : memref<2x8x128xf32, #tpu.memory_space<vmem>>, vector<1x8x128xf32>,
    %c1 = arith.constant 1 : index
    %c0_127 = arith.constant 0 : index
    %c0_128 = arith.constant 0 : index
    %560 = vector.load %arg9[%c1, %c0_127, %c0_128] : memref<2x8x128xf32, #tpu.memory_space<vmem>>, vector<1x8x128xf32>
    %561 = vector.shape_cast %560 : vector<1x8x128xf32> to vector<8x128xf32>
    %562 = vector.shape_cast %550 : vector<8x128xf32> to vector<1x8x128xf32>
    tpu.vector_store %arg9[%c1, %c0_127, %c0_128], %562 {strides = array<i32>} : memref<2x8x128xf32, #tpu.memory_space<vmem>>, vector<1x8x128xf32>,
    return
  }
  func.func @transform_0(%arg0: i32) -> (i32, i32, i32) {
    %c0_i32 = arith.constant 0 : i32
    %c0_i32_0 = arith.constant 0 : i32
    %c0_i32_1 = arith.constant 0 : i32
    return %arg0, %c0_i32, %c0_i32_0 : i32, i32, i32
  }
  func.func @transform_1(%arg0: i32) -> (i32, i32) {
    %c0_i32 = arith.constant 0 : i32
    %c0_i32_0 = arith.constant 0 : i32
    %c0_i32_1 = arith.constant 0 : i32
    return %c0_i32, %c0_i32_0 : i32, i32
  }
  func.func @transform_2(%arg0: i32) -> (i32, i32) {
    %c0_i32 = arith.constant 0 : i32
    %c0_i32_0 = arith.constant 0 : i32
    %c0_i32_1 = arith.constant 0 : i32
    return %c0_i32, %c0_i32_0 : i32, i32
  }
  func.func @transform_3(%arg0: i32) -> (i32, i32) {
    %c0_i32 = arith.constant 0 : i32
    %c0_i32_0 = arith.constant 0 : i32
    %c0_i32_1 = arith.constant 0 : i32
    return %c0_i32, %c0_i32_0 : i32, i32
  }
  func.func @transform_4(%arg0: i32) -> (i32, i32) {
    %c0_i32 = arith.constant 0 : i32
    %c0_i32_0 = arith.constant 0 : i32
    %c0_i32_1 = arith.constant 0 : i32
    return %c0_i32, %c0_i32_0 : i32, i32
  }
  func.func @transform_5(%arg0: i32) -> (i32, i32) {
    %c0_i32 = arith.constant 0 : i32
    %c0_i32_0 = arith.constant 0 : i32
    %c0_i32_1 = arith.constant 0 : i32
    return %c0_i32, %c0_i32_0 : i32, i32
  }
  func.func @transform_6(%arg0: i32) -> (i32, i32) {
    %c0_i32 = arith.constant 0 : i32
    %c0_i32_0 = arith.constant 0 : i32
    %c0_i32_1 = arith.constant 0 : i32
    return %c0_i32, %c0_i32_0 : i32, i32
  }
  func.func @transform_7(%arg0: i32) -> (i32, i32, i32) {
    %c0_i32 = arith.constant 0 : i32
    %c0_i32_0 = arith.constant 0 : i32
    %c0_i32_1 = arith.constant 0 : i32
    return %arg0, %c0_i32, %c0_i32_0 : i32, i32, i32
  }
  func.func @transform_8(%arg0: i32) -> (i32, i32, i32) {
    %c0_i32 = arith.constant 0 : i32
    %c0_i32_0 = arith.constant 0 : i32
    %c0_i32_1 = arith.constant 0 : i32
    %c0_i32_2 = arith.constant 0 : i32
    return %c0_i32, %c0_i32_0, %c0_i32_1 : i32, i32, i32
  }
}

</mosaic_0001>

<bundles_post_ra>
// kernel: gru_encoder_forward.1
= control target key start
LH: loop header
LB: loop body
LE: loop exit
PB: predicated region body
PF: predicated region fallthrough
CT: control target
= control target key end

     0   :  { %14 = vsyncpa [#allocation5], 0  ;;  %s6396_s0 = inlined_call_operand.vmem [shape: f32[8,8,384], index: 0, kind: input, shape index: {}]   ;;  %s6397_s1 = inlined_call_operand.vmem [shape: f32[128,384], index: 1, kind: input, shape index: {}]   ;;  %s6398_s2 = inlined_call_operand.vmem [shape: f32[1,384], index: 2, kind: input, shape index: {}]   ;;  %s6399_s3 = inlined_call_operand.hbm [shape: f32[128,384], index: 3, kind: input, shape index: {}]   ;;  %s6400_s4 = inlined_call_operand.vmem [shape: f32[1,384], index: 4, kind: input, shape index: {}]   ;;  %s6401_s5 = inlined_call_operand.hbm [shape: f32[128,384], index: 5, kind: input, shape index: {}]   ;;  %s6402_s6 = inlined_call_operand.vmem [shape: f32[1,384], index: 6, kind: input, shape index: {}]   ;;  %s6403_s7 = inlined_call_operand.vmem [shape: f32[8,8,128], index: 7, kind: output, shape index: {0}]   ;;  %s6404_s8 = inlined_call_operand.vmem [shape: f32[2,8,128], index: 8, kind: output, shape index: {1}]  }
   0x1   :  { %s26_s29 = sshll.u32 %s6399_s3, 4  ;;  %s27_s29 = int_to_ptr.hbm [resolvable:$true] %s26_s29 }
   0x2   :  { %15 = vsyncpa [#allocation7], 0  ;;  %s3199_s30 = smov [#allocation4]   ;;  %s41_s12 = sshll.u32 %s6401_s5, 4  ;;  %s42_s12 = int_to_ptr.hbm [resolvable:$true] %s41_s12 }
   0x3   :  { %s28_s9 = sshll.u32 %s3199_s30, 4  ;;  %s3200_s13 = smov 384   ;;  %s29_s9 = int_to_ptr.vmem [resolvable:$true] %s28_s9 }
   0x4   :  { %s3201_s14 = smov 24   ;;  %s3202_s15 = smov [#allocation6]  }
   0x5   :  { %34 = dma.hbm_to_vmem [thread:$0]  %s27_s29, 6144, %s29_s9, [#allocation5], %s3200_s13, %s3200_s13, %s3201_s14  }
   0x6   :  { %s43_s16 = sshll.u32 %s3202_s15, 4  ;;  %s44_s16 = int_to_ptr.vmem [resolvable:$true] %s43_s16 }
   0x7   :  { %49 = dma.hbm_to_vmem [thread:$0]  %s42_s12, 6144, %s44_s16, [#allocation7], %s3200_s13, %s3200_s13, %s3201_s14  }
   0x8   :  { %3195 = dma.done.wait [#allocation5], 6144  }
   0x9   :  { %3196 = vsyncadd [#allocation5], 4294961152 }
   0xa   :  { %3197 = dma.done.wait [#allocation7], 6144  }
   0xb   :  { %3198 = vsyncadd [#allocation7], 4294961152  ;;  %v3258_v0 = vld [vmem:[%s6397_s1 + $0x168] sm:$0xff]  ;;  %v3263_v1 = vld [vmem:[%s6397_s1 + $0x170] sm:$0xff]  ;;  %v6406_v52 = vmov 0.0  }
   0xc   :  { %v3268_v2 = vld [vmem:[%s6397_s1 + $0x150] sm:$0xff]  ;;  %225 = vmatpush.msra.mxu0 %v3258_v0  ;;  %245 = vmatpush.msra.mxu1 %v3263_v1  ;;  %v3275_v3 = vld [vmem:[%s6397_s1 + $0x158] sm:$0xff]  ;;  %v3285_v5 = vld [vmem:[%s6397_s1 + $0x140] sm:$0xff] }
   0xd   :  { %6713 = vst [vmem:[#allocation10_spill] sm:$0xff] %v3268_v2  ;;  %v3280_v4 = vld [vmem:[%s6397_s1 + $0x138] sm:$0xff]  ;;  %v3292_v6 = vld [vmem:[%s6397_s1 + $0x120] sm:$0xff]  ;;  %v3297_v7 = vld [vmem:[%s6397_s1 + $0x128] sm:$0xff] }
   0xe   :  { %6714 = vst [vmem:[#allocation11_spill] sm:$0xff] %v3280_v4  ;;  %226 = vmatpush.msra.mxu0 %v3268_v2  ;;  %246 = vmatpush.msra.mxu1 %v3275_v3  ;;  %v3304_v8 = vld [vmem:[%s6397_s1 + $0x108] sm:$0xff]  ;;  %v3309_v9 = vld [vmem:[%s6397_s1 + $0x110] sm:$0xff]  ;;  %v3321_v11 = vld [vmem:[%s6397_s1 + $0xf8] sm:$0xff] }
   0xf   :  { %6715 = vst [vmem:[#allocation12_spill] sm:$0xff] %v3309_v9  ;;  %v3316_v10 = vld [vmem:[%s6397_s1 + $0xf0] sm:$0xff]  ;;  %v3326_v12 = vld [vmem:[%s6397_s1 + $0x178] sm:$0xff]  ;;  %v3333_v13 = vld [vmem:[%s6397_s1 + $0x160] sm:$0xff] }
  0x10   :  { %227 = vmatpush.msra.mxu0 %v3280_v4  ;;  %247 = vmatpush.msra.mxu1 %v3285_v5  ;;  %6716 = vst [vmem:[#allocation13_spill] sm:$0xff] %v3321_v11  ;;  %v3338_v14 = vld [vmem:[%s6397_s1 + $0xd8] sm:$0xff]  ;;  %v3343_v15 = vld [vmem:[%s6397_s1 + $0xe0] sm:$0xff]  ;;  %v3351_v16 = vld [vmem:[%s6397_s1 + $0x148] sm:$0xff] }
  0x11   :  { %6717 = vst [vmem:[#allocation14_spill] sm:$0xff] %v3343_v15  ;;  %265 = vmatpush.msra.mxu2 %v3326_v12  ;;  %v3356_v17 = vld [vmem:[%s6397_s1 + $0xc0] sm:$0xff]  ;;  %v3361_v18 = vld [vmem:[%s6397_s1 + $0xc8] sm:$0xff]  ;;  %v3369_v19 = vld [vmem:[%s6397_s1 + $0x130] sm:$0xff] }
  0x12   :  { %228 = vmatpush.msra.mxu0 %v3292_v6  ;;  %248 = vmatpush.msra.mxu1 %v3297_v7  ;;  %6718 = vst [vmem:[#allocation15_spill] sm:$0xff] %v3361_v18  ;;  %v3374_v20 = vld [vmem:[%s6397_s1 + $0xa8] sm:$0xff]  ;;  %v3379_v21 = vld [vmem:[%s6397_s1 + $0xb0] sm:$0xff]  ;;  %v3387_v22 = vld [vmem:[%s6397_s1 + $0x118] sm:$0xff] }
  0x13   :  { %266 = vmatpush.msra.mxu2 %v3333_v13  ;;  %6719 = vst [vmem:[#allocation16_spill] sm:$0xff] %v3379_v21  ;;  %v3392_v23 = vld [vmem:[%s6397_s1 + $0x90] sm:$0xff]  ;;  %v3397_v24 = vld [vmem:[%s6397_s1 + $0x98] sm:$0xff]  ;;  %v3400_v25 = vld [vmem:[#allocation4 + $0x168] sm:$0xff] }
  0x14   :  { %229 = vmatpush.msra.mxu0 %v3304_v8  ;;  %249 = vmatpush.msra.mxu1 %v3309_v9  ;;  %6720 = vst [vmem:[#allocation17_spill] sm:$0xff] %v3397_v24  ;;  %v3407_v26 = vld [vmem:[%s6397_s1 + $0x100] sm:$0xff]  ;;  %v3409_v27 = vld [vmem:[#allocation4 + $0x150] sm:$0xff]  ;;  %v3414_v28 = vld [vmem:[%s6397_s1 + $0x78] sm:$0xff] }
  0x15   :  { %267 = vmatpush.msra.mxu2 %v3351_v16  ;;  %6721 = vst [vmem:[#allocation18_spill] sm:$0xff] %v3407_v26  ;;  %v3419_v29 = vld [vmem:[%s6397_s1 + $0x80] sm:$0xff]  ;;  %339 = vmatpush.msra.mxu3 %v3400_v25  ;;  %v3428_v30 = vld [vmem:[%s6397_s1 + $0xe8] sm:$0xff]  ;;  %v3430_v31 = vld [vmem:[#allocation4 + $0x138] sm:$0xff] }
  0x16   :  { %230 = vmatpush.msra.mxu0 %v3316_v10  ;;  %250 = vmatpush.msra.mxu1 %v3321_v11  ;;  %6722 = vst [vmem:[#allocation19_spill] sm:$0xff] %v3419_v29  ;;  %v3435_v32 = vld [vmem:[%s6397_s1 + $0x60] sm:$0xff]  ;;  %v3440_v33 = vld [vmem:[%s6397_s1 + $0x68] sm:$0xff]  ;;  %v3449_v34 = vld [vmem:[%s6397_s1 + $0xd0] sm:$0xff] }
  0x17   :  { %268 = vmatpush.msra.mxu2 %v3369_v19  ;;  %6723 = vst [vmem:[#allocation20_spill] sm:$0xff] %v3428_v30  ;;  %340 = vmatpush.msra.mxu3 %v3409_v27  ;;  %v3451_v35 = vld [vmem:[#allocation4 + $0x120] sm:$0xff]  ;;  %v3456_v36 = vld [vmem:[%s6397_s1 + $0x48] sm:$0xff]  ;;  %v3461_v37 = vld [vmem:[%s6397_s1 + $0x50] sm:$0xff] }
  0x18   :  { %231 = vmatpush.msra.mxu0 %v3338_v14  ;;  %251 = vmatpush.msra.mxu1 %v3343_v15  ;;  %6724 = vst [vmem:[#allocation21_spill] sm:$0xff] %v3430_v31  ;;  %v3470_v38 = vld [vmem:[%s6397_s1 + $0xb8] sm:$0xff]  ;;  %v3472_v39 = vld [vmem:[#allocation4 + $0x108] sm:$0xff]  ;;  %v3477_v40 = vld [vmem:[%s6397_s1 + $0x30] sm:$0xff] }
  0x19   :  { %269 = vmatpush.msra.mxu2 %v3387_v22  ;;  %6725 = vst [vmem:[#allocation22_spill] sm:$0xff] %v3440_v33  ;;  %341 = vmatpush.msra.mxu3 %v3430_v31  ;;  %v3482_v41 = vld [vmem:[%s6397_s1 + $0x38] sm:$0xff]  ;;  %v3491_v42 = vld [vmem:[%s6397_s1 + $0xa0] sm:$0xff]  ;;  %v3493_v43 = vld [vmem:[#allocation4 + $0xf0] sm:$0xff] }
  0x1a   :  { %232 = vmatpush.msra.mxu0 %v3356_v17  ;;  %252 = vmatpush.msra.mxu1 %v3361_v18  ;;  %6726 = vst [vmem:[#allocation23_spill] sm:$0xff] %v3449_v34  ;;  %v3498_v44 = vld [vmem:[%s6397_s1 + $0x18] sm:$0xff]  ;;  %v3503_v45 = vld [vmem:[%s6397_s1 + $0x20] sm:$0xff]  ;;  %v3512_v46 = vld [vmem:[%s6397_s1 + $0x88] sm:$0xff] }
  0x1b   :  { %270 = vmatpush.msra.mxu2 %v3407_v26  ;;  %6727 = vst [vmem:[#allocation24_spill] sm:$0xff] %v3451_v35  ;;  %342 = vmatpush.msra.mxu3 %v3451_v35  ;;  %v3514_v47 = vld [vmem:[#allocation4 + $0xd8] sm:$0xff]  ;;  %v3519_v48 = vld [vmem:[%s6397_s1] sm:$0xff]  ;;  %v3524_v49 = vld [vmem:[%s6397_s1 + $0x8] sm:$0xff] }
  0x1c   :  { %233 = vmatpush.msra.mxu0 %v3374_v20  ;;  %253 = vmatpush.msra.mxu1 %v3379_v21  ;;  %6728 = vst [vmem:[#allocation25_spill] sm:$0xff] %v3461_v37  ;;  %v3534_v50 = vld [vmem:[%s6397_s1 + $0x70] sm:$0xff]  ;;  %v3536_v51 = vld [vmem:[#allocation4 + $0x178] sm:$0xff]  ;;  %v3548_v54 = vld [vmem:[#allocation4 + $0x160] sm:$0xff] }
  0x1d   :  { %271 = vmatpush.msra.mxu2 %v3428_v30  ;;  %6729 = vst [vmem:[#allocation26_spill] sm:$0xff] %v3470_v38  ;;  %343 = vmatpush.msra.mxu3 %v3472_v39  ;;  %v3546_v53 = vld [vmem:[%s6397_s1 + $0x58] sm:$0xff]  ;;  %v3555_v55 = vld [vmem:[%s6397_s1 + $0x40] sm:$0xff]  ;;  %v3557_v56 = vld [vmem:[#allocation4 + $0x148] sm:$0xff] }
  0x1e   :  { %234 = vmatpush.msra.mxu0 %v3392_v23  ;;  %254 = vmatpush.msra.mxu1 %v3397_v24  ;;  %6730 = vst [vmem:[#allocation27_spill] sm:$0xff] %v3472_v39  ;;  %v3564_v57 = vld [vmem:[%s6397_s1 + $0x28] sm:$0xff]  ;;  %v3571_v58 = vld [vmem:[%s6397_s1 + $0x10] sm:$0xff]  ;;  %v3581_v61 = vld [vmem:[#allocation6 + $0x138] sm:$0xff] }
  0x1f   :  { %6731 = vst [vmem:[#allocation28_spill] sm:$0xff] %v3482_v41  ;;  %272 = vmatpush.msra.mxu2 %v3449_v34  ;;  %344 = vmatpush.msra.mxu3 %v3493_v43  ;;  %v3574_v59 = vld [vmem:[#allocation6 + $0x168] sm:$0xff]  ;;  %v3578_v60 = vld [vmem:[#allocation6 + $0x150] sm:$0xff]  ;;  %v3584_v62 = vld [vmem:[#allocation6 + $0x120] sm:$0xff] }
  0x20   :  { %235 = vmatpush.msra.mxu0 %v3414_v28  ;;  %255 = vmatpush.msra.mxu1 %v3419_v29  ;;  %6732 = vst [vmem:[#allocation29_spill] sm:$0xff] %v3491_v42  ;;  %v3587_v63 = vld [vmem:[#allocation6 + $0x108] sm:$0xff]  ;;  %v3699_v39 = vld [vmem:[#allocation6 + $0x140] sm:$0xff]  ;;  %v3719_v35 = vld [vmem:[#allocation6 + $0x110] sm:$0xff] }
  0x21   :  { %6733 = vst [vmem:[#allocation30_spill] sm:$0xff] %v3493_v43  ;;  %273 = vmatpush.msra.mxu2 %v3470_v38  ;;  %345 = vmatpush.msra.mxu3 %v3514_v47  ;;  %v3679_v43 = vld [vmem:[#allocation6 + $0x170] sm:$0xff]  ;;  %v3689_v38 = vld [vmem:[#allocation6 + $0x158] sm:$0xff]  ;;  %v3709_v34 = vld [vmem:[#allocation6 + $0x128] sm:$0xff] }
  0x22   :  { %236 = vmatpush.msra.mxu0 %v3435_v32  ;;  %256 = vmatpush.msra.mxu1 %v3440_v33  ;;  %6734 = vst [vmem:[#allocation31_spill] sm:$0xff] %v3498_v44  ;;  %v3738_v30 = vld [vmem:[#allocation6 + $0xe0] sm:$0xff] }
  0x23   :  { %6735 = vst [vmem:[#allocation32_spill] sm:$0xff] %v3503_v45  ;;  %274 = vmatpush.msra.mxu2 %v3491_v42  ;;  %v3671_v42 = vld [vmem:[#allocation4 + $0x70] sm:$0xff] }
  0x24   :  { %237 = vmatpush.msra.mxu0 %v3456_v36  ;;  %257 = vmatpush.msra.mxu1 %v3461_v37  ;;  %6736 = vst [vmem:[#allocation33_spill] sm:$0xff] %v3512_v46 }
  0x25   :  { %6737 = vst [vmem:[#allocation34_spill] sm:$0xff] %v3514_v47  ;;  %275 = vmatpush.msra.mxu2 %v3512_v46  ;;  %v3653_v46 = vld [vmem:[#allocation4 + $0xa0] sm:$0xff]  ;;  %v3662_v47 = vld [vmem:[#allocation4 + $0x88] sm:$0xff] }
  0x26   :  { %238 = vmatpush.msra.mxu0 %v3477_v40  ;;  %258 = vmatpush.msra.mxu1 %v3482_v41  ;;  %6738 = vst [vmem:[#allocation35_spill] sm:$0xff] %v3519_v48 }
  0x27   :  { %6739 = vst [vmem:[#allocation36_spill] sm:$0xff] %v3524_v49  ;;  %276 = vmatpush.msra.mxu2 %v3534_v50 }
  0x28   :  { %239 = vmatpush.msra.mxu0 %v3498_v44  ;;  %259 = vmatpush.msra.mxu1 %v3503_v45  ;;  %6740 = vst [vmem:[#allocation37_spill] sm:$0xff] %v3534_v50  ;;  %v3635_v50 = vld [vmem:[#allocation4 + $0xd0] sm:$0xff] }
  0x29   :  { %6741 = vst [vmem:[#allocation38_spill] sm:$0xff] %v3546_v53  ;;  %277 = vmatpush.msra.mxu2 %v3546_v53  ;;  %v3626_v53 = vld [vmem:[#allocation4 + $0xe8] sm:$0xff] }
  0x2a   :  { %240 = vmatpush.msra.mxu0 %v3519_v48  ;;  %260 = vmatpush.msra.mxu1 %v3524_v49  ;;  %6742 = vst [vmem:[#allocation39_spill] sm:$0xff] %v3555_v55 }
  0x2b   :  { %241 = vmatmul.f32.vlgmr.msra.gmra.mxu0 %v6406_v52  ;;  %261 = vmatmul.f32.vlgmr.msra.gmra.mxu1 %v6406_v52  ;;  %6743 = vst [vmem:[#allocation40_spill] sm:$0xff] %v3564_v57 }
  0x2c   :  { %379 = vmatpush.msrb.mxu1 %v3536_v51  ;;  %278 = vmatpush.msra.mxu2 %v3555_v55  ;;  %6744 = vst [vmem:[#allocation41_spill] sm:$0xff] %v3571_v58  ;;  %v3619_v55 = vld [vmem:[#allocation6 + $0x90] sm:$0xff] }
  0x2d   :  { %6745 = vst [vmem:[#allocation42_spill] sm:$0xff] %v3574_v59 }
  0x2e   :  { %380 = vmatpush.msrb.mxu1 %v3548_v54  ;;  %279 = vmatpush.msra.mxu2 %v3564_v57  ;;  %6746 = vst [vmem:[#allocation43_spill] sm:$0xff] %v3578_v60  ;;  %v3590_v57 = vld [vmem:[#allocation6 + $0xf0] sm:$0xff] }
  0x2f   :  { %6747 = vst [vmem:[#allocation44_spill] sm:$0xff] %v3581_v61 }
  0x30   :  { %381 = vmatpush.msrb.mxu1 %v3557_v56  ;;  %280 = vmatpush.msra.mxu2 %v3571_v58  ;;  %6748 = vst [vmem:[#allocation45_spill] sm:$0xff] %v3584_v62  ;;  %v3601_v58 = vld [vmem:[#allocation6 + $0xc0] sm:$0xff] }
  0x31   :  { %281 = vmatmul.f32.vlgmr.msra.gmra.mxu2 %v6406_v52  ;;  %6749 = vst [vmem:[#allocation46_spill] sm:$0xff] %v3587_v63  ;;  %v3593_v52 = vld [vmem:[#allocation6 + $0xd8] sm:$0xff] }
  0x32   :  { %406 = vmatpush.msrb.mxu2 %v3574_v59  ;;  %6750 = vst [vmem:[#allocation47_spill] sm:$0xff] %v3590_v57  ;;  %v3597_v59 = vld [vmem:[#allocation4 + $0xc0] sm:$0xff] }
  0x33   :  { %6751 = vst [vmem:[#allocation48_spill] sm:$0xff] %v3593_v52  ;;  %346 = vmatpush.msra.mxu3 %v3597_v59 }
  0x34   :  { %407 = vmatpush.msrb.mxu2 %v3578_v60  ;;  %6752 = vst [vmem:[#allocation49_spill] sm:$0xff] %v3597_v59  ;;  %v3599_v60 = vld [vmem:[#allocation4 + $0x130] sm:$0xff]  ;;  %v3644_v59 = vld [vmem:[#allocation4 + $0xb8] sm:$0xff] }
  0x35   :  { %6753 = vst [vmem:[#allocation50_spill] sm:$0xff] %v3601_v58  ;;  %382 = vmatpush.msrb.mxu1 %v3599_v60 }
  0x36   :  { %408 = vmatpush.msrb.mxu2 %v3581_v61  ;;  %v3617_v61 = vld [vmem:[#allocation4 + $0x100] sm:$0xff]  ;;  %6757 = vst [vmem:[#allocation54_spill] sm:$0xff] %v3619_v55 }
  0x37   :  { %6770 = vst [vmem:[#allocation67_spill] sm:$0xff] %v3679_v43 }
  0x38   :  { %409 = vmatpush.msrb.mxu2 %v3584_v62  ;;  %v3606_v62 = vld [vmem:[#allocation4 + $0xa8] sm:$0xff]  ;;  %6771 = vst [vmem:[#allocation68_spill] sm:$0xff] %v3689_v38 }
  0x39   :  { %6754 = vst [vmem:[#allocation51_spill] sm:$0xff] %v3606_v62  ;;  %347 = vmatpush.msra.mxu3 %v3606_v62  ;;  %v3628_v62 = vld [vmem:[#allocation6 + $0x78] sm:$0xff] }
  0x3a   :  { %410 = vmatpush.msrb.mxu2 %v3587_v63  ;;  %v3608_v63 = vld [vmem:[#allocation4 + $0x118] sm:$0xff]  ;;  %6759 = vst [vmem:[#allocation56_spill] sm:$0xff] %v3628_v62 }
  0x3b   :  { %383 = vmatpush.msrb.mxu1 %v3608_v63  ;;  %6772 = vst [vmem:[#allocation69_spill] sm:$0xff] %v3699_v39 }
  0x3c   :  { %411 = vmatpush.msrb.mxu2 %v3590_v57  ;;  %v3615_v57 = vld [vmem:[#allocation4 + $0x90] sm:$0xff]  ;;  %6774 = vst [vmem:[#allocation71_spill] sm:$0xff] %v3709_v34 }
  0x3d   :  { %6756 = vst [vmem:[#allocation53_spill] sm:$0xff] %v3615_v57  ;;  %348 = vmatpush.msra.mxu3 %v3615_v57  ;;  %384 = vmatpush.msrb.mxu1 %v3617_v61  ;;  %v3637_v57 = vld [vmem:[#allocation6 + $0x60] sm:$0xff] }
  0x3e   :  { %412 = vmatpush.msrb.mxu2 %v3593_v52  ;;  %v3612_v52 = vld [vmem:[#allocation6 + $0xa8] sm:$0xff]  ;;  %6761 = vst [vmem:[#allocation58_spill] sm:$0xff] %v3637_v57 }
  0x3f   :  { %6755 = vst [vmem:[#allocation52_spill] sm:$0xff] %v3612_v52  ;;  %385 = vmatpush.msrb.mxu1 %v3626_v53 }
  0x40   :  { %413 = vmatpush.msrb.mxu2 %v3601_v58  ;;  %v3624_v58 = vld [vmem:[#allocation4 + $0x78] sm:$0xff]  ;;  %6776 = vst [vmem:[#allocation73_spill] sm:$0xff] %v3719_v35 }
  0x41   :  { %6758 = vst [vmem:[#allocation55_spill] sm:$0xff] %v3624_v58  ;;  %349 = vmatpush.msra.mxu3 %v3624_v58  ;;  %386 = vmatpush.msrb.mxu1 %v3635_v50  ;;  %v3646_v58 = vld [vmem:[#allocation6 + $0x48] sm:$0xff] }
  0x42   :  { %414 = vmatpush.msrb.mxu2 %v3612_v52  ;;  %v3633_v52 = vld [vmem:[#allocation4 + $0x60] sm:$0xff]  ;;  %6763 = vst [vmem:[#allocation60_spill] sm:$0xff] %v3646_v58 }
  0x43   :  { %6760 = vst [vmem:[#allocation57_spill] sm:$0xff] %v3633_v52  ;;  %350 = vmatpush.msra.mxu3 %v3633_v52  ;;  %387 = vmatpush.msrb.mxu1 %v3644_v59  ;;  %v3655_v52 = vld [vmem:[#allocation6 + $0x30] sm:$0xff] }
  0x44   :  { %415 = vmatpush.msrb.mxu2 %v3619_v55  ;;  %v3642_v55 = vld [vmem:[#allocation4 + $0x48] sm:$0xff]  ;;  %6765 = vst [vmem:[#allocation62_spill] sm:$0xff] %v3655_v52 }
  0x45   :  { %6762 = vst [vmem:[#allocation59_spill] sm:$0xff] %v3642_v55  ;;  %351 = vmatpush.msra.mxu3 %v3642_v55  ;;  %388 = vmatpush.msrb.mxu1 %v3653_v46  ;;  %v3664_v55 = vld [vmem:[#allocation6 + $0x18] sm:$0xff] }
  0x46   :  { %416 = vmatpush.msrb.mxu2 %v3628_v62  ;;  %v3651_v62 = vld [vmem:[#allocation4 + $0x30] sm:$0xff]  ;;  %6767 = vst [vmem:[#allocation64_spill] sm:$0xff] %v3664_v55 }
  0x47   :  { %6764 = vst [vmem:[#allocation61_spill] sm:$0xff] %v3651_v62  ;;  %352 = vmatpush.msra.mxu3 %v3651_v62  ;;  %389 = vmatpush.msrb.mxu1 %v3662_v47  ;;  %v3673_v62 = vld [vmem:[#allocation6] sm:$0xff] }
  0x48   :  { %417 = vmatpush.msrb.mxu2 %v3637_v57  ;;  %v3660_v57 = vld [vmem:[#allocation4 + $0x18] sm:$0xff]  ;;  %6769 = vst [vmem:[#allocation66_spill] sm:$0xff] %v3673_v62 }
  0x49   :  { %6766 = vst [vmem:[#allocation63_spill] sm:$0xff] %v3660_v57  ;;  %353 = vmatpush.msra.mxu3 %v3660_v57  ;;  %390 = vmatpush.msrb.mxu1 %v3671_v42  ;;  %v3683_v57 = vld [vmem:[#allocation4 + $0x58] sm:$0xff] }
  0x4a   :  { %418 = vmatpush.msrb.mxu2 %v3646_v58  ;;  %v3669_v58 = vld [vmem:[#allocation4] sm:$0xff]  ;;  %6780 = vst [vmem:[#allocation77_spill] sm:$0xff] %v3738_v30 }
  0x4b   :  { %6768 = vst [vmem:[#allocation65_spill] sm:$0xff] %v3669_v58  ;;  %354 = vmatpush.msra.mxu3 %v3669_v58  ;;  %391 = vmatpush.msrb.mxu1 %v3683_v57  ;;  %v3693_v58 = vld [vmem:[#allocation4 + $0x40] sm:$0xff] }
  0x4c   :  { %419 = vmatpush.msrb.mxu2 %v3655_v52  ;;  %v3677_v52 = vld [vmem:[#allocation4 + $0x170] sm:$0xff] }
  0x4d   :  { %359 = vmatpush.msrb.mxu0 %v3677_v52  ;;  %426 = vmatpush.msrb.mxu3 %v3679_v43  ;;  %v3707_v43 = vld [vmem:[#allocation4 + $0x128] sm:$0xff] }
  0x4e   :  { %420 = vmatpush.msrb.mxu2 %v3664_v55  ;;  %v3687_v55 = vld [vmem:[#allocation4 + $0x158] sm:$0xff]  ;;  %392 = vmatpush.msrb.mxu1 %v3693_v58  ;;  %6773 = vst [vmem:[#allocation70_spill] sm:$0xff] %v3707_v43 }
  0x4f   :  { %360 = vmatpush.msrb.mxu0 %v3687_v55  ;;  %427 = vmatpush.msrb.mxu3 %v3689_v38  ;;  %v3717_v38 = vld [vmem:[#allocation4 + $0x110] sm:$0xff] }
  0x50   :  { %421 = vmatpush.msrb.mxu2 %v3673_v62  ;;  %v3697_v62 = vld [vmem:[#allocation4 + $0x140] sm:$0xff]  ;;  %6775 = vst [vmem:[#allocation72_spill] sm:$0xff] %v3717_v38 }
  0x51   :  { %361 = vmatpush.msrb.mxu0 %v3697_v62  ;;  %428 = vmatpush.msrb.mxu3 %v3699_v39  ;;  %v3736_v39 = vld [vmem:[#allocation4 + $0xe0] sm:$0xff] }
  0x52   :  { %538 = vmatpush.msra.mxu2 %v3263_v1  ;;  %v3703_v1 = vld [vmem:[#allocation4 + $0x28] sm:$0xff]  ;;  %6779 = vst [vmem:[#allocation76_spill] sm:$0xff] %v3736_v39 }
  0x53   :  { %393 = vmatpush.msrb.mxu1 %v3703_v1  ;;  %362 = vmatpush.msrb.mxu0 %v3707_v43 }
  0x54   :  { %539 = vmatpush.msra.mxu2 %v3275_v3  ;;  %v3713_v3 = vld [vmem:[#allocation4 + $0x10] sm:$0xff]  ;;  %429 = vmatpush.msrb.mxu3 %v3709_v34  ;;  %v3730_v34 = vld [vmem:[#allocation4 + $0xf8] sm:$0xff] }
  0x55   :  { %394 = vmatpush.msrb.mxu1 %v3713_v3  ;;  %363 = vmatpush.msrb.mxu0 %v3717_v38  ;;  %6777 = vst [vmem:[#allocation74_spill] sm:$0xff] %v3730_v34 }
  0x56   :  { %540 = vmatpush.msra.mxu2 %v3285_v5  ;;  %v3724_v5 = vld [vmem:[%s6398_s2] sm:$0x7]  ;;  %430 = vmatpush.msrb.mxu3 %v3719_v35  ;;  %v3754_v35 = vld [vmem:[#allocation6 + $0xc8] sm:$0xff] }
  0x57   :  { %518 = vmatpush.msra.mxu1 %v3258_v0  ;;  %364 = vmatpush.msrb.mxu0 %v3730_v34  ;;  %v3741_v31 = vperm.slane %v3724_v5, 0  ;;  %v3744_v38 = vperm.slane %v3724_v5, 1  ;;  %6783 = vst [vmem:[#allocation80_spill] sm:$0xff] %v3754_v35  ;;  %v215_v34 = vld [vmem:[%s6396_s0] sm:$0xff] }
  0x58   :  { %541 = vmatpush.msra.mxu2 %v3297_v7  ;;  %v3732_v7 = vld [vmem:[#allocation6 + $0xf8] sm:$0xff] }
  0x59   :  { %6778 = vst [vmem:[#allocation75_spill] sm:$0xff] %v3732_v7  ;;  %431 = vmatpush.msrb.mxu3 %v3732_v7  ;;  %519 = vmatpush.msra.mxu1 %v3268_v2  ;;  %v216_v7 = vld [vmem:[%s6396_s0 + $0x8] sm:$0xff]  ;;  %v3770_v2 = vld [vmem:[#allocation6 + $0xb0] sm:$0xff] }
  0x5a   :  { %542 = vmatpush.msra.mxu2 %v3309_v9  ;;  %6781 = vst [vmem:[#allocation78_spill] sm:$0xff] %v3741_v31  ;;  %365 = vmatpush.msrb.mxu0 %v3736_v39  ;;  %v3752_v9 = vld [vmem:[#allocation4 + $0xc8] sm:$0xff] }
  0x5b   :  { %6782 = vst [vmem:[#allocation79_spill] sm:$0xff] %v3744_v38  ;;  %432 = vmatpush.msrb.mxu3 %v3738_v30  ;;  %520 = vmatpush.msra.mxu1 %v3280_v4  ;;  %v3768_v4 = vld [vmem:[#allocation4 + $0xb0] sm:$0xff] }
  0x5c   :  { %543 = vmatpush.msra.mxu2 %v3321_v11  ;;  %366 = vmatpush.msrb.mxu0 %v3752_v9  ;;  %6784 = vst [vmem:[#allocation81_spill] sm:$0xff] %v3770_v2 }
  0x5d   :  { %433 = vmatpush.msrb.mxu3 %v3754_v35  ;;  %521 = vmatpush.msra.mxu1 %v3292_v6 }
  0x5e   :  { %544 = vmatpush.msra.mxu2 %v3343_v15  ;;  %367 = vmatpush.msrb.mxu0 %v3768_v4 }
  0x5f   :  { %434 = vmatpush.msrb.mxu3 %v3770_v2  ;;  %522 = vmatpush.msra.mxu1 %v3304_v8 }
  0x60   :  { %545 = vmatpush.msra.mxu2 %v3361_v18 }
  0x61   :  { %523 = vmatpush.msra.mxu1 %v3316_v10 }
  0x62   :  { %546 = vmatpush.msra.mxu2 %v3379_v21  ;;  %v3818_v21 = vld [vmem:[#allocation6 + $0x20] sm:$0xff] }
  0x63   :  { %524 = vmatpush.msra.mxu1 %v3338_v14  ;;  %6791 = vst [vmem:[#allocation87_spill] sm:$0xff] %v3818_v21 }
  0x64   :  { %547 = vmatpush.msra.mxu2 %v3397_v24 }
  0x65   :  { %525 = vmatpush.msra.mxu1 %v3356_v17 }
  0x66   :  { %548 = vmatpush.msra.mxu2 %v3419_v29  ;;  %v3810_v29 = vld [vmem:[#allocation6 + $0x38] sm:$0xff] }
  0x67   :  { %6790 = vst [vmem:[#allocation86_spill] sm:$0xff] %v3810_v29  ;;  %526 = vmatpush.msra.mxu1 %v3374_v20 }
  0x68   :  { %549 = vmatpush.msra.mxu2 %v3440_v33  ;;  %v3816_v33 = vld [vmem:[#allocation4 + $0x20] sm:$0xff] }
  0x69   :  { %527 = vmatpush.msra.mxu1 %v3392_v23 }
  0x6a   :  { %550 = vmatpush.msra.mxu2 %v3461_v37 }
  0x6b   :  { %528 = vmatpush.msra.mxu1 %v3414_v28 }
  0x6c   :  { %551 = vmatpush.msra.mxu2 %v3482_v41 }
  0x6d   :  { %529 = vmatpush.msra.mxu1 %v3435_v32 }
  0x6e   :  { %552 = vmatpush.msra.mxu2 %v3503_v45 }
  0x6f   :  { %530 = vmatpush.msra.mxu1 %v3456_v36 }
  0x70   :  { %553 = vmatpush.msra.mxu2 %v3524_v49  ;;  %v3850_v49 = vperm.slane %v3724_v5, 2 }
  0x71   :  { %531 = vmatpush.msra.mxu1 %v3477_v40 }
  0x73   :  { %532 = vmatpush.msra.mxu1 %v3498_v44 }
  0x75   :  { %533 = vmatpush.msra.mxu1 %v3519_v48 }
  0xa8   :  { %v242_v26 = vpop.f32.mrf.mxu0  ;;  %v262_v11 = vpop.f32.mrf.mxu1 }
  0xa9   :  { %v243_v30 = vadd.f32 %v242_v26, %v3741_v31  ;;  %v263_v39 = vadd.f32 %v262_v11, %v3744_v38  ;;  %v3776_v26 = vld [vmem:[#allocation4 + $0x98] sm:$0xff] }
  0xaa   :  { %v3778_v11 = vld [vmem:[#allocation6 + $0x98] sm:$0xff]  ;;  %368 = vmatpush.msrb.mxu0 %v3776_v26 }
  0xab   :  { %v285_v43 = vadd.f32 %v243_v30, %v215_v34  ;;  %v305_v15 = vadd.f32 %v263_v39, %v216_v7  ;;  %6785 = vst [vmem:[#allocation82_spill] sm:$0xff] %v3778_v11  ;;  %435 = vmatpush.msrb.mxu3 %v3778_v11  ;;  %v3784_v30 = vld [vmem:[#allocation4 + $0x80] sm:$0xff]  ;;  %v3792_v39 = vld [vmem:[#allocation4 + $0x68] sm:$0xff]  ;;  %v6789_v7 = vmov 0.0  }
  0xac   :  { %v3786_v34 = vld [vmem:[#allocation6 + $0x80] sm:$0xff]  ;;  %369 = vmatpush.msrb.mxu0 %v3784_v30  ;;  %422 = vmatmul.f32.vlgmr.msrb.gmra.mxu2 %v6789_v7 }
  0xad   :  { %v2489_v31 = vmul.f32 -1.442695, %v285_v43  ;;  %v2490_v38 = vmul.f32 -1.442695, %v305_v15  ;;  %6786 = vst [vmem:[#allocation83_spill] sm:$0xff] %v3786_v34  ;;  %436 = vmatpush.msrb.mxu3 %v3786_v34  ;;  %v3794_v15 = vld [vmem:[#allocation6 + $0x68] sm:$0xff]  ;;  %665 = vmatpush.msrb.mxu2 %v3536_v51 }
  0xae   :  { %6787 = vst [vmem:[#allocation84_spill] sm:$0xff] %v3794_v15  ;;  %370 = vmatpush.msrb.mxu0 %v3792_v39  ;;  %v3800_v43 = vld [vmem:[#allocation4 + $0x50] sm:$0xff]  ;;  %v3824_v34 = vld [vmem:[#allocation6 + $0x8] sm:$0xff]  ;;  %v3847_v51 = vld [vmem:[#allocation6 + $0x160] sm:$0xff] }
  0xaf   :  { %2555 = vpow2.f32 %v2489_v31  ;;  %437 = vmatpush.msrb.mxu3 %v3794_v15  ;;  %v3802_v31 = vld [vmem:[#allocation6 + $0x50] sm:$0xff]  ;;  %6792 = vst [vmem:[#allocation88_spill] sm:$0xff] %v3824_v34  ;;  %666 = vmatpush.msrb.mxu2 %v3548_v54 }
  0xb0   :  { %2557 = vpow2.f32 %v2490_v38  ;;  %6788 = vst [vmem:[#allocation85_spill] sm:$0xff] %v3802_v31  ;;  %371 = vmatpush.msrb.mxu0 %v3800_v43  ;;  %v3808_v38 = vld [vmem:[#allocation4 + $0x38] sm:$0xff] }
  0xb1   :  { %438 = vmatpush.msrb.mxu3 %v3802_v31  ;;  %v3822_v31 = vld [vmem:[#allocation4 + $0x8] sm:$0xff]  ;;  %667 = vmatpush.msrb.mxu2 %v3557_v56 }
  0xb2   :  { %372 = vmatpush.msrb.mxu0 %v3808_v38  ;;  %v3855_v56 = vld [vmem:[#allocation6 + $0x148] sm:$0xff] }
  0xb3   :  { %439 = vmatpush.msrb.mxu3 %v3810_v29  ;;  %668 = vmatpush.msrb.mxu2 %v3599_v60 }
  0xb4   :  { %373 = vmatpush.msrb.mxu0 %v3816_v33  ;;  %v282_v29 = vpop.f32.mrf.mxu2 }
  0xb5   :  { %v2556_v24 = vpop.eup %2555  ;;  %440 = vmatpush.msrb.mxu3 %v3818_v21  ;;  %669 = vmatpush.msrb.mxu2 %v3608_v63  ;;  %v283_v44 = vadd.f32 %v282_v29, %v3850_v49 }
  0xb6   :  { %v2558_v18 = vpop.eup %2557  ;;  %v289_v15 = vadd.f32 1.0, %v2556_v24  ;;  %374 = vmatpush.msrb.mxu0 %v3822_v31  ;;  %v3841_v24 = vld [vmem:[#allocation6 + $0x178] sm:$0xff] }
  0xb7   :  { %v3826_v37 = vadd.f32 1.0, %v2558_v18  ;;  %441 = vmatpush.msrb.mxu3 %v3824_v34  ;;  %670 = vmatpush.msrb.mxu2 %v3617_v61  ;;  %v3872_v61 = vld [vmem:[#allocation6 + $0x100] sm:$0xff] }
  0xb8   :  { %2559 = vrcp.f32 %v289_v15  ;;  %446 = vmatpush.msra.mxu0 %v3841_v24  ;;  %v301_v11 = vand.u32 2147483648, %v289_v15  ;;  %v299_v35 = vand.u32 2147483647, %v289_v15  ;;  %vm295_vm1 = vweird.f32 %v289_v15 }
  0xb9   :  { %2561 = vrcp.f32 %v3826_v37  ;;  %671 = vmatpush.msrb.mxu2 %v3626_v53  ;;  %vm315_vm4 = vweird.f32 %v3826_v37  ;;  %v321_v63 = vand.u32 2147483648, %v3826_v37  ;;  %v3878_v53 = vld [vmem:[#allocation6 + $0xe8] sm:$0xff] }
  0xba   :  { %447 = vmatpush.msra.mxu0 %v3847_v51  ;;  %vm300_vm3 = vcmp.eq.f32.partialorder %v299_v35, 8.507059e+37  ;;  %v319_v35 = vand.u32 2147483647, %v3826_v37 }
  0xbb   :  { %672 = vmatpush.msrb.mxu2 %v3635_v50  ;;  %v3890_v50 = vld [vmem:[#allocation6 + $0xa0] sm:$0xff] }
  0xbc   :  { %448 = vmatpush.msra.mxu0 %v3855_v56  ;;  %vm320_vm7 = vcmp.eq.f32.partialorder %v319_v35, 8.507059e+37  ;;  %v6810_v35 = vld [vmem:[#allocation29_spill] sm:$0xff] }
  0xbd   :  { %673 = vmatpush.msrb.mxu2 %v3644_v59  ;;  %v3894_v59 = vld [vmem:[#allocation6 + $0x88] sm:$0xff] }
  0xbe   :  { %v2560_v18 = vpop.eup %2559 }
  0xbf   :  { %v2562_v45 = vpop.eup %2561  ;;  %v291_v41 = vmul.f32 %v2560_v18, %v289_v15  ;;  %vm296_vm0 = vweird.f32 %v2560_v18  ;;  %674 = vmatpush.msrb.mxu2 %v3653_v46 }
  0xc0   :  { %v311_v34 = vmul.f32 %v2562_v45, %v3826_v37  ;;  %vm297_vm2 = vmor %vm295_vm1, %vm296_vm0  ;;  %vm316_vm5 = vweird.f32 %v2562_v45 }
  0xc1   :  { %v292_v54 = vsub.f32 1.0, %v291_v41  ;;  %v3859_v41 = vld [vmem:[#allocation6 + $0x130] sm:$0xff]  ;;  %vm317_vm6 = vmor %vm315_vm4, %vm316_vm5  ;;  %675 = vmatpush.msrb.mxu2 %v3662_v47 }
  0xc2   :  { %v312_v21 = vsub.f32 1.0, %v311_v34  ;;  %449 = vmatpush.msra.mxu0 %v3859_v41  ;;  %v302_v34 = vor.u32 1.1754944e-38, %v301_v11 }
  0xc3   :  { %v293_v2 = vmul.f32 %v2560_v18, %v292_v54  ;;  %v3864_v54 = vld [vmem:[#allocation6 + $0x118] sm:$0xff]  ;;  %676 = vmatpush.msrb.mxu2 %v3671_v42  ;;  %v3910_v42 = vld [vmem:[#allocation6 + $0x40] sm:$0xff] }
  0xc4   :  { %v313_v5 = vmul.f32 %v2562_v45, %v312_v21  ;;  %450 = vmatpush.msra.mxu0 %v3864_v54  ;;  %6793 = vst [vmem:[#allocation89_spill] sm:$0xff] %v3910_v42 }
  0xc5   :  { %v294_v60 = vadd.f32 %v2560_v18, %v293_v2  ;;  %v217_v2 = vld [vmem:[%s6396_s0 + $0x10] sm:$0xff]  ;;  %677 = vmatpush.msrb.mxu2 %v3683_v57  ;;  %v3914_v57 = vld [vmem:[#allocation6 + $0x28] sm:$0xff] }
  0xc6   :  { %v314_v29 = vadd.f32 %v2562_v45, %v313_v5  ;;  %451 = vmatpush.msra.mxu0 %v3872_v61  ;;  %v322_v5 = vor.u32 1.1754944e-38, %v321_v63  ;;  %6794 = vst [vmem:[#allocation90_spill] sm:$0xff] %v3914_v57  ;;  %v6808_v63 = vld [vmem:[#allocation26_spill] sm:$0xff] }
  0xc7   :  { %v298_v48 = vsel %vm297_vm2, %v2560_v18, %v294_v60  ;;  %v3882_v18 = vld [vmem:[#allocation6 + $0xd0] sm:$0xff]  ;;  %678 = vmatpush.msrb.mxu2 %v3693_v58 }
  0xc8   :  { %v303_v21 = vsel %vm300_vm3, %v302_v34, %v298_v48  ;;  %452 = vmatpush.msra.mxu0 %v3878_v53  ;;  %v318_v48 = vsel %vm317_vm6, %v2562_v45, %v314_v29  ;;  %v3918_v58 = vld [vmem:[#allocation6 + $0x10] sm:$0xff] }
  0xc9   :  { %v325_v11 = vmul.f32 %v303_v21, %v283_v44  ;;  %v3886_v44 = vld [vmem:[#allocation6 + $0xb8] sm:$0xff]  ;;  %v323_v37 = vsel %vm320_vm7, %v322_v5, %v318_v48  ;;  %679 = vmatpush.msrb.mxu2 %v3703_v1  ;;  %6795 = vst [vmem:[#allocation91_spill] sm:$0xff] %v3918_v58  ;;  %v6802_v1 = vld [vmem:[#allocation20_spill] sm:$0xff]  ;;  %v6815_v5 = vld [vmem:[#allocation51_spill] sm:$0xff] }
  0xca   :  { %453 = vmatpush.msra.mxu0 %v3882_v18  ;;  %v328_v45 = vsub.f32 1.0, %v323_v37  ;;  %v330_v34 = vmul.f32 0.0, %v323_v37  ;;  %v3904_v21 = vld [vmem:[#allocation6 + $0x58] sm:$0xff]  ;;  %v6807_v29 = vld [vmem:[#allocation76_spill] sm:$0xff] }
  0xcb   :  { %v326_v15 = vadd.f32 %v325_v11, %v217_v2  ;;  %v3898_v2 = vld [vmem:[#allocation6 + $0x70] sm:$0xff]  ;;  %680 = vmatpush.msrb.mxu2 %v3713_v3  ;;  %v6809_v11 = vld [vmem:[#allocation30_spill] sm:$0xff]  ;;  %v6813_v48 = vld [vmem:[#allocation49_spill] sm:$0xff] }
  0xcc   :  { %454 = vmatpush.msra.mxu0 %v3886_v44  ;;  %v6803_v3 = vld [vmem:[#allocation24_spill] sm:$0xff]  ;;  %v6817_v37 = vld [vmem:[#allocation53_spill] sm:$0xff] }
  0xcd   :  { %2563 = vtanh.f32 %v326_v15  ;;  %v6811_v15 = vld [vmem:[#allocation34_spill] sm:$0xff] }
  0xce   :  { %455 = vmatpush.msra.mxu0 %v3890_v50 }
  0xd0   :  { %456 = vmatpush.msra.mxu0 %v3894_v59 }
  0xd2   :  { %457 = vmatpush.msra.mxu0 %v3898_v2 }
  0xd3   :  { %v2564_v60 = vpop.eup %2563 }
  0xd4   :  { %v329_v46 = vmul.f32 %v2564_v60, %v328_v45  ;;  %458 = vmatpush.msra.mxu0 %v3904_v21  ;;  %v6819_v45 = vld [vmem:[#allocation55_spill] sm:$0xff]  ;;  %v6821_v60 = vld [vmem:[#allocation57_spill] sm:$0xff] }
  0xd6   :  { %v3902_v47 = vadd.f32 %v330_v34, %v329_v46  ;;  %459 = vmatpush.msra.mxu0 %v3910_v42  ;;  %v6823_v46 = vld [vmem:[#allocation59_spill] sm:$0xff]  ;;  %v6825_v34 = vld [vmem:[#allocation61_spill] sm:$0xff] }
  0xd8   :  { %355 = vmatmul.f32.vlgmr.msra.gmra.mxu3 %v3902_v47  ;;  %375 = vmatmul.f32.vlgmr.msrb.gmra.mxu0 %v3902_v47 }
  0xd9   :  { %395 = vmatmul.f32.vlgmr.msrb.gmra.mxu1 %v3902_v47  ;;  %554 = vmatmul.f32.vlgmr.msra.gmra.mxu2 %v3902_v47 }
  0xda   :  { %558 = vmatpush.msra.mxu3 %v3326_v12  ;;  %645 = vmatpush.msrb.mxu1 %v3677_v52  ;;  %v6797_v12 = vld [vmem:[#allocation10_spill] sm:$0xff] }
  0xdb   :  { %460 = vmatpush.msra.mxu0 %v3914_v57  ;;  %798 = vmatpush.msra.mxu2 %v3258_v0  ;;  %v6796_v0 = vld [vmem:[#allocation70_spill] sm:$0xff] }
  0xdc   :  { %559 = vmatpush.msra.mxu3 %v3333_v13  ;;  %646 = vmatpush.msrb.mxu1 %v3687_v55  ;;  %v6798_v13 = vld [vmem:[#allocation18_spill] sm:$0xff] }
  0xdd   :  { %461 = vmatpush.msra.mxu0 %v3918_v58  ;;  %799 = vmatpush.msra.mxu2 %v6797_v12  ;;  %v6827_v12 = vld [vmem:[#allocation63_spill] sm:$0xff] }
  0xde   :  { %560 = vmatpush.msra.mxu3 %v3351_v16  ;;  %647 = vmatpush.msrb.mxu1 %v3697_v62  ;;  %v6799_v16 = vld [vmem:[#allocation21_spill] sm:$0xff] }
  0xdf   :  { %625 = vmatpush.msrb.mxu0 %v3400_v25  ;;  %v6800_v25 = vld [vmem:[#allocation72_spill] sm:$0xff] }
  0xe0   :  { %561 = vmatpush.msra.mxu3 %v3369_v19  ;;  %462 = vmatmul.f32.vlgmr.msra.gmra.mxu0 %v6789_v7  ;;  %v6801_v19 = vld [vmem:[#allocation11_spill] sm:$0xff] }
  0xe1   :  { %442 = vmatmul.f32.vlgmr.msrb.gmra.mxu3 %v6789_v7  ;;  %534 = vmatmul.f32.vlgmr.msra.gmra.mxu1 %v3902_v47  ;;  %v6804_v7 = vld [vmem:[#allocation74_spill] sm:$0xff] }
  0xe2   :  { %562 = vmatpush.msra.mxu3 %v3387_v22  ;;  %626 = vmatpush.msrb.mxu0 %v3409_v27  ;;  %v6805_v22 = vld [vmem:[#allocation23_spill] sm:$0xff] }
  0xe3   :  { %648 = vmatpush.msrb.mxu1 %v6796_v0  ;;  %800 = vmatpush.msra.mxu2 %v6801_v19  ;;  %v6806_v27 = vld [vmem:[#allocation27_spill] sm:$0xff]  ;;  %v6831_v19 = vld [vmem:[#allocation45_spill] sm:$0xff] }
  0xe4   :  { %563 = vmatpush.msra.mxu3 %v6798_v13  ;;  %627 = vmatpush.msrb.mxu0 %v6799_v16  ;;  %v6829_v13 = vld [vmem:[#allocation65_spill] sm:$0xff]  ;;  %v6830_v16 = vld [vmem:[#allocation67_spill] sm:$0xff] }
  0xe5   :  { %649 = vmatpush.msrb.mxu1 %v6800_v25  ;;  %801 = vmatpush.msra.mxu2 %v3292_v6  ;;  %v6812_v6 = vld [vmem:[#allocation33_spill] sm:$0xff] }
  0xe6   :  { %564 = vmatpush.msra.mxu3 %v6802_v1  ;;  %628 = vmatpush.msrb.mxu0 %v6803_v3  ;;  %v6832_v1 = vld [vmem:[#allocation31_spill] sm:$0xff]  ;;  %v6834_v3 = vld [vmem:[#allocation46_spill] sm:$0xff] }
  0xe7   :  { %650 = vmatpush.msrb.mxu1 %v6804_v7  ;;  %802 = vmatpush.msra.mxu2 %v3304_v8  ;;  %v6814_v8 = vld [vmem:[#allocation37_spill] sm:$0xff] }
  0xe8   :  { %565 = vmatpush.msra.mxu3 %v6805_v22  ;;  %629 = vmatpush.msrb.mxu0 %v6806_v27  ;;  %v6835_v22 = vld [vmem:[#allocation35_spill] sm:$0xff] }
  0xe9   :  { %651 = vmatpush.msrb.mxu1 %v6807_v29  ;;  %803 = vmatpush.msra.mxu2 %v3316_v10  ;;  %v6816_v10 = vld [vmem:[#allocation38_spill] sm:$0xff]  ;;  %v6837_v27 = vld [vmem:[#allocation47_spill] sm:$0xff] }
  0xea   :  { %566 = vmatpush.msra.mxu3 %v6808_v63  ;;  %630 = vmatpush.msrb.mxu0 %v6809_v11  ;;  %v6838_v63 = vld [vmem:[#allocation71_spill] sm:$0xff]  ;;  %v6839_v11 = vld [vmem:[#allocation48_spill] sm:$0xff] }
  0xeb   :  { %652 = vmatpush.msrb.mxu1 %v3752_v9  ;;  %804 = vmatpush.msra.mxu2 %v3338_v14  ;;  %v6818_v14 = vld [vmem:[#allocation39_spill] sm:$0xff] }
  0xec   :  { %567 = vmatpush.msra.mxu3 %v6810_v35  ;;  %631 = vmatpush.msrb.mxu0 %v6811_v15  ;;  %v6840_v35 = vld [vmem:[#allocation73_spill] sm:$0xff]  ;;  %v6841_v15 = vld [vmem:[#allocation50_spill] sm:$0xff] }
  0xed   :  { %653 = vmatpush.msrb.mxu1 %v3768_v4  ;;  %805 = vmatpush.msra.mxu2 %v3356_v17  ;;  %v6820_v17 = vld [vmem:[#allocation40_spill] sm:$0xff] }
  0xee   :  { %568 = vmatpush.msra.mxu3 %v6812_v6  ;;  %632 = vmatpush.msrb.mxu0 %v6813_v48  ;;  %v6842_v6 = vld [vmem:[#allocation75_spill] sm:$0xff]  ;;  %v6843_v48 = vld [vmem:[#allocation52_spill] sm:$0xff] }
  0xef   :  { %654 = vmatpush.msrb.mxu1 %v3776_v26  ;;  %806 = vmatpush.msra.mxu2 %v3374_v20  ;;  %v6822_v20 = vld [vmem:[#allocation41_spill] sm:$0xff] }
  0xf0   :  { %569 = vmatpush.msra.mxu3 %v6814_v8  ;;  %633 = vmatpush.msrb.mxu0 %v6815_v5  ;;  %v6844_v8 = vld [vmem:[#allocation77_spill] sm:$0xff]  ;;  %v6845_v5 = vld [vmem:[#allocation54_spill] sm:$0xff] }
  0xf1   :  { %655 = vmatpush.msrb.mxu1 %v3784_v30  ;;  %807 = vmatpush.msra.mxu2 %v3392_v23  ;;  %v6824_v23 = vld [vmem:[#allocation42_spill] sm:$0xff] }
  0xf2   :  { %570 = vmatpush.msra.mxu3 %v6816_v10  ;;  %634 = vmatpush.msrb.mxu0 %v6817_v37  ;;  %v6846_v10 = vld [vmem:[#allocation80_spill] sm:$0xff] }
  0xf3   :  { %656 = vmatpush.msrb.mxu1 %v3792_v39  ;;  %808 = vmatpush.msra.mxu2 %v3414_v28  ;;  %v6826_v28 = vld [vmem:[#allocation43_spill] sm:$0xff]  ;;  %v6847_v37 = vld [vmem:[#allocation56_spill] sm:$0xff] }
  0xf4   :  { %571 = vmatpush.msra.mxu3 %v6818_v14  ;;  %635 = vmatpush.msrb.mxu0 %v6819_v45  ;;  %v6848_v14 = vld [vmem:[#allocation81_spill] sm:$0xff]  ;;  %v6849_v45 = vld [vmem:[#allocation58_spill] sm:$0xff] }
  0xf5   :  { %657 = vmatpush.msrb.mxu1 %v3800_v43  ;;  %809 = vmatpush.msra.mxu2 %v3435_v32  ;;  %v6828_v32 = vld [vmem:[#allocation44_spill] sm:$0xff] }
  0xf6   :  { %572 = vmatpush.msra.mxu3 %v6820_v17  ;;  %636 = vmatpush.msrb.mxu0 %v6821_v60  ;;  %v6850_v17 = vld [vmem:[#allocation82_spill] sm:$0xff]  ;;  %v6851_v60 = vld [vmem:[#allocation60_spill] sm:$0xff] }
  0xf7   :  { %658 = vmatpush.msrb.mxu1 %v3808_v38  ;;  %810 = vmatpush.msra.mxu2 %v3456_v36  ;;  %v6833_v36 = vld [vmem:[#allocation68_spill] sm:$0xff] }
  0xf8   :  { %573 = vmatpush.msra.mxu3 %v6822_v20  ;;  %637 = vmatpush.msrb.mxu0 %v6823_v46  ;;  %v6852_v20 = vld [vmem:[#allocation83_spill] sm:$0xff]  ;;  %v6853_v46 = vld [vmem:[#allocation62_spill] sm:$0xff] }
  0xf9   :  { %574 = vmatmul.f32.vlgmr.msra.gmra.mxu3 %v3902_v47  ;;  %659 = vmatpush.msrb.mxu1 %v3816_v33 }
  0xfa   :  { %685 = vmatpush.msrb.mxu3 %v6824_v23  ;;  %638 = vmatpush.msrb.mxu0 %v6825_v34  ;;  %v6854_v23 = vld [vmem:[#allocation84_spill] sm:$0xff] }
  0xfb   :  { %660 = vmatpush.msrb.mxu1 %v3822_v31  ;;  %811 = vmatpush.msra.mxu2 %v3477_v40  ;;  %v6836_v40 = vld [vmem:[#allocation69_spill] sm:$0xff]  ;;  %v6855_v34 = vld [vmem:[#allocation64_spill] sm:$0xff] }
  0xfc   :  { %686 = vmatpush.msrb.mxu3 %v6826_v28  ;;  %639 = vmatpush.msrb.mxu0 %v6827_v12  ;;  %v6856_v28 = vld [vmem:[#allocation85_spill] sm:$0xff]  ;;  %v6857_v12 = vld [vmem:[#allocation66_spill] sm:$0xff] }
  0xfd   :  { %725 = vmatpush.msra.mxu1 %v3841_v24  ;;  %812 = vmatpush.msra.mxu2 %v6832_v1  ;;  %v4052_v1 = vld [vmem:[%s6397_s1 + $0x140] sm:$0xff] }
  0xfe   :  { %687 = vmatpush.msrb.mxu3 %v6828_v32  ;;  %640 = vmatpush.msrb.mxu0 %v6829_v13  ;;  %v4036_v32 = vld [vmem:[%s6397_s1 + $0x170] sm:$0xff]  ;;  %v6859_v13 = vld [vmem:[#allocation86_spill] sm:$0xff]  ;;  %6862 = vst [vmem:[#allocation18_spill] sm:$0xff] %v4052_v1 }
  0xff   :  { %726 = vmatpush.msra.mxu1 %v3847_v51  ;;  %813 = vmatpush.msra.mxu2 %v6835_v22  ;;  %6858 = vst [vmem:[#allocation70_spill] sm:$0xff] %v4036_v32  ;;  %v6865_v22 = vld [vmem:[#allocation12_spill] sm:$0xff] }
 0x100   :  { %705 = vmatpush.msra.mxu0 %v6830_v16  ;;  %688 = vmatpush.msrb.mxu3 %v6831_v19  ;;  %v4044_v16 = vld [vmem:[%s6397_s1 + $0x158] sm:$0xff]  ;;  %v6861_v19 = vld [vmem:[#allocation87_spill] sm:$0xff] }
 0x101   :  { %727 = vmatpush.msra.mxu1 %v3855_v56  ;;  %6860 = vst [vmem:[#allocation10_spill] sm:$0xff] %v4044_v16 }
 0x102   :  { %706 = vmatpush.msra.mxu0 %v6833_v36  ;;  %689 = vmatpush.msrb.mxu3 %v6834_v3  ;;  %v6863_v36 = vld [vmem:[#allocation88_spill] sm:$0xff]  ;;  %v4059_v3 = vld [vmem:[%s6397_s1 + $0x128] sm:$0xff] }
 0x103   :  { %728 = vmatpush.msra.mxu1 %v3859_v41  ;;  %6864 = vst [vmem:[#allocation21_spill] sm:$0xff] %v4059_v3 }
 0x104   :  { %707 = vmatpush.msra.mxu0 %v6836_v40  ;;  %690 = vmatpush.msrb.mxu3 %v6837_v27  ;;  %v6866_v40 = vld [vmem:[#allocation13_spill] sm:$0xff]  ;;  %v6867_v27 = vld [vmem:[#allocation14_spill] sm:$0xff] }
 0x105   :  { %729 = vmatpush.msra.mxu1 %v3864_v54 }
 0x106   :  { %708 = vmatpush.msra.mxu0 %v6838_v63  ;;  %691 = vmatpush.msrb.mxu3 %v6839_v11  ;;  %v6868_v63 = vld [vmem:[#allocation15_spill] sm:$0xff]  ;;  %v6869_v11 = vld [vmem:[#allocation16_spill] sm:$0xff] }
 0x107   :  { %730 = vmatpush.msra.mxu1 %v3872_v61 }
 0x108   :  { %709 = vmatpush.msra.mxu0 %v6840_v35  ;;  %692 = vmatpush.msrb.mxu3 %v6841_v15  ;;  %v6870_v35 = vld [vmem:[#allocation17_spill] sm:$0xff]  ;;  %v6871_v15 = vld [vmem:[#allocation19_spill] sm:$0xff] }
 0x109   :  { %731 = vmatpush.msra.mxu1 %v3878_v53 }
 0x10a   :  { %710 = vmatpush.msra.mxu0 %v6842_v6  ;;  %693 = vmatpush.msrb.mxu3 %v6843_v48  ;;  %v6872_v6 = vld [vmem:[#allocation22_spill] sm:$0xff]  ;;  %v6873_v48 = vld [vmem:[#allocation25_spill] sm:$0xff] }
 0x10b   :  { %732 = vmatpush.msra.mxu1 %v3882_v18 }
 0x10c   :  { %711 = vmatpush.msra.mxu0 %v6844_v8  ;;  %694 = vmatpush.msrb.mxu3 %v6845_v5  ;;  %v6874_v8 = vld [vmem:[#allocation28_spill] sm:$0xff] }
 0x10d   :  { %733 = vmatpush.msra.mxu1 %v3886_v44  ;;  %v6875_v5 = vld [vmem:[#allocation32_spill] sm:$0xff] }
 0x10e   :  { %712 = vmatpush.msra.mxu0 %v6846_v10  ;;  %695 = vmatpush.msrb.mxu3 %v6847_v37  ;;  %v6876_v10 = vld [vmem:[#allocation36_spill] sm:$0xff] }
 0x10f   :  { %734 = vmatpush.msra.mxu1 %v3890_v50 }
 0x110   :  { %713 = vmatpush.msra.mxu0 %v6848_v14  ;;  %696 = vmatpush.msrb.mxu3 %v6849_v45  ;;  %v212_v14 = vld [vmem:[%s6402_s6] sm:$0x7] }
 0x111   :  { %735 = vmatpush.msra.mxu1 %v3894_v59  ;;  %v4077_v45 = vperm.slane %v212_v14, 0 }
 0x112   :  { %714 = vmatpush.msra.mxu0 %v6850_v17  ;;  %697 = vmatpush.msrb.mxu3 %v6851_v60  ;;  %v163_v60 = vld [vmem:[%s6400_s4] sm:$0x7] }
 0x113   :  { %736 = vmatpush.msra.mxu1 %v3898_v2  ;;  %6877 = vst [vmem:[#allocation72_spill] sm:$0xff] %v4077_v45 }
 0x114   :  { %715 = vmatpush.msra.mxu0 %v6852_v20  ;;  %698 = vmatpush.msrb.mxu3 %v6853_v46  ;;  %v4084_v46 = vperm.slane %v163_v60, 0 }
 0x115   :  { %737 = vmatpush.msra.mxu1 %v3904_v21 }
 0x116   :  { %716 = vmatpush.msra.mxu0 %v6854_v23  ;;  %699 = vmatpush.msrb.mxu3 %v6855_v34  ;;  %6878 = vst [vmem:[#allocation11_spill] sm:$0xff] %v4084_v46 }
 0x117   :  { %738 = vmatpush.msra.mxu1 %v3910_v42 }
 0x118   :  { %717 = vmatpush.msra.mxu0 %v6856_v28  ;;  %700 = vmatpush.msrb.mxu3 %v6857_v12 }
 0x119   :  { %739 = vmatpush.msra.mxu1 %v3914_v57 }
 0x11a   :  { %818 = vmatpush.msra.mxu3 %v4036_v32  ;;  %718 = vmatpush.msra.mxu0 %v6859_v13 }
 0x11b   :  { %740 = vmatpush.msra.mxu1 %v3918_v58 }
 0x11c   :  { %819 = vmatpush.msra.mxu3 %v4044_v16  ;;  %719 = vmatpush.msra.mxu0 %v6861_v19 }
 0x11e   :  { %820 = vmatpush.msra.mxu3 %v4052_v1  ;;  %720 = vmatpush.msra.mxu0 %v6863_v36 }
 0x120   :  { %821 = vmatpush.msra.mxu3 %v4059_v3 }
 0x122   :  { %822 = vmatpush.msra.mxu3 %v6865_v22 }
 0x124   :  { %823 = vmatpush.msra.mxu3 %v6866_v40  ;;  %v2494_v40 = vld [vmem:[%s6396_s0 + $0x20] sm:$0xff] }
 0x126   :  { %824 = vmatpush.msra.mxu3 %v6867_v27 }
 0x128   :  { %825 = vmatpush.msra.mxu3 %v6868_v63  ;;  %v6879_v63 = vld [vmem:[#allocation79_spill] sm:$0xff] }
 0x12a   :  { %826 = vmatpush.msra.mxu3 %v6869_v11 }
 0x12c   :  { %827 = vmatpush.msra.mxu3 %v6870_v35 }
 0x12e   :  { %828 = vmatpush.msra.mxu3 %v6871_v15  ;;  %v2493_v15 = vld [vmem:[%s6396_s0 + $0x18] sm:$0xff] }
 0x12f   :  { %v423_v37 = vpop.f32.mrf.mxu2 }
 0x130   :  { %829 = vmatpush.msra.mxu3 %v6872_v6  ;;  %v424_v34 = vadd.f32 %v423_v37, %v4077_v45  ;;  %v4096_v37 = vperm.slane %v163_v60, 1 }
 0x132   :  { %830 = vmatpush.msra.mxu3 %v6873_v48  ;;  %6881 = vst [vmem:[#allocation20_spill] sm:$0xff] %v4096_v37 }
 0x134   :  { %831 = vmatpush.msra.mxu3 %v6874_v8  ;;  %v6880_v8 = vld [vmem:[#allocation78_spill] sm:$0xff] }
 0x136   :  { %832 = vmatpush.msra.mxu3 %v6875_v5 }
 0x138   :  { %833 = vmatpush.msra.mxu3 %v6876_v10 }
 0x155   :  { %v376_v3 = vpop.f32.mrf.mxu0 }
 0x156   :  { %v4079_v17 = vpop.f32.mrf.mxu1 }
 0x15b   :  { %v356_v12 = vpop.f32.mrf.mxu3 }
 0x15c   :  { %v357_v22 = vadd.f32 %v356_v12, %v4084_v46  ;;  %v555_v27 = vpop.f32.mrf.mxu2  ;;  %v4098_v46 = vperm.slane %v212_v14, 1 }
 0x15d   :  { %v556_v11 = vadd.f32 %v555_v27, %v6879_v63 }
 0x15e   :  { %v466_v35 = vadd.f32 %v424_v34, %v357_v22  ;;  %v535_v6 = vpop.f32.mrf.mxu1  ;;  %6882 = vst [vmem:[#allocation24_spill] sm:$0xff] %v4098_v46  ;;  %v377_v22 = vadd.f32 %v376_v3, %v4096_v37  ;;  %v4114_v37 = vperm.slane %v163_v60, 2 }
 0x15f   :  { %v598_v48 = vadd.f32 %v2494_v40, %v556_v11  ;;  %v536_v5 = vadd.f32 %v535_v6, %v6880_v8 }
 0x160   :  { %v2491_v10 = vmul.f32 -1.442695, %v466_v35  ;;  %6884 = vst [vmem:[#allocation23_spill] sm:$0xff] %v4114_v37 }
 0x161   :  { %v2497_v12 = vmul.f32 -1.442695, %v598_v48  ;;  %v578_v45 = vadd.f32 %v2493_v15, %v536_v5 }
 0x162   :  { %2565 = vpow2.f32 %v2491_v10 }
 0x163   :  { %2567 = vpow2.f32 %v2497_v12  ;;  %v2496_v27 = vmul.f32 -1.442695, %v578_v45 }
 0x164   :  { %v443_v34 = vpop.f32.mrf.mxu3 }
 0x165   :  { %2569 = vpow2.f32 %v2496_v27  ;;  %v444_v63 = vadd.f32 %v443_v34, %v4098_v46  ;;  %v4111_v34 = vperm.slane %v212_v14, 2 }
 0x167   :  { %v486_v40 = vadd.f32 %v444_v63, %v377_v22  ;;  %6883 = vst [vmem:[#allocation74_spill] sm:$0xff] %v4111_v34 }
 0x168   :  { %v2566_v11 = vpop.eup %2565 }
 0x169   :  { %v2568_v6 = vpop.eup %2567  ;;  %v470_v35 = vadd.f32 1.0, %v2566_v11  ;;  %v2492_v8 = vmul.f32 -1.442695, %v486_v40  ;;  %v463_v40 = vpop.f32.mrf.mxu0 }
 0x16a   :  { %v4102_v58 = vadd.f32 1.0, %v2568_v6  ;;  %v464_v57 = vadd.f32 %v463_v40, %v4111_v34 }
 0x16b   :  { %v2570_v15 = vpop.eup %2569  ;;  %2571 = vrcp.f32 %v470_v35  ;;  %v480_v11 = vand.u32 2147483647, %v470_v35  ;;  %v482_v6 = vand.u32 2147483648, %v470_v35  ;;  %vm476_vm9 = vweird.f32 %v470_v35 }
 0x16c   :  { %2573 = vrcp.f32 %v4102_v58  ;;  %v582_v48 = vadd.f32 1.0, %v2570_v15  ;;  %vm608_vm1 = vweird.f32 %v4102_v58 }
 0x16d   :  { %2575 = vpow2.f32 %v2492_v8  ;;  %v483_v14 = vor.u32 1.1754944e-38, %v482_v6  ;;  %vm481_vm12 = vcmp.eq.f32.partialorder %v480_v11, 8.507059e+37 }
 0x16e   :  { %2577 = vrcp.f32 %v582_v48  ;;  %v592_v42 = vand.u32 2147483647, %v582_v48  ;;  %vm588_vm13 = vweird.f32 %v582_v48 }
 0x170   :  { %vm593_vm15 = vcmp.eq.f32.partialorder %v592_v42, 8.507059e+37  ;;  %v612_v42 = vand.u32 2147483647, %v4102_v58 }
 0x171   :  { %v2572_v45 = vpop.eup %2571 }
 0x172   :  { %v4105_v5 = vpop.eup %2573  ;;  %v472_v3 = vmul.f32 %v2572_v45, %v470_v35  ;;  %vm477_vm8 = vweird.f32 %v2572_v45  ;;  %vm613_vm6 = vcmp.eq.f32.partialorder %v612_v42, 8.507059e+37  ;;  %v4185_v42 = vld [vmem:[#allocation4 + $0x138] sm:$0xff] }
 0x173   :  { %v2576_v10 = vpop.eup %2575  ;;  %v604_v63 = vmul.f32 %v4105_v5, %v4102_v58  ;;  %vm478_vm10 = vmor %vm476_vm9, %vm477_vm8  ;;  %vm609_vm0 = vweird.f32 %v4105_v5 }
 0x174   :  { %v2578_v12 = vpop.eup %2577  ;;  %v4109_v27 = vadd.f32 1.0, %v2576_v10  ;;  %v473_v22 = vsub.f32 1.0, %v472_v3  ;;  %v594_v10 = vand.u32 2147483648, %v582_v48  ;;  %vm4131_vm2 = vmor %vm608_vm1, %vm609_vm0 }
 0x175   :  { %v584_v15 = vmul.f32 %v2578_v12, %v582_v48  ;;  %v605_v8 = vsub.f32 1.0, %v604_v63  ;;  %vm589_vm11 = vweird.f32 %v2578_v12  ;;  %v2495_v48 = vld [vmem:[%s6396_s0 + $0x28] sm:$0xff] }
 0x176   :  { %2579 = vrcp.f32 %v4109_v27  ;;  %v474_v46 = vmul.f32 %v2572_v45, %v473_v22  ;;  %vm590_vm14 = vmor %vm588_vm13, %vm589_vm11  ;;  %v595_v35 = vor.u32 1.1754944e-38, %v594_v10  ;;  %vm496_vm4 = vweird.f32 %v4109_v27 }
 0x177   :  { %v585_v1 = vsub.f32 1.0, %v584_v15  ;;  %v606_v36 = vmul.f32 %v4105_v5, %v605_v8  ;;  %v397_v15 = vadd.f32 %v4079_v17, %v4114_v37  ;;  %v502_v8 = vand.u32 2147483648, %v4109_v27 }
 0x178   :  { %v475_v16 = vadd.f32 %v2572_v45, %v474_v46 }
 0x179   :  { %v586_v3 = vmul.f32 %v2578_v12, %v585_v1  ;;  %v607_v17 = vadd.f32 %v4105_v5, %v606_v36 }
 0x17a   :  { %v479_v63 = vsel %vm478_vm10, %v2572_v45, %v475_v16 }
 0x17b   :  { %v484_v32 = vsel %vm481_vm12, %v483_v14, %v479_v63  ;;  %v587_v22 = vadd.f32 %v2578_v12, %v586_v3  ;;  %v611_v14 = vsel %vm4131_vm2, %v4105_v5, %v607_v17 }
 0x17c   :  { %v2580_v60 = vpop.eup %2579  ;;  %v506_v40 = vmul.f32 %v484_v32, %v464_v57  ;;  %v575_v46 = vpop.f32.mrf.mxu3  ;;  %v614_v57 = vand.u32 2147483648, %v4102_v58  ;;  %v503_v58 = vor.u32 1.1754944e-38, %v502_v8  ;;  %v4182_v8 = vld [vmem:[#allocation4 + $0x160] sm:$0xff] }
 0x17d   :  { %v492_v6 = vmul.f32 %v2580_v60, %v4109_v27  ;;  %v576_v1 = vadd.f32 %v575_v46, %v3850_v49  ;;  %v591_v34 = vsel %vm590_vm14, %v2578_v12, %v587_v22  ;;  %vm497_vm3 = vweird.f32 %v2580_v60  ;;  %v4202_v12 = vld [vmem:[%s6397_s1 + $0x118] sm:$0xff] }
 0x17e   :  { %v507_v16 = vadd.f32 %v506_v40, %v397_v15  ;;  %v596_v45 = vsel %vm593_vm15, %v595_v35, %v591_v34  ;;  %v500_v34 = vand.u32 2147483647, %v4109_v27  ;;  %v615_v3 = vor.u32 1.1754944e-38, %v614_v57  ;;  %vm498_vm5 = vmor %vm496_vm4, %vm497_vm3  ;;  %v4166_v57 = vld [vmem:[%s6397_s1 + $0x160] sm:$0xff] }
 0x17f   :  { %v493_v32 = vsub.f32 1.0, %v492_v6  ;;  %v618_v11 = vmul.f32 %v596_v45, %v576_v1 }
 0x180   :  { %2581 = vtanh.f32 %v507_v16  ;;  %vm501_vm7 = vcmp.eq.f32.partialorder %v500_v34, 8.507059e+37  ;;  %v616_v15 = vsel %vm613_vm6, %v615_v3, %v611_v14  ;;  %v4214_v34 = vld [vmem:[%s6397_s1 + $0x100] sm:$0xff]  ;;  %v4221_v14 = vld [vmem:[#allocation4 + $0x130] sm:$0xff]  ;;  %v4227_v3 = vld [vmem:[%s6397_s1 + $0xe8] sm:$0xff] }
 0x181   :  { %v494_v10 = vmul.f32 %v2580_v60, %v493_v32  ;;  %v619_v36 = vadd.f32 %v2495_v48, %v618_v11  ;;  %v621_v6 = vsub.f32 1.0, %v616_v15  ;;  %v623_v5 = vmul.f32 %v616_v15, %v3902_v47  ;;  %v4156_v47 = vld [vmem:[%s6397_s1 + $0x178] sm:$0xff]  ;;  %v4172_v11 = vld [vmem:[#allocation4 + $0x150] sm:$0xff] }
 0x182   :  { %v4169_v32 = vld [vmem:[#allocation4 + $0x178] sm:$0xff] }
 0x183   :  { %v495_v63 = vadd.f32 %v2580_v60, %v494_v10  ;;  %2583 = vtanh.f32 %v619_v36  ;;  %v4208_v10 = vld [vmem:[#allocation4 + $0x148] sm:$0xff]  ;;  %v4253_v15 = vld [vmem:[%s6397_s1 + $0xb8] sm:$0xff] }
 0x184   :  { %v4218_v36 = vld [vmem:[#allocation4 + $0x108] sm:$0xff] }
 0x185   :  { %v499_v22 = vsel %vm498_vm5, %v2580_v60, %v495_v63  ;;  %v4159_v60 = vld [vmem:[#allocation4 + $0x168] sm:$0xff]  ;;  %v4231_v63 = vld [vmem:[#allocation4 + $0xf0] sm:$0xff] }
 0x186   :  { %v2582_v40 = vpop.eup %2581  ;;  %v504_v46 = vsel %vm501_vm7, %v503_v58, %v499_v22  ;;  %v4240_v58 = vld [vmem:[%s6397_s1 + $0xd0] sm:$0xff]  ;;  %v4244_v22 = vld [vmem:[#allocation4 + $0xd8] sm:$0xff] }
 0x187   :  { %v509_v35 = vsub.f32 1.0, %v504_v46  ;;  %v511_v48 = vmul.f32 0.0, %v504_v46  ;;  %v4266_v46 = vld [vmem:[%s6397_s1 + $0xa0] sm:$0xff] }
 0x189   :  { %v2584_v1 = vpop.eup %2583  ;;  %v510_v16 = vmul.f32 %v2582_v40, %v509_v35  ;;  %v4257_v40 = vld [vmem:[#allocation4 + $0xc0] sm:$0xff]  ;;  %v4270_v35 = vld [vmem:[#allocation4 + $0xa8] sm:$0xff] }
 0x18a   :  { %v622_v45 = vmul.f32 %v2584_v1, %v621_v6  ;;  %v4279_v6 = vld [vmem:[%s6397_s1 + $0x88] sm:$0xff]  ;;  %v4283_v1 = vld [vmem:[#allocation4 + $0x90] sm:$0xff] }
 0x18b   :  { %v4141_v17 = vadd.f32 %v511_v48, %v510_v16  ;;  %6887 = vst [vmem:[#allocation27_spill] sm:$0xff] %v4279_v6  ;;  %v4292_v16 = vld [vmem:[%s6397_s1 + $0x70] sm:$0xff]  ;;  %v4296_v48 = vld [vmem:[#allocation4 + $0x78] sm:$0xff] }
 0x18c   :  { %v4143_v27 = vadd.f32 %v623_v5, %v622_v45  ;;  %6888 = vst [vmem:[#allocation76_spill] sm:$0xff] %v4283_v1  ;;  %v4305_v45 = vld [vmem:[%s6397_s1 + $0x58] sm:$0xff]  ;;  %v4309_v5 = vld [vmem:[#allocation4 + $0x60] sm:$0xff] }
 0x18d   :  { %513 = vst [vmem:[%s6403_s7] sm:$0xff] %v4141_v17  ;;  %701 = vmatmul.f32.vlgmr.msrb.gmra.mxu3 %v4141_v17 }
 0x18e   :  { %641 = vmatmul.f32.vlgmr.msrb.gmra.mxu0 %v4143_v27  ;;  %661 = vmatmul.f32.vlgmr.msrb.gmra.mxu1 %v4143_v27  ;;  %6889 = vst [vmem:[#allocation26_spill] sm:$0xff] %v4292_v16 }
 0x18f   :  { %681 = vmatmul.f32.vlgmr.msrb.gmra.mxu2 %v4143_v27  ;;  %838 = vmatpush.msrb.mxu0 %v4156_v47  ;;  %6890 = vst [vmem:[#allocation30_spill] sm:$0xff] %v4296_v48 }
 0x190   :  { %905 = vmatpush.msrb.mxu1 %v4159_v60  ;;  %925 = vmatpush.msrb.mxu2 %v3677_v52  ;;  %v4179_v52 = vld [vmem:[%s6397_s1 + $0x148] sm:$0xff]  ;;  %6891 = vst [vmem:[#allocation29_spill] sm:$0xff] %v4305_v45 }
 0x191   :  { %839 = vmatpush.msrb.mxu0 %v4166_v57  ;;  %945 = vmatpush.msrb.mxu3 %v4169_v32  ;;  %6892 = vst [vmem:[#allocation34_spill] sm:$0xff] %v4309_v5 }
 0x192   :  { %906 = vmatpush.msrb.mxu1 %v4172_v11  ;;  %926 = vmatpush.msrb.mxu2 %v3687_v55  ;;  %v4193_v55 = vld [vmem:[%s6397_s1 + $0x130] sm:$0xff] }
 0x193   :  { %840 = vmatpush.msrb.mxu0 %v4179_v52  ;;  %946 = vmatpush.msrb.mxu3 %v4182_v8 }
 0x194   :  { %907 = vmatpush.msrb.mxu1 %v4185_v42  ;;  %927 = vmatpush.msrb.mxu2 %v3697_v62  ;;  %v4205_v62 = vld [vmem:[#allocation4 + $0x120] sm:$0xff] }
 0x195   :  { %834 = vmatmul.f32.vlgmr.msra.gmra.mxu3 %v4143_v27  ;;  %841 = vmatpush.msrb.mxu0 %v4193_v55 }
 0x196   :  { %721 = vmatmul.f32.vlgmr.msra.gmra.mxu0 %v4141_v17  ;;  %741 = vmatmul.f32.vlgmr.msra.gmra.mxu1 %v4141_v17 }
 0x197   :  { %814 = vmatmul.f32.vlgmr.msra.gmra.mxu2 %v4143_v27  ;;  %842 = vmatpush.msrb.mxu0 %v4202_v12 }
 0x198   :  { %908 = vmatpush.msrb.mxu1 %v4205_v62  ;;  %947 = vmatpush.msrb.mxu3 %v4208_v10 }
 0x199   :  { %843 = vmatpush.msrb.mxu0 %v4214_v34  ;;  %928 = vmatpush.msrb.mxu2 %v6796_v0  ;;  %v4234_v0 = vld [vmem:[#allocation4 + $0x118] sm:$0xff] }
 0x19a   :  { %909 = vmatpush.msrb.mxu1 %v4218_v36  ;;  %948 = vmatpush.msrb.mxu3 %v4221_v14 }
 0x19b   :  { %844 = vmatpush.msrb.mxu0 %v4227_v3  ;;  %929 = vmatpush.msrb.mxu2 %v6800_v25  ;;  %v4247_v25 = vld [vmem:[#allocation4 + $0x100] sm:$0xff] }
 0x19c   :  { %910 = vmatpush.msrb.mxu1 %v4231_v63  ;;  %949 = vmatpush.msrb.mxu3 %v4234_v0 }
 0x19d   :  { %845 = vmatpush.msrb.mxu0 %v4240_v58  ;;  %930 = vmatpush.msrb.mxu2 %v6804_v7  ;;  %v4260_v7 = vld [vmem:[#allocation4 + $0xe8] sm:$0xff] }
 0x19e   :  { %911 = vmatpush.msrb.mxu1 %v4244_v22  ;;  %950 = vmatpush.msrb.mxu3 %v4247_v25 }
 0x19f   :  { %846 = vmatpush.msrb.mxu0 %v4253_v15  ;;  %931 = vmatpush.msrb.mxu2 %v6807_v29  ;;  %v4273_v29 = vld [vmem:[#allocation4 + $0xd0] sm:$0xff] }
 0x1a0   :  { %912 = vmatpush.msrb.mxu1 %v4257_v40  ;;  %951 = vmatpush.msrb.mxu3 %v4260_v7 }
 0x1a1   :  { %847 = vmatpush.msrb.mxu0 %v4266_v46  ;;  %932 = vmatpush.msrb.mxu2 %v3752_v9  ;;  %v4286_v9 = vld [vmem:[#allocation4 + $0xb8] sm:$0xff] }
 0x1a2   :  { %913 = vmatpush.msrb.mxu1 %v4270_v35  ;;  %952 = vmatpush.msrb.mxu3 %v4273_v29 }
 0x1a3   :  { %848 = vmatpush.msrb.mxu0 %v4279_v6  ;;  %933 = vmatpush.msrb.mxu2 %v3768_v4  ;;  %v4299_v4 = vld [vmem:[#allocation4 + $0xa0] sm:$0xff] }
 0x1a4   :  { %914 = vmatpush.msrb.mxu1 %v4283_v1  ;;  %953 = vmatpush.msrb.mxu3 %v4286_v9 }
 0x1a5   :  { %849 = vmatpush.msrb.mxu0 %v4292_v16  ;;  %934 = vmatpush.msrb.mxu2 %v3776_v26  ;;  %v4312_v26 = vld [vmem:[#allocation4 + $0x88] sm:$0xff]  ;;  %v4358_v16 = vld [vmem:[#allocation4] sm:$0xff] }
 0x1a6   :  { %915 = vmatpush.msrb.mxu1 %v4296_v48  ;;  %954 = vmatpush.msrb.mxu3 %v4299_v4  ;;  %v4318_v48 = vld [vmem:[%s6397_s1 + $0x40] sm:$0xff]  ;;  %6900 = vst [vmem:[#allocation55_spill] sm:$0xff] %v4358_v16 }
 0x1a7   :  { %850 = vmatpush.msrb.mxu0 %v4305_v45  ;;  %935 = vmatpush.msrb.mxu2 %v3784_v30  ;;  %6893 = vst [vmem:[#allocation33_spill] sm:$0xff] %v4318_v48  ;;  %v4322_v45 = vld [vmem:[#allocation4 + $0x48] sm:$0xff]  ;;  %v4325_v30 = vld [vmem:[#allocation4 + $0x70] sm:$0xff] }
 0x1a8   :  { %916 = vmatpush.msrb.mxu1 %v4309_v5  ;;  %955 = vmatpush.msrb.mxu3 %v4312_v26  ;;  %6894 = vst [vmem:[#allocation49_spill] sm:$0xff] %v4322_v45  ;;  %v4331_v5 = vld [vmem:[%s6397_s1 + $0x28] sm:$0xff] }
 0x1a9   :  { %851 = vmatpush.msrb.mxu0 %v4318_v48  ;;  %936 = vmatpush.msrb.mxu2 %v3792_v39  ;;  %6895 = vst [vmem:[#allocation37_spill] sm:$0xff] %v4331_v5  ;;  %v4335_v48 = vld [vmem:[#allocation4 + $0x30] sm:$0xff]  ;;  %v4338_v39 = vld [vmem:[#allocation4 + $0x58] sm:$0xff] }
 0x1aa   :  { %917 = vmatpush.msrb.mxu1 %v4322_v45  ;;  %956 = vmatpush.msrb.mxu3 %v4325_v30  ;;  %6896 = vst [vmem:[#allocation51_spill] sm:$0xff] %v4335_v48  ;;  %v4344_v45 = vld [vmem:[%s6397_s1 + $0x10] sm:$0xff] }
 0x1ab   :  { %852 = vmatpush.msrb.mxu0 %v4331_v5  ;;  %937 = vmatpush.msrb.mxu2 %v3800_v43  ;;  %6897 = vst [vmem:[#allocation38_spill] sm:$0xff] %v4344_v45  ;;  %v4349_v43 = vld [vmem:[#allocation4 + $0x18] sm:$0xff]  ;;  %v4355_v5 = vld [vmem:[#allocation4 + $0x40] sm:$0xff] }
 0x1ac   :  { %918 = vmatpush.msrb.mxu1 %v4335_v48  ;;  %957 = vmatpush.msrb.mxu3 %v4338_v39  ;;  %6898 = vst [vmem:[#allocation53_spill] sm:$0xff] %v4349_v43  ;;  %v4352_v48 = vld [vmem:[#allocation6 + $0x168] sm:$0xff] }
 0x1ad   :  { %853 = vmatpush.msrb.mxu0 %v4344_v45  ;;  %938 = vmatpush.msrb.mxu2 %v3808_v38  ;;  %6899 = vst [vmem:[#allocation39_spill] sm:$0xff] %v4352_v48  ;;  %v4362_v38 = vld [vmem:[#allocation6 + $0x150] sm:$0xff] }
 0x1ae   :  { %854 = vmatmul.f32.vlgmr.msrb.gmra.mxu0 %v4143_v27  ;;  %919 = vmatpush.msrb.mxu1 %v4349_v43  ;;  %6901 = vst [vmem:[#allocation40_spill] sm:$0xff] %v4362_v38  ;;  %v4365_v45 = vld [vmem:[#allocation6 + $0x170] sm:$0xff]  ;;  %v4368_v43 = vld [vmem:[#allocation4 + $0x28] sm:$0xff] }
 0x1af   :  { %965 = vmatpush.msra.mxu0 %v4352_v48  ;;  %958 = vmatpush.msrb.mxu3 %v4355_v5  ;;  %6902 = vst [vmem:[#allocation57_spill] sm:$0xff] %v4365_v45  ;;  %v4372_v48 = vld [vmem:[#allocation6 + $0x138] sm:$0xff] }
 0x1b0   :  { %920 = vmatpush.msrb.mxu1 %v4358_v16  ;;  %939 = vmatpush.msrb.mxu2 %v3816_v33  ;;  %6903 = vst [vmem:[#allocation41_spill] sm:$0xff] %v4368_v43  ;;  %v4375_v16 = vld [vmem:[#allocation6 + $0x158] sm:$0xff]  ;;  %v4378_v33 = vld [vmem:[#allocation4 + $0x10] sm:$0xff] }
 0x1b1   :  { %966 = vmatpush.msra.mxu0 %v4362_v38  ;;  %959 = vmatpush.msrb.mxu3 %v4368_v43  ;;  %6904 = vst [vmem:[#allocation59_spill] sm:$0xff] %v4372_v48  ;;  %v4382_v38 = vld [vmem:[#allocation6 + $0x120] sm:$0xff] }
 0x1b2   :  { %985 = vmatpush.msra.mxu1 %v4365_v45  ;;  %940 = vmatpush.msrb.mxu2 %v3822_v31  ;;  %6905 = vst [vmem:[#allocation42_spill] sm:$0xff] %v4375_v16  ;;  %v4385_v45 = vld [vmem:[#allocation6 + $0x140] sm:$0xff]  ;;  %v4391_v31 = vld [vmem:[%s6397_s1 + $0x168] sm:$0xff] }
 0x1b3   :  { %967 = vmatpush.msra.mxu0 %v4372_v48  ;;  %6906 = vst [vmem:[#allocation61_spill] sm:$0xff] %v4378_v33  ;;  %960 = vmatpush.msrb.mxu3 %v4378_v33  ;;  %v4395_v48 = vld [vmem:[#allocation6 + $0x108] sm:$0xff] }
 0x1b4   :  { %986 = vmatpush.msra.mxu1 %v4375_v16  ;;  %1005 = vmatpush.msra.mxu2 %v3841_v24  ;;  %6907 = vst [vmem:[#allocation43_spill] sm:$0xff] %v4382_v38  ;;  %v4398_v24 = vld [vmem:[#allocation6 + $0x128] sm:$0xff] }
 0x1b5   :  { %968 = vmatpush.msra.mxu0 %v4382_v38  ;;  %6908 = vst [vmem:[#allocation63_spill] sm:$0xff] %v4385_v45  ;;  %1078 = vmatpush.msra.mxu3 %v4391_v31  ;;  %v4404_v38 = vld [vmem:[%s6397_s1 + $0x150] sm:$0xff] }
 0x1b6   :  { %987 = vmatpush.msra.mxu1 %v4385_v45  ;;  %6909 = vst [vmem:[#allocation44_spill] sm:$0xff] %v4391_v31  ;;  %1006 = vmatpush.msra.mxu2 %v3847_v51  ;;  %v4408_v45 = vld [vmem:[#allocation6 + $0xf0] sm:$0xff] }
 0x1b7   :  { %6910 = vst [vmem:[#allocation65_spill] sm:$0xff] %v4395_v48  ;;  %969 = vmatpush.msra.mxu0 %v4395_v48  ;;  %1079 = vmatpush.msra.mxu3 %v4404_v38  ;;  %v4411_v51 = vld [vmem:[#allocation6 + $0x110] sm:$0xff]  ;;  %v4417_v48 = vld [vmem:[%s6397_s1 + $0x138] sm:$0xff] }
 0x1b8   :  { %6911 = vst [vmem:[#allocation67_spill] sm:$0xff] %v4398_v24  ;;  %988 = vmatpush.msra.mxu1 %v4398_v24  ;;  %1007 = vmatpush.msra.mxu2 %v3855_v56  ;;  %v4421_v24 = vld [vmem:[#allocation6 + $0xd8] sm:$0xff] }
 0x1b9   :  { %6912 = vst [vmem:[#allocation45_spill] sm:$0xff] %v4404_v38  ;;  %970 = vmatpush.msra.mxu0 %v4408_v45  ;;  %1080 = vmatpush.msra.mxu3 %v4417_v48  ;;  %v4424_v56 = vld [vmem:[#allocation6 + $0xf8] sm:$0xff] }
 0x1ba   :  { %6913 = vst [vmem:[#allocation31_spill] sm:$0xff] %v4408_v45  ;;  %989 = vmatpush.msra.mxu1 %v4411_v51  ;;  %1008 = vmatpush.msra.mxu2 %v3859_v41  ;;  %v4430_v45 = vld [vmem:[%s6397_s1 + $0x120] sm:$0xff] }
 0x1bb   :  { %6914 = vst [vmem:[#allocation68_spill] sm:$0xff] %v4411_v51  ;;  %971 = vmatpush.msra.mxu0 %v4421_v24  ;;  %1081 = vmatpush.msra.mxu3 %v4430_v45  ;;  %v4434_v51 = vld [vmem:[#allocation6 + $0xc0] sm:$0xff] }
 0x1bc   :  { %6915 = vst [vmem:[#allocation46_spill] sm:$0xff] %v4417_v48  ;;  %990 = vmatpush.msra.mxu1 %v4424_v56  ;;  %1009 = vmatpush.msra.mxu2 %v3864_v54  ;;  %v4437_v41 = vld [vmem:[#allocation6 + $0xe0] sm:$0xff]  ;;  %v4450_v54 = vld [vmem:[#allocation6 + $0xc8] sm:$0xff] }
 0x1bd   :  { %6916 = vst [vmem:[#allocation35_spill] sm:$0xff] %v4421_v24  ;;  %972 = vmatpush.msra.mxu0 %v4434_v51  ;;  %v4443_v24 = vld [vmem:[%s6397_s1 + $0x108] sm:$0xff]  ;;  %v6970_v48 = vld [vmem:[#allocation74_spill] sm:$0xff] }
 0x1be   :  { %6917 = vst [vmem:[#allocation69_spill] sm:$0xff] %v4424_v56  ;;  %991 = vmatpush.msra.mxu1 %v4437_v41  ;;  %1082 = vmatpush.msra.mxu3 %v4443_v24  ;;  %v4447_v56 = vld [vmem:[#allocation6 + $0xa8] sm:$0xff] }
 0x1bf   :  { %6918 = vst [vmem:[#allocation47_spill] sm:$0xff] %v4430_v45  ;;  %1010 = vmatpush.msra.mxu2 %v3872_v61  ;;  %973 = vmatpush.msra.mxu0 %v4447_v56  ;;  %v4463_v61 = vld [vmem:[#allocation6 + $0xb0] sm:$0xff] }
 0x1c0   :  { %6919 = vst [vmem:[#allocation71_spill] sm:$0xff] %v4434_v51  ;;  %992 = vmatpush.msra.mxu1 %v4450_v54  ;;  %v4456_v51 = vld [vmem:[%s6397_s1 + $0xf0] sm:$0xff] }
 0x1c1   :  { %6920 = vst [vmem:[#allocation48_spill] sm:$0xff] %v4437_v41  ;;  %1083 = vmatpush.msra.mxu3 %v4456_v51  ;;  %1011 = vmatpush.msra.mxu2 %v3878_v53  ;;  %v4460_v41 = vld [vmem:[#allocation6 + $0x90] sm:$0xff]  ;;  %v4476_v53 = vld [vmem:[#allocation6 + $0x98] sm:$0xff] }
 0x1c2   :  { %6921 = vst [vmem:[#allocation73_spill] sm:$0xff] %v4443_v24  ;;  %974 = vmatpush.msra.mxu0 %v4460_v41  ;;  %993 = vmatpush.msra.mxu1 %v4463_v61 }
 0x1c3   :  { %6922 = vst [vmem:[#allocation50_spill] sm:$0xff] %v4447_v56  ;;  %v4469_v56 = vld [vmem:[%s6397_s1 + $0xd8] sm:$0xff]  ;;  %1012 = vmatpush.msra.mxu2 %v3882_v18  ;;  %v4493_v18 = vld [vmem:[%s6397_s1 + $0xa8] sm:$0xff] }
 0x1c4   :  { %6923 = vst [vmem:[#allocation75_spill] sm:$0xff] %v4450_v54  ;;  %1084 = vmatpush.msra.mxu3 %v4469_v56  ;;  %v4473_v54 = vld [vmem:[#allocation6 + $0x78] sm:$0xff]  ;;  %994 = vmatpush.msra.mxu1 %v4476_v53 }
 0x1c5   :  { %6924 = vst [vmem:[#allocation52_spill] sm:$0xff] %v4456_v51  ;;  %975 = vmatpush.msra.mxu0 %v4473_v54  ;;  %1013 = vmatpush.msra.mxu2 %v3886_v44  ;;  %v4504_v44 = vld [vmem:[%s6397_s1 + $0x90] sm:$0xff] }
 0x1c6   :  { %6925 = vst [vmem:[#allocation77_spill] sm:$0xff] %v4460_v41  ;;  %v4482_v41 = vld [vmem:[%s6397_s1 + $0xc0] sm:$0xff]  ;;  %995 = vmatpush.msra.mxu1 %v6852_v20  ;;  %v4508_v20 = vld [vmem:[#allocation6 + $0x30] sm:$0xff] }
 0x1c7   :  { %6926 = vst [vmem:[#allocation54_spill] sm:$0xff] %v4463_v61  ;;  %1085 = vmatpush.msra.mxu3 %v4482_v41  ;;  %v4486_v61 = vld [vmem:[#allocation6 + $0x60] sm:$0xff]  ;;  %1014 = vmatpush.msra.mxu2 %v3890_v50  ;;  %v4515_v50 = vld [vmem:[%s6397_s1 + $0x78] sm:$0xff] }
 0x1c8   :  { %6927 = vst [vmem:[#allocation80_spill] sm:$0xff] %v4469_v56  ;;  %976 = vmatpush.msra.mxu0 %v4486_v61  ;;  %996 = vmatpush.msra.mxu1 %v6854_v23  ;;  %v4519_v23 = vld [vmem:[#allocation6 + $0x18] sm:$0xff] }
 0x1c9   :  { %6928 = vst [vmem:[#allocation56_spill] sm:$0xff] %v4473_v54  ;;  %1086 = vmatpush.msra.mxu3 %v4493_v18  ;;  %v4497_v54 = vld [vmem:[#allocation6 + $0x48] sm:$0xff]  ;;  %1015 = vmatpush.msra.mxu2 %v3894_v59  ;;  %v4526_v59 = vld [vmem:[%s6397_s1 + $0x60] sm:$0xff] }
 0x1ca   :  { %6929 = vst [vmem:[#allocation81_spill] sm:$0xff] %v4476_v53  ;;  %977 = vmatpush.msra.mxu0 %v4497_v54  ;;  %997 = vmatpush.msra.mxu1 %v6856_v28  ;;  %v4530_v28 = vld [vmem:[#allocation6] sm:$0xff] }
 0x1cb   :  { %6930 = vst [vmem:[#allocation58_spill] sm:$0xff] %v4482_v41  ;;  %1087 = vmatpush.msra.mxu3 %v4504_v44  ;;  %1016 = vmatpush.msra.mxu2 %v3898_v2  ;;  %v6940_v2 = vld [vmem:[#allocation70_spill] sm:$0xff] }
 0x1cc   :  { %6931 = vst [vmem:[#allocation82_spill] sm:$0xff] %v4486_v61  ;;  %978 = vmatpush.msra.mxu0 %v4508_v20  ;;  %998 = vmatpush.msra.mxu1 %v6859_v13  ;;  %v4538_v13 = vld [vmem:[%s6397_s1 + $0x48] sm:$0xff] }
 0x1cd   :  { %6932 = vst [vmem:[#allocation60_spill] sm:$0xff] %v4493_v18  ;;  %1088 = vmatpush.msra.mxu3 %v4515_v50  ;;  %1017 = vmatpush.msra.mxu2 %v3904_v21  ;;  %v6944_v21 = vld [vmem:[#allocation10_spill] sm:$0xff] }
 0x1ce   :  { %6933 = vst [vmem:[#allocation83_spill] sm:$0xff] %v4497_v54  ;;  %979 = vmatpush.msra.mxu0 %v4519_v23  ;;  %999 = vmatpush.msra.mxu1 %v6861_v19  ;;  %v6946_v19 = vld [vmem:[#allocation90_spill] sm:$0xff]  ;;  %v4555_v54 = vld [vmem:[%s6397_s1 + $0x18] sm:$0xff] }
 0x1cf   :  { %6934 = vst [vmem:[#allocation62_spill] sm:$0xff] %v4504_v44  ;;  %1089 = vmatpush.msra.mxu3 %v4526_v59  ;;  %v6966_v44 = vld [vmem:[#allocation20_spill] sm:$0xff] }
 0x1d0   :  { %6935 = vst [vmem:[#allocation84_spill] sm:$0xff] %v4508_v20  ;;  %980 = vmatpush.msra.mxu0 %v4530_v28  ;;  %v6943_v20 = vld [vmem:[#allocation89_spill] sm:$0xff] }
 0x1d1   :  { %6936 = vst [vmem:[#allocation64_spill] sm:$0xff] %v4515_v50  ;;  %1090 = vmatpush.msra.mxu3 %v4538_v13  ;;  %1018 = vmatpush.msra.mxu2 %v6943_v20  ;;  %v6949_v20 = vld [vmem:[#allocation91_spill] sm:$0xff] }
 0x1d2   :  { %6937 = vst [vmem:[#allocation85_spill] sm:$0xff] %v4519_v23  ;;  %1098 = vmatpush.msrb.mxu0 %v6940_v2  ;;  %v6942_v23 = vld [vmem:[#allocation88_spill] sm:$0xff]  ;;  %v6947_v2 = vld [vmem:[#allocation18_spill] sm:$0xff] }
 0x1d3   :  { %6938 = vst [vmem:[#allocation66_spill] sm:$0xff] %v4526_v59  ;;  %1000 = vmatpush.msra.mxu1 %v6942_v23  ;;  %1019 = vmatpush.msra.mxu2 %v6946_v19  ;;  %v6950_v23 = vld [vmem:[#allocation21_spill] sm:$0xff]  ;;  %v4569_v19 = vld [vmem:[%s6397_s1 + $0x110] sm:$0xff] }
 0x1d4   :  { %6939 = vst [vmem:[#allocation86_spill] sm:$0xff] %v4530_v28  ;;  %1099 = vmatpush.msrb.mxu0 %v6944_v21  ;;  %v4547_v28 = vld [vmem:[%s6397_s1 + $0x30] sm:$0xff]  ;;  %v4563_v21 = vld [vmem:[%s6397_s1] sm:$0xff] }
 0x1d5   :  { %6941 = vst [vmem:[#allocation87_spill] sm:$0xff] %v4538_v13  ;;  %1091 = vmatpush.msra.mxu3 %v4547_v28  ;;  %1020 = vmatpush.msra.mxu2 %v6949_v20  ;;  %v4581_v20 = vld [vmem:[%s6397_s1 + $0xe0] sm:$0xff] }
 0x1d6   :  { %6945 = vst [vmem:[#allocation12_spill] sm:$0xff] %v4547_v28  ;;  %1100 = vmatpush.msrb.mxu0 %v6947_v2  ;;  %v4575_v2 = vld [vmem:[%s6397_s1 + $0xf8] sm:$0xff] }
 0x1d7   :  { %6948 = vst [vmem:[#allocation13_spill] sm:$0xff] %v4555_v54  ;;  %1092 = vmatpush.msra.mxu3 %v4555_v54  ;;  %v6964_v54 = vld [vmem:[#allocation11_spill] sm:$0xff] }
 0x1d8   :  { %1101 = vmatpush.msrb.mxu0 %v6950_v23  ;;  %6951 = vst [vmem:[#allocation14_spill] sm:$0xff] %v4563_v21  ;;  %v4587_v23 = vld [vmem:[%s6397_s1 + $0xc8] sm:$0xff] }
 0x1d9   :  { %1093 = vmatpush.msra.mxu3 %v4563_v21  ;;  %6952 = vst [vmem:[#allocation15_spill] sm:$0xff] %v4569_v19 }
 0x1da   :  { %1102 = vmatpush.msrb.mxu0 %v4569_v19  ;;  %6953 = vst [vmem:[#allocation16_spill] sm:$0xff] %v4575_v2  ;;  %v4593_v19 = vld [vmem:[%s6397_s1 + $0xb0] sm:$0xff] }
 0x1db   :  { %6954 = vst [vmem:[#allocation17_spill] sm:$0xff] %v4581_v20 }
 0x1dc   :  { %1103 = vmatpush.msrb.mxu0 %v4575_v2  ;;  %6955 = vst [vmem:[#allocation19_spill] sm:$0xff] %v4587_v23  ;;  %v4599_v2 = vld [vmem:[%s6397_s1 + $0x98] sm:$0xff] }
 0x1dd   :  { %6956 = vst [vmem:[#allocation22_spill] sm:$0xff] %v4593_v19 }
 0x1de   :  { %1104 = vmatpush.msrb.mxu0 %v4581_v20  ;;  %6957 = vst [vmem:[#allocation25_spill] sm:$0xff] %v4599_v2  ;;  %v4605_v20 = vld [vmem:[%s6397_s1 + $0x80] sm:$0xff] }
 0x1df   :  { %6958 = vst [vmem:[#allocation28_spill] sm:$0xff] %v4605_v20 }
 0x1e0   :  { %1105 = vmatpush.msrb.mxu0 %v4587_v23  ;;  %v4611_v23 = vld [vmem:[%s6397_s1 + $0x68] sm:$0xff] }
 0x1e1   :  { %6959 = vst [vmem:[#allocation32_spill] sm:$0xff] %v4611_v23 }
 0x1e2   :  { %1106 = vmatpush.msrb.mxu0 %v4593_v19  ;;  %v4617_v19 = vld [vmem:[%s6397_s1 + $0x50] sm:$0xff] }
 0x1e3   :  { %6960 = vst [vmem:[#allocation36_spill] sm:$0xff] %v4617_v19 }
 0x1e4   :  { %1107 = vmatpush.msrb.mxu0 %v4599_v2  ;;  %v4623_v2 = vld [vmem:[%s6397_s1 + $0x38] sm:$0xff] }
 0x1e5   :  { %6961 = vst [vmem:[#allocation70_spill] sm:$0xff] %v4623_v2 }
 0x1e6   :  { %1108 = vmatpush.msrb.mxu0 %v4605_v20  ;;  %v4629_v20 = vld [vmem:[%s6397_s1 + $0x20] sm:$0xff] }
 0x1e7   :  { %6962 = vst [vmem:[#allocation88_spill] sm:$0xff] %v4629_v20 }
 0x1e8   :  { %1109 = vmatpush.msrb.mxu0 %v4611_v23  ;;  %v4635_v23 = vld [vmem:[%s6397_s1 + $0x8] sm:$0xff] }
 0x1e9   :  { %6963 = vst [vmem:[#allocation89_spill] sm:$0xff] %v4635_v23 }
 0x1ea   :  { %1110 = vmatpush.msrb.mxu0 %v4617_v19 }
 0x1ec   :  { %1111 = vmatpush.msrb.mxu0 %v4623_v2  ;;  %v6965_v2 = vld [vmem:[#allocation72_spill] sm:$0xff] }
 0x1ee   :  { %1112 = vmatpush.msrb.mxu0 %v4629_v20  ;;  %v6967_v20 = vld [vmem:[#allocation24_spill] sm:$0xff] }
 0x1f0   :  { %1113 = vmatpush.msrb.mxu0 %v4635_v23  ;;  %v2502_v23 = vld [vmem:[%s6396_s0 + $0x38] sm:$0xff] }
 0x20b   :  { %v642_v19 = vpop.f32.mrf.mxu0  ;;  %v662_v61 = vpop.f32.mrf.mxu1 }
 0x20c   :  { %v643_v28 = vadd.f32 %v642_v19, %v6964_v54  ;;  %v663_v18 = vadd.f32 %v662_v61, %v6966_v44  ;;  %v6968_v19 = vld [vmem:[#allocation79_spill] sm:$0xff] }
 0x210   :  { %v702_v21 = vpop.f32.mrf.mxu3 }
 0x211   :  { %v703_v13 = vadd.f32 %v702_v21, %v6965_v2  ;;  %v6969_v21 = vld [vmem:[#allocation78_spill] sm:$0xff] }
 0x212   :  { %v682_v59 = vpop.f32.mrf.mxu2 }
 0x213   :  { %v745_v53 = vadd.f32 %v703_v13, %v643_v28  ;;  %v722_v50 = vpop.f32.mrf.mxu0  ;;  %v2501_v28 = vld [vmem:[%s6396_s0 + $0x30] sm:$0xff] }
 0x214   :  { %v723_v41 = vadd.f32 %v722_v50, %v6967_v20 }
 0x215   :  { %v2498_v56 = vmul.f32 -1.442695, %v745_v53 }
 0x216   :  { %v765_v51 = vadd.f32 %v723_v41, %v663_v18 }
 0x217   :  { %2585 = vpow2.f32 %v2498_v56 }
 0x218   :  { %v2499_v24 = vmul.f32 -1.442695, %v765_v51  ;;  %v835_v45 = vpop.f32.mrf.mxu3 }
 0x219   :  { %v836_v54 = vadd.f32 %v835_v45, %v6968_v19 }
 0x21a   :  { %2587 = vpow2.f32 %v2499_v24  ;;  %v815_v13 = vpop.f32.mrf.mxu2 }
 0x21b   :  { %v878_v61 = vadd.f32 %v2502_v23, %v836_v54  ;;  %v816_v50 = vadd.f32 %v815_v13, %v6969_v21 }
 0x21d   :  { %v2586_v53 = vpop.eup %2585  ;;  %v2505_v41 = vmul.f32 -1.442695, %v878_v61  ;;  %v858_v56 = vadd.f32 %v2501_v28, %v816_v50 }
 0x21e   :  { %v749_v51 = vadd.f32 1.0, %v2586_v53 }
 0x21f   :  { %2589 = vpow2.f32 %v2505_v41  ;;  %v2504_v18 = vmul.f32 -1.442695, %v858_v56  ;;  %v742_v41 = vpop.f32.mrf.mxu1 }
 0x220   :  { %v2588_v20 = vpop.eup %2587  ;;  %2591 = vrcp.f32 %v749_v51  ;;  %v761_v61 = vand.u32 2147483648, %v749_v51  ;;  %v759_v53 = vand.u32 2147483647, %v749_v51  ;;  %vm755_vm9 = vweird.f32 %v749_v51 }
 0x221   :  { %v769_v44 = vadd.f32 1.0, %v2588_v20  ;;  %2593 = vpow2.f32 %v2504_v18  ;;  %v743_v38 = vadd.f32 %v742_v41, %v6970_v48 }
 0x222   :  { %v762_v21 = vor.u32 1.1754944e-38, %v761_v61  ;;  %vm760_vm11 = vcmp.eq.f32.partialorder %v759_v53, 8.507059e+37 }
 0x223   :  { %2595 = vrcp.f32 %v769_v44  ;;  %vm775_vm13 = vweird.f32 %v769_v44 }
 0x225   :  { %v2590_v45 = vpop.eup %2589 }
 0x226   :  { %v2592_v24 = vpop.eup %2591  ;;  %v4650_v19 = vadd.f32 1.0, %v2590_v45 }
 0x227   :  { %v2594_v2 = vpop.eup %2593  ;;  %v751_v16 = vmul.f32 %v2592_v24, %v749_v51  ;;  %vm756_vm8 = vweird.f32 %v2592_v24 }
 0x228   :  { %2597 = vrcp.f32 %v4650_v19  ;;  %v862_v54 = vadd.f32 1.0, %v2594_v2  ;;  %vm757_vm10 = vmor %vm755_vm9, %vm756_vm8  ;;  %vm888_vm5 = vweird.f32 %v4650_v19 }
 0x229   :  { %v2596_v23 = vpop.eup %2595  ;;  %v752_v13 = vsub.f32 1.0, %v751_v16 }
 0x22a   :  { %v771_v28 = vmul.f32 %v2596_v23, %v769_v44  ;;  %2599 = vrcp.f32 %v862_v54  ;;  %vm776_vm12 = vweird.f32 %v2596_v23  ;;  %v872_v6 = vand.u32 2147483647, %v862_v54 }
 0x22b   :  { %v753_v50 = vmul.f32 %v2592_v24, %v752_v13  ;;  %v781_v13 = vand.u32 2147483648, %v769_v44  ;;  %vm777_vm14 = vmor %vm775_vm13, %vm776_vm12  ;;  %vm868_vm1 = vweird.f32 %v862_v54 }
 0x22c   :  { %v772_v20 = vsub.f32 1.0, %v771_v28  ;;  %vm873_vm3 = vcmp.eq.f32.partialorder %v872_v6, 8.507059e+37 }
 0x22d   :  { %v754_v56 = vadd.f32 %v2592_v24, %v753_v50  ;;  %v683_v50 = vadd.f32 %v682_v59, %v4114_v37 }
 0x22e   :  { %v4653_v18 = vpop.eup %2597  ;;  %v773_v45 = vmul.f32 %v2596_v23, %v772_v20  ;;  %v779_v20 = vand.u32 2147483647, %v769_v44 }
 0x22f   :  { %v758_v2 = vsel %vm757_vm10, %v2592_v24, %v754_v56  ;;  %v884_v16 = vmul.f32 %v4653_v18, %v4650_v19  ;;  %v782_v24 = vor.u32 1.1754944e-38, %v781_v13  ;;  %v874_v56 = vand.u32 2147483648, %v862_v54 }
 0x230   :  { %v2600_v31 = vpop.eup %2599  ;;  %v763_v33 = vsel %vm760_vm11, %v762_v21, %v758_v2  ;;  %v774_v28 = vadd.f32 %v2596_v23, %v773_v45  ;;  %vm780_vm0 = vcmp.eq.f32.partialorder %v779_v20, 8.507059e+37  ;;  %v855_v45 = vpop.f32.mrf.mxu0  ;;  %vm889_vm4 = vweird.f32 %v4653_v18 }
 0x231   :  { %v785_v51 = vmul.f32 %v763_v33, %v743_v38  ;;  %v864_v43 = vmul.f32 %v2600_v31, %v862_v54  ;;  %v885_v1 = vsub.f32 1.0, %v884_v16  ;;  %vm869_vm15 = vweird.f32 %v2600_v31  ;;  %vm890_vm6 = vmor %vm888_vm5, %vm889_vm4 }
 0x232   :  { %v778_v53 = vsel %vm777_vm14, %v2596_v23, %v774_v28  ;;  %vm870_vm2 = vmor %vm868_vm1, %vm869_vm15  ;;  %v875_v33 = vor.u32 1.1754944e-38, %v874_v56  ;;  %v856_v44 = vadd.f32 %v855_v45, %v3850_v49  ;;  %v2503_v23 = vld [vmem:[%s6396_s0 + $0x40] sm:$0xff]  ;;  %v6989_v56 = vld [vmem:[#allocation55_spill] sm:$0xff] }
 0x233   :  { %v786_v61 = vadd.f32 %v785_v51, %v683_v50  ;;  %v865_v41 = vsub.f32 1.0, %v864_v43  ;;  %v886_v21 = vmul.f32 %v4653_v18, %v885_v1  ;;  %v783_v59 = vsel %vm780_vm0, %v782_v24, %v778_v53  ;;  %v4787_v45 = vld [vmem:[#allocation4 + $0x8] sm:$0xff] }
 0x234   :  { %v788_v43 = vsub.f32 1.0, %v783_v59  ;;  %v790_v6 = vmul.f32 %v783_v59, %v4141_v17  ;;  %v6991_v59 = vld [vmem:[#allocation40_spill] sm:$0xff] }
 0x235   :  { %2601 = vtanh.f32 %v786_v61  ;;  %v866_v48 = vmul.f32 %v2600_v31, %v865_v41  ;;  %v887_v1 = vadd.f32 %v4653_v18, %v886_v21  ;;  %v6990_v21 = vld [vmem:[#allocation57_spill] sm:$0xff] }
 0x237   :  { %v867_v38 = vadd.f32 %v2600_v31, %v866_v48  ;;  %v894_v48 = vand.u32 2147483648, %v4650_v19  ;;  %v891_v51 = vsel %vm890_vm6, %v4653_v18, %v887_v1  ;;  %v6997_v1 = vld [vmem:[#allocation43_spill] sm:$0xff] }
 0x239   :  { %v871_v2 = vsel %vm870_vm2, %v2600_v31, %v867_v38  ;;  %v892_v31 = vand.u32 2147483647, %v4650_v19  ;;  %v895_v61 = vor.u32 1.1754944e-38, %v894_v48  ;;  %v4791_v38 = vld [vmem:[#allocation6 + $0x178] sm:$0xff]  ;;  %v6998_v48 = vld [vmem:[#allocation67_spill] sm:$0xff] }
 0x23a   :  { %v876_v16 = vsel %vm873_vm3, %v875_v33, %v871_v2  ;;  %v6992_v33 = vld [vmem:[#allocation42_spill] sm:$0xff]  ;;  %v6994_v2 = vld [vmem:[#allocation59_spill] sm:$0xff] }
 0x23b   :  { %v2602_v13 = vpop.eup %2601  ;;  %v898_v54 = vmul.f32 %v876_v16, %v856_v44  ;;  %vm893_vm7 = vcmp.eq.f32.partialorder %v892_v31, 8.507059e+37  ;;  %v6993_v44 = vld [vmem:[#allocation47_spill] sm:$0xff]  ;;  %v6996_v16 = vld [vmem:[#allocation73_spill] sm:$0xff]  ;;  %v4809_v31 = vld [vmem:[#allocation6 + $0x130] sm:$0xff] }
 0x23c   :  { %v789_v28 = vmul.f32 %v2602_v13, %v788_v43  ;;  %v896_v41 = vsel %vm893_vm7, %v895_v61, %v891_v51  ;;  %v4797_v43 = vld [vmem:[#allocation6 + $0x160] sm:$0xff]  ;;  %v4803_v13 = vld [vmem:[#allocation6 + $0x148] sm:$0xff]  ;;  %v4815_v61 = vld [vmem:[#allocation6 + $0x118] sm:$0xff] }
 0x23d   :  { %v899_v50 = vadd.f32 %v2503_v23, %v898_v54  ;;  %v901_v17 = vsub.f32 1.0, %v896_v41  ;;  %v903_v24 = vmul.f32 %v896_v41, %v4143_v27  ;;  %v4698_v27 = vld [vmem:[#allocation4 + $0x158] sm:$0xff]  ;;  %v6995_v23 = vld [vmem:[#allocation63_spill] sm:$0xff]  ;;  %v6999_v54 = vld [vmem:[#allocation52_spill] sm:$0xff] }
 0x23e   :  { %v4671_v20 = vadd.f32 %v790_v6, %v789_v28  ;;  %v7000_v28 = vld [vmem:[#allocation65_spill] sm:$0xff]  ;;  %v7001_v6 = vld [vmem:[#allocation68_spill] sm:$0xff]  ;;  %v7003_v51 = vld [vmem:[#allocation31_spill] sm:$0xff] }
 0x23f   :  { %2603 = vtanh.f32 %v899_v50  ;;  %v7002_v50 = vld [vmem:[#allocation80_spill] sm:$0xff]  ;;  %v7004_v41 = vld [vmem:[#allocation69_spill] sm:$0xff] }
 0x240   :  { %2500 = vst [vmem:[%s6403_s7 + $0x8] sm:$0xff] %v4671_v20  ;;  %981 = vmatmul.f32.vlgmr.msra.gmra.mxu0 %v4671_v20 }
 0x241   :  { %1225 = vmatpush.msra.mxu0 %v4169_v32  ;;  %v4692_v32 = vld [vmem:[#allocation4 + $0x170] sm:$0xff] }
 0x243   :  { %1226 = vmatpush.msra.mxu0 %v4182_v8  ;;  %v4738_v8 = vld [vmem:[#allocation4 + $0xc8] sm:$0xff] }
 0x245   :  { %v2604_v19 = vpop.eup %2603  ;;  %1227 = vmatpush.msra.mxu0 %v4208_v10  ;;  %v6973_v10 = vld [vmem:[#allocation41_spill] sm:$0xff] }
 0x246   :  { %v902_v18 = vmul.f32 %v2604_v19, %v901_v17  ;;  %v7005_v17 = vld [vmem:[#allocation58_spill] sm:$0xff]  ;;  %v7006_v19 = vld [vmem:[#allocation35_spill] sm:$0xff] }
 0x247   :  { %1228 = vmatpush.msra.mxu0 %v4221_v14  ;;  %v4756_v14 = vld [vmem:[#allocation4 + $0x80] sm:$0xff] }
 0x248   :  { %v4683_v53 = vadd.f32 %v903_v24, %v902_v18  ;;  %v4821_v18 = vld [vmem:[#allocation6 + $0x100] sm:$0xff]  ;;  %v7007_v24 = vld [vmem:[#allocation48_spill] sm:$0xff] }
 0x249   :  { %1229 = vmatpush.msra.mxu0 %v4234_v0  ;;  %v6978_v0 = vld [vmem:[#allocation34_spill] sm:$0xff] }
 0x24a   :  { %921 = vmatmul.f32.vlgmr.msrb.gmra.mxu1 %v4683_v53  ;;  %941 = vmatmul.f32.vlgmr.msrb.gmra.mxu2 %v4683_v53 }
 0x24b   :  { %961 = vmatmul.f32.vlgmr.msrb.gmra.mxu3 %v4683_v53  ;;  %1114 = vmatmul.f32.vlgmr.msrb.gmra.mxu0 %v4683_v53 }
 0x24c   :  { %1118 = vmatpush.msrb.mxu1 %v4156_v47  ;;  %1185 = vmatpush.msrb.mxu2 %v4159_v60  ;;  %v4704_v47 = vld [vmem:[#allocation4 + $0x140] sm:$0xff]  ;;  %v4714_v60 = vld [vmem:[#allocation4 + $0x128] sm:$0xff] }
 0x24d   :  { %1205 = vmatpush.msrb.mxu3 %v4692_v32  ;;  %1230 = vmatpush.msra.mxu0 %v4247_v25  ;;  %v6980_v25 = vld [vmem:[#allocation33_spill] sm:$0xff] }
 0x24e   :  { %1119 = vmatpush.msrb.mxu1 %v4166_v57  ;;  %1186 = vmatpush.msrb.mxu2 %v4172_v11  ;;  %v4720_v57 = vld [vmem:[#allocation4 + $0x110] sm:$0xff]  ;;  %v4726_v11 = vld [vmem:[#allocation4 + $0xf8] sm:$0xff] }
 0x24f   :  { %1206 = vmatpush.msrb.mxu3 %v4698_v27  ;;  %1231 = vmatpush.msra.mxu0 %v4260_v7 }
 0x250   :  { %1120 = vmatpush.msrb.mxu1 %v4179_v52  ;;  %1187 = vmatpush.msrb.mxu2 %v4185_v42  ;;  %v4732_v52 = vld [vmem:[#allocation4 + $0xe0] sm:$0xff]  ;;  %v4744_v42 = vld [vmem:[#allocation4 + $0xb0] sm:$0xff] }
 0x251   :  { %1207 = vmatpush.msrb.mxu3 %v4704_v47  ;;  %1232 = vmatpush.msra.mxu0 %v4273_v29  ;;  %v6984_v29 = vld [vmem:[#allocation51_spill] sm:$0xff] }
 0x252   :  { %1121 = vmatpush.msrb.mxu1 %v4193_v55  ;;  %1021 = vmatmul.f32.vlgmr.msra.gmra.mxu2 %v4671_v20  ;;  %v6971_v55 = vld [vmem:[#allocation27_spill] sm:$0xff] }
 0x253   :  { %1001 = vmatmul.f32.vlgmr.msra.gmra.mxu1 %v4671_v20  ;;  %1094 = vmatmul.f32.vlgmr.msra.gmra.mxu3 %v4683_v53 }
 0x254   :  { %1122 = vmatpush.msrb.mxu1 %v4202_v12  ;;  %1188 = vmatpush.msrb.mxu2 %v4205_v62  ;;  %v6972_v12 = vld [vmem:[#allocation76_spill] sm:$0xff]  ;;  %v4750_v62 = vld [vmem:[#allocation4 + $0x98] sm:$0xff] }
 0x255   :  { %1208 = vmatpush.msrb.mxu3 %v4714_v60  ;;  %1233 = vmatpush.msra.mxu0 %v4286_v9  ;;  %v4774_v9 = vld [vmem:[#allocation4 + $0x38] sm:$0xff] }
 0x256   :  { %1123 = vmatpush.msrb.mxu1 %v4214_v34  ;;  %1189 = vmatpush.msrb.mxu2 %v4218_v36  ;;  %v6974_v34 = vld [vmem:[#allocation26_spill] sm:$0xff] }
 0x257   :  { %1209 = vmatpush.msrb.mxu3 %v4720_v57  ;;  %1234 = vmatpush.msra.mxu0 %v4299_v4  ;;  %v6975_v36 = vld [vmem:[#allocation30_spill] sm:$0xff] }
 0x258   :  { %1124 = vmatpush.msrb.mxu1 %v4227_v3  ;;  %1190 = vmatpush.msrb.mxu2 %v4231_v63  ;;  %v6976_v3 = vld [vmem:[#allocation61_spill] sm:$0xff]  ;;  %v6985_v4 = vld [vmem:[#allocation46_spill] sm:$0xff] }
 0x259   :  { %1210 = vmatpush.msrb.mxu3 %v4726_v11  ;;  %1235 = vmatpush.msra.mxu0 %v4312_v26  ;;  %v6977_v63 = vld [vmem:[#allocation29_spill] sm:$0xff] }
 0x25a   :  { %1125 = vmatpush.msrb.mxu1 %v4240_v58  ;;  %1191 = vmatpush.msrb.mxu2 %v4244_v22  ;;  %v4762_v58 = vld [vmem:[#allocation4 + $0x68] sm:$0xff]  ;;  %v6979_v22 = vld [vmem:[#allocation44_spill] sm:$0xff]  ;;  %v6987_v26 = vld [vmem:[#allocation53_spill] sm:$0xff] }
 0x25b   :  { %1211 = vmatpush.msrb.mxu3 %v4732_v52  ;;  %1236 = vmatpush.msra.mxu0 %v4325_v30  ;;  %v4781_v30 = vld [vmem:[#allocation4 + $0x20] sm:$0xff] }
 0x25c   :  { %1126 = vmatpush.msrb.mxu1 %v4253_v15  ;;  %1192 = vmatpush.msrb.mxu2 %v4257_v40  ;;  %v6981_v15 = vld [vmem:[#allocation49_spill] sm:$0xff]  ;;  %v4768_v40 = vld [vmem:[#allocation4 + $0x50] sm:$0xff] }
 0x25d   :  { %1212 = vmatpush.msrb.mxu3 %v4738_v8  ;;  %1237 = vmatpush.msra.mxu0 %v4338_v39  ;;  %v6988_v39 = vld [vmem:[#allocation39_spill] sm:$0xff] }
 0x25e   :  { %1127 = vmatpush.msrb.mxu1 %v4266_v46  ;;  %1193 = vmatpush.msrb.mxu2 %v4270_v35  ;;  %v6982_v46 = vld [vmem:[#allocation45_spill] sm:$0xff] }
 0x25f   :  { %1213 = vmatpush.msrb.mxu3 %v4744_v42  ;;  %1238 = vmatpush.msra.mxu0 %v4355_v5  ;;  %v6983_v35 = vld [vmem:[#allocation37_spill] sm:$0xff]  ;;  %v6986_v5 = vld [vmem:[#allocation38_spill] sm:$0xff] }
 0x260   :  { %1128 = vmatpush.msrb.mxu1 %v6971_v55  ;;  %1194 = vmatpush.msrb.mxu2 %v6972_v12  ;;  %v7008_v55 = vld [vmem:[#allocation60_spill] sm:$0xff]  ;;  %v7009_v12 = vld [vmem:[#allocation71_spill] sm:$0xff] }
 0x261   :  { %1214 = vmatpush.msrb.mxu3 %v4750_v62  ;;  %1239 = vmatpush.msra.mxu0 %v6973_v10  ;;  %v4827_v10 = vld [vmem:[#allocation6 + $0xe8] sm:$0xff] }
 0x262   :  { %1129 = vmatpush.msrb.mxu1 %v6974_v34  ;;  %1195 = vmatpush.msrb.mxu2 %v6975_v36  ;;  %v7010_v34 = vld [vmem:[#allocation75_spill] sm:$0xff]  ;;  %v7011_v36 = vld [vmem:[#allocation62_spill] sm:$0xff] }
 0x263   :  { %1215 = vmatpush.msrb.mxu3 %v4756_v14  ;;  %1240 = vmatpush.msra.mxu0 %v6976_v3  ;;  %v7012_v3 = vld [vmem:[#allocation50_spill] sm:$0xff] }
 0x264   :  { %1130 = vmatpush.msrb.mxu1 %v6977_v63  ;;  %1196 = vmatpush.msrb.mxu2 %v6978_v0  ;;  %v4833_v63 = vld [vmem:[#allocation6 + $0xd0] sm:$0xff]  ;;  %v7013_v0 = vld [vmem:[#allocation54_spill] sm:$0xff] }
 0x265   :  { %1216 = vmatpush.msrb.mxu3 %v4762_v58  ;;  %1358 = vmatpush.msrb.mxu0 %v6979_v22  ;;  %v7014_v22 = vld [vmem:[#allocation64_spill] sm:$0xff] }
 0x266   :  { %1131 = vmatpush.msrb.mxu1 %v6980_v25  ;;  %1197 = vmatpush.msrb.mxu2 %v6981_v15  ;;  %v7015_v25 = vld [vmem:[#allocation77_spill] sm:$0xff] }
 0x267   :  { %1217 = vmatpush.msrb.mxu3 %v4768_v40  ;;  %1359 = vmatpush.msrb.mxu0 %v6982_v46  ;;  %v4839_v15 = vld [vmem:[#allocation6 + $0xb8] sm:$0xff] }
 0x268   :  { %1132 = vmatpush.msrb.mxu1 %v6983_v35  ;;  %1198 = vmatpush.msrb.mxu2 %v6984_v29  ;;  %v7016_v46 = vld [vmem:[#allocation81_spill] sm:$0xff]  ;;  %v7017_v35 = vld [vmem:[#allocation66_spill] sm:$0xff]  ;;  %v7018_v29 = vld [vmem:[#allocation56_spill] sm:$0xff] }
 0x269   :  { %1218 = vmatpush.msrb.mxu3 %v4774_v9  ;;  %1360 = vmatpush.msrb.mxu0 %v6985_v4  ;;  %v4845_v4 = vld [vmem:[#allocation6 + $0xa0] sm:$0xff] }
 0x26a   :  { %1133 = vmatpush.msrb.mxu1 %v6986_v5  ;;  %1199 = vmatpush.msrb.mxu2 %v6987_v26  ;;  %v4848_v5 = vld [vmem:[#allocation6 + $0x80] sm:$0xff]  ;;  %v7019_v26 = vld [vmem:[#allocation87_spill] sm:$0xff] }
 0x26b   :  { %1134 = vmatmul.f32.vlgmr.msrb.gmra.mxu1 %v4683_v53  ;;  %1219 = vmatpush.msrb.mxu3 %v4781_v30 }
 0x26c   :  { %1245 = vmatpush.msra.mxu1 %v6988_v39  ;;  %1200 = vmatpush.msrb.mxu2 %v6989_v56  ;;  %v7020_v39 = vld [vmem:[#allocation82_spill] sm:$0xff]  ;;  %v4853_v56 = vld [vmem:[#allocation6 + $0x88] sm:$0xff] }
 0x26d   :  { %1220 = vmatpush.msrb.mxu3 %v4787_v45  ;;  %1361 = vmatpush.msrb.mxu0 %v6993_v44  ;;  %v4861_v44 = vld [vmem:[#allocation6 + $0x70] sm:$0xff] }
 0x26e   :  { %1265 = vmatpush.msra.mxu2 %v6990_v21  ;;  %1246 = vmatpush.msra.mxu1 %v6991_v59  ;;  %v4856_v21 = vld [vmem:[#allocation6 + $0x68] sm:$0xff]  ;;  %v7021_v59 = vld [vmem:[#allocation12_spill] sm:$0xff] }
 0x26f   :  { %1285 = vmatpush.msra.mxu3 %v4791_v38  ;;  %1362 = vmatpush.msrb.mxu0 %v6996_v16  ;;  %v7024_v16 = vld [vmem:[#allocation84_spill] sm:$0xff] }
 0x270   :  { %1266 = vmatpush.msra.mxu2 %v6992_v33  ;;  %1247 = vmatpush.msra.mxu1 %v6994_v2  ;;  %v7022_v33 = vld [vmem:[#allocation83_spill] sm:$0xff]  ;;  %v4864_v2 = vld [vmem:[#allocation6 + $0x50] sm:$0xff] }
 0x271   :  { %1286 = vmatpush.msra.mxu3 %v4797_v43  ;;  %1363 = vmatpush.msrb.mxu0 %v6999_v54  ;;  %v7025_v54 = vld [vmem:[#allocation14_spill] sm:$0xff] }
 0x272   :  { %1267 = vmatpush.msra.mxu2 %v6995_v23  ;;  %1248 = vmatpush.msra.mxu1 %v6997_v1  ;;  %v7023_v23 = vld [vmem:[#allocation13_spill] sm:$0xff] }
 0x273   :  { %1287 = vmatpush.msra.mxu3 %v4803_v13  ;;  %1364 = vmatpush.msrb.mxu0 %v7002_v50  ;;  %v4869_v1 = vld [vmem:[#allocation6 + $0x58] sm:$0xff]  ;;  %v4880_v50 = vld [vmem:[#allocation6 + $0x20] sm:$0xff] }
 0x274   :  { %1268 = vmatpush.msra.mxu2 %v6998_v48  ;;  %1249 = vmatpush.msra.mxu1 %v7000_v28  ;;  %v4872_v48 = vld [vmem:[#allocation6 + $0x38] sm:$0xff] }
 0x275   :  { %1288 = vmatpush.msra.mxu3 %v4809_v31  ;;  %1365 = vmatpush.msrb.mxu0 %v7005_v17  ;;  %v7026_v28 = vld [vmem:[#allocation85_spill] sm:$0xff]  ;;  %v4890_v17 = vld [vmem:[%s6397_s1 + $0x170] sm:$0xff] }
 0x276   :  { %1269 = vmatpush.msra.mxu2 %v7001_v6  ;;  %1250 = vmatpush.msra.mxu1 %v7003_v51  ;;  %v4877_v6 = vld [vmem:[#allocation6 + $0x40] sm:$0xff]  ;;  %7029 = vst [vmem:[#allocation90_spill] sm:$0xff] %v4890_v17 }
 0x277   :  { %1289 = vmatpush.msra.mxu3 %v4815_v61  ;;  %1366 = vmatpush.msrb.mxu0 %v7008_v55  ;;  %v7027_v51 = vld [vmem:[#allocation86_spill] sm:$0xff]  ;;  %v4902_v55 = vld [vmem:[%s6397_s1 + $0x158] sm:$0xff] }
 0x278   :  { %1270 = vmatpush.msra.mxu2 %v7004_v41  ;;  %1251 = vmatpush.msra.mxu1 %v7006_v19  ;;  %v4884_v41 = vld [vmem:[#allocation6 + $0x28] sm:$0xff]  ;;  %7032 = vst [vmem:[#allocation21_spill] sm:$0xff] %v4902_v55 }
 0x279   :  { %1290 = vmatpush.msra.mxu3 %v4821_v18  ;;  %1367 = vmatpush.msrb.mxu0 %v7011_v36  ;;  %7028 = vst [vmem:[#allocation10_spill] sm:$0xff] %v4884_v41  ;;  %v4893_v19 = vld [vmem:[#allocation6 + $0x8] sm:$0xff] }
 0x27a   :  { %1271 = vmatpush.msra.mxu2 %v7007_v24  ;;  %1252 = vmatpush.msra.mxu1 %v7009_v12  ;;  %7030 = vst [vmem:[#allocation18_spill] sm:$0xff] %v4893_v19  ;;  %v4896_v24 = vld [vmem:[#allocation6 + $0x10] sm:$0xff]  ;;  %v4908_v12 = vld [vmem:[%s6397_s1 + $0x140] sm:$0xff]  ;;  %v7035_v36 = vld [vmem:[#allocation15_spill] sm:$0xff] }
 0x27b   :  { %1291 = vmatpush.msra.mxu3 %v4827_v10  ;;  %1368 = vmatpush.msrb.mxu0 %v7014_v22  ;;  %7031 = vst [vmem:[#allocation91_spill] sm:$0xff] %v4896_v24  ;;  %v7038_v22 = vld [vmem:[#allocation19_spill] sm:$0xff] }
 0x27c   :  { %1272 = vmatpush.msra.mxu2 %v7010_v34  ;;  %1253 = vmatpush.msra.mxu1 %v7012_v3  ;;  %7033 = vst [vmem:[#allocation27_spill] sm:$0xff] %v4908_v12  ;;  %v4914_v34 = vld [vmem:[%s6397_s1 + $0x128] sm:$0xff]  ;;  %v7036_v3 = vld [vmem:[#allocation16_spill] sm:$0xff] }
 0x27d   :  { %1292 = vmatpush.msra.mxu3 %v4833_v63  ;;  %1369 = vmatpush.msrb.mxu0 %v7017_v35  ;;  %7034 = vst [vmem:[#allocation76_spill] sm:$0xff] %v4914_v34  ;;  %v7041_v35 = vld [vmem:[#allocation28_spill] sm:$0xff] }
 0x27e   :  { %1273 = vmatpush.msra.mxu2 %v7013_v0  ;;  %1254 = vmatpush.msra.mxu1 %v7015_v25  ;;  %v7037_v0 = vld [vmem:[#allocation17_spill] sm:$0xff]  ;;  %v7039_v25 = vld [vmem:[#allocation22_spill] sm:$0xff] }
 0x27f   :  { %1293 = vmatpush.msra.mxu3 %v4839_v15  ;;  %1370 = vmatpush.msrb.mxu0 %v7019_v26  ;;  %v7043_v26 = vld [vmem:[#allocation36_spill] sm:$0xff] }
 0x280   :  { %1274 = vmatpush.msra.mxu2 %v7016_v46  ;;  %1255 = vmatpush.msra.mxu1 %v7018_v29  ;;  %v7040_v46 = vld [vmem:[#allocation25_spill] sm:$0xff]  ;;  %v7042_v29 = vld [vmem:[#allocation32_spill] sm:$0xff] }
 0x281   :  { %1294 = vmatpush.msra.mxu3 %v4845_v4  ;;  %1371 = vmatpush.msrb.mxu0 %v7021_v59  ;;  %v7045_v59 = vld [vmem:[#allocation88_spill] sm:$0xff] }
 0x282   :  { %1275 = vmatpush.msra.mxu2 %v4848_v5  ;;  %1256 = vmatpush.msra.mxu1 %v7020_v39  ;;  %v7044_v39 = vld [vmem:[#allocation70_spill] sm:$0xff] }
 0x283   :  { %1295 = vmatpush.msra.mxu3 %v4853_v56  ;;  %1372 = vmatpush.msrb.mxu0 %v7023_v23 }
 0x284   :  { %1276 = vmatpush.msra.mxu2 %v4856_v21  ;;  %1257 = vmatpush.msra.mxu1 %v7022_v33  ;;  %v7046_v33 = vld [vmem:[#allocation89_spill] sm:$0xff] }
 0x285   :  { %1296 = vmatpush.msra.mxu3 %v4861_v44  ;;  %1373 = vmatpush.msrb.mxu0 %v7025_v54  ;;  %v7047_v54 = vld [vmem:[#allocation72_spill] sm:$0xff] }
 0x286   :  { %1277 = vmatpush.msra.mxu2 %v4864_v2  ;;  %1258 = vmatpush.msra.mxu1 %v7024_v16 }
 0x287   :  { %1297 = vmatpush.msra.mxu3 %v4869_v1 }
 0x288   :  { %1278 = vmatpush.msra.mxu2 %v4872_v48  ;;  %1259 = vmatpush.msra.mxu1 %v7026_v28 }
 0x289   :  { %1298 = vmatpush.msra.mxu3 %v4877_v6 }
 0x28a   :  { %1279 = vmatpush.msra.mxu2 %v4880_v50  ;;  %1260 = vmatpush.msra.mxu1 %v7027_v51  ;;  %v7048_v51 = vld [vmem:[#allocation11_spill] sm:$0xff] }
 0x28b   :  { %1299 = vmatpush.msra.mxu3 %v4884_v41 }
 0x28c   :  { %1378 = vmatpush.msrb.mxu1 %v4890_v17  ;;  %1280 = vmatpush.msra.mxu2 %v4893_v19 }
 0x28d   :  { %1300 = vmatpush.msra.mxu3 %v4896_v24 }
 0x28e   :  { %1379 = vmatpush.msrb.mxu1 %v4902_v55 }
 0x290   :  { %1380 = vmatpush.msrb.mxu1 %v4908_v12 }
 0x292   :  { %1381 = vmatpush.msrb.mxu1 %v4914_v34  ;;  %v7050_v34 = vld [vmem:[#allocation20_spill] sm:$0xff] }
 0x294   :  { %1382 = vmatpush.msrb.mxu1 %v7035_v36 }
 0x296   :  { %1383 = vmatpush.msrb.mxu1 %v7036_v3 }
 0x298   :  { %1384 = vmatpush.msrb.mxu1 %v7037_v0  ;;  %v2510_v0 = vld [vmem:[%s6396_s0 + $0x50] sm:$0xff] }
 0x29a   :  { %1385 = vmatpush.msrb.mxu1 %v7038_v22  ;;  %v7049_v22 = vld [vmem:[#allocation79_spill] sm:$0xff] }
 0x29c   :  { %1386 = vmatpush.msrb.mxu1 %v7039_v25 }
 0x29e   :  { %1387 = vmatpush.msrb.mxu1 %v7040_v46 }
 0x2a0   :  { %1388 = vmatpush.msrb.mxu1 %v7041_v35 }
 0x2a2   :  { %1389 = vmatpush.msrb.mxu1 %v7042_v29 }
 0x2a4   :  { %1390 = vmatpush.msrb.mxu1 %v7043_v26 }
 0x2a6   :  { %1391 = vmatpush.msrb.mxu1 %v7044_v39 }
 0x2a8   :  { %1392 = vmatpush.msrb.mxu1 %v7045_v59 }
 0x2aa   :  { %1393 = vmatpush.msrb.mxu1 %v7046_v33 }
 0x2bd   :  { %v982_v23 = vpop.f32.mrf.mxu0 }
 0x2be   :  { %v983_v28 = vadd.f32 %v982_v23, %v7047_v54  ;;  %v7051_v23 = vld [vmem:[#allocation24_spill] sm:$0xff] }
 0x2c7   :  { %v922_v16 = vpop.f32.mrf.mxu1 }
 0x2c8   :  { %v923_v36 = vadd.f32 %v922_v16, %v7048_v51  ;;  %v1115_v3 = vpop.f32.mrf.mxu0 }
 0x2c9   :  { %v1116_v25 = vadd.f32 %v1115_v3, %v7049_v22 }
 0x2ca   :  { %v1025_v46 = vadd.f32 %v983_v28, %v923_v36  ;;  %v2509_v28 = vld [vmem:[%s6396_s0 + $0x48] sm:$0xff]  ;;  %v7052_v36 = vld [vmem:[#allocation78_spill] sm:$0xff] }
 0x2cb   :  { %v1158_v29 = vadd.f32 %v2510_v0, %v1116_v25 }
 0x2cc   :  { %v2506_v35 = vmul.f32 -1.442695, %v1025_v46 }
 0x2cd   :  { %v942_v26 = vpop.f32.mrf.mxu2  ;;  %v2513_v59 = vmul.f32 -1.442695, %v1158_v29 }
 0x2ce   :  { %2605 = vpow2.f32 %v2506_v35  ;;  %v962_v39 = vpop.f32.mrf.mxu3  ;;  %v943_v12 = vadd.f32 %v942_v26, %v7050_v34 }
 0x2cf   :  { %2607 = vpow2.f32 %v2513_v59 }
 0x2d0   :  { %v1002_v33 = vpop.f32.mrf.mxu1 }
 0x2d1   :  { %v1003_v54 = vadd.f32 %v1002_v33, %v7051_v23 }
 0x2d3   :  { %v1045_v16 = vadd.f32 %v1003_v54, %v943_v12 }
 0x2d4   :  { %v2606_v51 = vpop.eup %2605 }
 0x2d5   :  { %v1029_v55 = vadd.f32 1.0, %v2606_v51  ;;  %v2507_v24 = vmul.f32 -1.442695, %v1045_v16  ;;  %v2608_v0 = vpop.eup %2607 }
 0x2d6   :  { %v1095_v19 = vpop.f32.mrf.mxu3  ;;  %v4941_v29 = vadd.f32 1.0, %v2608_v0  ;;  %v7053_v0 = vld [vmem:[#allocation74_spill] sm:$0xff] }
 0x2d7   :  { %2609 = vrcp.f32 %v1029_v55  ;;  %v1096_v3 = vadd.f32 %v1095_v19, %v7052_v36  ;;  %v1041_v59 = vand.u32 2147483648, %v1029_v55  ;;  %v1039_v16 = vand.u32 2147483647, %v1029_v55  ;;  %v1022_v19 = vpop.f32.mrf.mxu2 }
 0x2d8   :  { %2611 = vpow2.f32 %v2507_v24  ;;  %vm1035_vm9 = vweird.f32 %v1029_v55  ;;  %vm1168_vm5 = vweird.f32 %v4941_v29 }
 0x2d9   :  { %v1138_v25 = vadd.f32 %v2509_v28, %v1096_v3  ;;  %v1042_v28 = vor.u32 1.1754944e-38, %v1041_v59  ;;  %vm1040_vm11 = vcmp.eq.f32.partialorder %v1039_v16, 8.507059e+37 }
 0x2db   :  { %v2512_v46 = vmul.f32 -1.442695, %v1138_v25  ;;  %v1023_v25 = vadd.f32 %v1022_v19, %v7053_v0 }
 0x2dd   :  { %v2610_v35 = vpop.eup %2609  ;;  %2613 = vpow2.f32 %v2512_v46 }
 0x2de   :  { %v1031_v12 = vmul.f32 %v2610_v35, %v1029_v55  ;;  %v2612_v54 = vpop.eup %2611  ;;  %2615 = vrcp.f32 %v4941_v29  ;;  %vm1036_vm8 = vweird.f32 %v2610_v35 }
 0x2df   :  { %v1049_v51 = vadd.f32 1.0, %v2612_v54  ;;  %vm1037_vm10 = vmor %vm1035_vm9, %vm1036_vm8 }
 0x2e0   :  { %v1032_v26 = vsub.f32 1.0, %v1031_v12 }
 0x2e1   :  { %2617 = vrcp.f32 %v1049_v51  ;;  %v1061_v59 = vand.u32 2147483648, %v1049_v51  ;;  %vm1055_vm13 = vweird.f32 %v1049_v51 }
 0x2e2   :  { %v1033_v33 = vmul.f32 %v2610_v35, %v1032_v26  ;;  %v963_v26 = vadd.f32 %v962_v39, %v4114_v37 }
 0x2e3   :  { %v2614_v24 = vpop.eup %2613 }
 0x2e4   :  { %v1034_v23 = vadd.f32 %v2610_v35, %v1033_v33  ;;  %v1142_v3 = vadd.f32 1.0, %v2614_v24  ;;  %v4945_v54 = vpop.eup %2615 }
 0x2e5   :  { %v1164_v55 = vmul.f32 %v4945_v54, %v4941_v29  ;;  %vm1169_vm4 = vweird.f32 %v4945_v54 }
 0x2e6   :  { %v1038_v46 = vsel %vm1037_vm10, %v2610_v35, %v1034_v23  ;;  %2619 = vrcp.f32 %v1142_v3  ;;  %v1059_v23 = vand.u32 2147483647, %v1049_v51  ;;  %vm1148_vm1 = vweird.f32 %v1142_v3  ;;  %vm1170_vm6 = vmor %vm1168_vm5, %vm1169_vm4 }
 0x2e7   :  { %v1043_v12 = vsel %vm1040_vm11, %v1042_v28, %v1038_v46  ;;  %v2618_v34 = vpop.eup %2617  ;;  %v1165_v16 = vsub.f32 1.0, %v1164_v55  ;;  %v1062_v46 = vor.u32 1.1754944e-38, %v1061_v59 }
 0x2e8   :  { %v1065_v36 = vmul.f32 %v1043_v12, %v1023_v25  ;;  %v1051_v22 = vmul.f32 %v2618_v34, %v1049_v51  ;;  %vm1056_vm12 = vweird.f32 %v2618_v34  ;;  %vm1060_vm15 = vcmp.eq.f32.partialorder %v1059_v23, 8.507059e+37  ;;  %v1135_v0 = vpop.f32.mrf.mxu1  ;;  %v2511_v23 = vld [vmem:[%s6396_s0 + $0x58] sm:$0xff] }
 0x2e9   :  { %vm1057_vm14 = vmor %vm1055_vm13, %vm1056_vm12 }
 0x2ea   :  { %v1066_v17 = vadd.f32 %v1065_v36, %v963_v26  ;;  %v1052_v33 = vsub.f32 1.0, %v1051_v22  ;;  %v1154_v36 = vand.u32 2147483648, %v1142_v3  ;;  %v1152_v22 = vand.u32 2147483647, %v1142_v3 }
 0x2ec   :  { %2621 = vtanh.f32 %v1066_v17  ;;  %v2620_v24 = vpop.eup %2619  ;;  %v1053_v19 = vmul.f32 %v2618_v34, %v1052_v33  ;;  %v1166_v17 = vmul.f32 %v4945_v54, %v1165_v16  ;;  %v1155_v51 = vor.u32 1.1754944e-38, %v1154_v36  ;;  %v4978_v36 = vld [vmem:[#allocation4 + $0x130] sm:$0xff] }
 0x2ed   :  { %v1144_v35 = vmul.f32 %v2620_v24, %v1142_v3  ;;  %vm1149_vm0 = vweird.f32 %v2620_v24  ;;  %vm1153_vm3 = vcmp.eq.f32.partialorder %v1152_v22, 8.507059e+37  ;;  %v1174_v3 = vand.u32 2147483648, %v4941_v29  ;;  %v4981_v22 = vld [vmem:[#allocation4 + $0x118] sm:$0xff] }
 0x2ee   :  { %v1054_v28 = vadd.f32 %v2618_v34, %v1053_v19  ;;  %vm1150_vm2 = vmor %vm1148_vm1, %vm1149_vm0  ;;  %v1167_v16 = vadd.f32 %v4945_v54, %v1166_v17 }
 0x2ef   :  { %v1145_v39 = vsub.f32 1.0, %v1144_v35 }
 0x2f0   :  { %v1058_v25 = vsel %vm1057_vm14, %v2618_v34, %v1054_v28  ;;  %v1136_v34 = vadd.f32 %v1135_v0, %v3850_v49  ;;  %v4968_v0 = vld [vmem:[#allocation4 + $0x178] sm:$0xff] }
 0x2f1   :  { %v1063_v26 = vsel %vm1060_vm15, %v1062_v46, %v1058_v25  ;;  %v1146_v37 = vmul.f32 %v2620_v24, %v1145_v39  ;;  %v1175_v46 = vor.u32 1.1754944e-38, %v1174_v3  ;;  %v4972_v39 = vld [vmem:[#allocation4 + $0x160] sm:$0xff]  ;;  %v4975_v25 = vld [vmem:[#allocation4 + $0x148] sm:$0xff] }
 0x2f2   :  { %v2622_v12 = vpop.eup %2621  ;;  %v1068_v33 = vsub.f32 1.0, %v1063_v26  ;;  %v1070_v59 = vmul.f32 %v1063_v26, %v4671_v20  ;;  %v1172_v20 = vand.u32 2147483647, %v4941_v29  ;;  %v5053_v3 = vld [vmem:[#allocation4 + $0x88] sm:$0xff] }
 0x2f3   :  { %v1147_v41 = vadd.f32 %v2620_v24, %v1146_v37  ;;  %7054 = vst [vmem:[#allocation41_spill] sm:$0xff] %v5053_v3 }
 0x2f4   :  { %v1069_v55 = vmul.f32 %v2622_v12, %v1068_v33  ;;  %vm1173_vm7 = vcmp.eq.f32.partialorder %v1172_v20, 8.507059e+37  ;;  %v4985_v33 = vld [vmem:[#allocation4 + $0x100] sm:$0xff]  ;;  %v5062_v20 = vld [vmem:[#allocation4 + $0x108] sm:$0xff] }
 0x2f5   :  { %v1151_v19 = vsel %vm1150_vm2, %v2620_v24, %v1147_v41  ;;  %v1171_v24 = vsel %vm1170_vm6, %v4945_v54, %v1167_v16  ;;  %v5049_v16 = vld [vmem:[#allocation4 + $0x120] sm:$0xff] }
 0x2f6   :  { %v1156_v35 = vsel %vm1153_vm3, %v1155_v51, %v1151_v19  ;;  %v4958_v37 = vadd.f32 %v1070_v59, %v1069_v55  ;;  %v1176_v29 = vsel %vm1173_vm7, %v1175_v46, %v1171_v24  ;;  %v5001_v51 = vld [vmem:[#allocation4 + $0x168] sm:$0xff]  ;;  %v5011_v59 = vld [vmem:[%s6397_s1 + $0x160] sm:$0xff]  ;;  %v5018_v19 = vld [vmem:[#allocation4 + $0xb8] sm:$0xff] }
 0x2f7   :  { %v1178_v28 = vmul.f32 %v1156_v35, %v1136_v34  ;;  %v1181_v12 = vsub.f32 1.0, %v1176_v29  ;;  %v1183_v17 = vmul.f32 %v1176_v29, %v4683_v53  ;;  %v4998_v53 = vld [vmem:[%s6397_s1 + $0x178] sm:$0xff]  ;;  %v5014_v34 = vld [vmem:[#allocation4 + $0x150] sm:$0xff]  ;;  %v5031_v35 = vld [vmem:[#allocation4 + $0xa0] sm:$0xff] }
 0x2f8   :  { %2508 = vst [vmem:[%s6403_s7 + $0x10] sm:$0xff] %v4958_v37  ;;  %1261 = vmatmul.f32.vlgmr.msra.gmra.mxu1 %v4958_v37  ;;  %v5075_v24 = vld [vmem:[#allocation4 + $0xf0] sm:$0xff]  ;;  %v5079_v46 = vld [vmem:[#allocation4 + $0x58] sm:$0xff] }
 0x2f9   :  { %v1179_v41 = vadd.f32 %v2511_v23, %v1178_v28  ;;  %1505 = vmatpush.msra.mxu1 %v4968_v0  ;;  %v5027_v23 = vld [vmem:[#allocation4 + $0x138] sm:$0xff]  ;;  %v5059_v28 = vld [vmem:[%s6397_s1 + $0x100] sm:$0xff]  ;;  %7056 = vst [vmem:[#allocation30_spill] sm:$0xff] %v5079_v46 }
 0x2fa   :  { %v5088_v29 = vld [vmem:[#allocation4 + $0xd8] sm:$0xff] }
 0x2fb   :  { %2623 = vtanh.f32 %v1179_v41  ;;  %1506 = vmatpush.msra.mxu1 %v4972_v39  ;;  %v5066_v41 = vld [vmem:[#allocation4 + $0x70] sm:$0xff] }
 0x2fc   :  { %7055 = vst [vmem:[#allocation26_spill] sm:$0xff] %v5066_v41 }
 0x2fd   :  { %1507 = vmatpush.msra.mxu1 %v4975_v25 }
 0x2ff   :  { %1508 = vmatpush.msra.mxu1 %v4978_v36 }
 0x301   :  { %v2624_v26 = vpop.eup %2623  ;;  %1509 = vmatpush.msra.mxu1 %v4981_v22 }
 0x302   :  { %v1182_v54 = vmul.f32 %v2624_v26, %v1181_v12  ;;  %v5092_v12 = vld [vmem:[#allocation4 + $0x40] sm:$0xff] }
 0x303   :  { %1510 = vmatpush.msra.mxu1 %v4985_v33  ;;  %7057 = vst [vmem:[#allocation61_spill] sm:$0xff] %v5092_v12  ;;  %v5101_v26 = vld [vmem:[#allocation4 + $0xc0] sm:$0xff] }
 0x304   :  { %v4988_v55 = vadd.f32 %v1183_v17, %v1182_v54  ;;  %v5105_v54 = vld [vmem:[#allocation4 + $0x28] sm:$0xff] }
 0x305   :  { %1511 = vmatpush.msra.mxu1 %v4260_v7  ;;  %v5005_v7 = vld [vmem:[#allocation4 + $0xd0] sm:$0xff]  ;;  %7058 = vst [vmem:[#allocation29_spill] sm:$0xff] %v5105_v54  ;;  %v5114_v17 = vld [vmem:[#allocation4 + $0xa8] sm:$0xff] }
 0x306   :  { %1201 = vmatmul.f32.vlgmr.msrb.gmra.mxu2 %v4988_v55  ;;  %1221 = vmatmul.f32.vlgmr.msrb.gmra.mxu3 %v4988_v55 }
 0x307   :  { %1241 = vmatmul.f32.vlgmr.msra.gmra.mxu0 %v4988_v55  ;;  %1394 = vmatmul.f32.vlgmr.msrb.gmra.mxu1 %v4988_v55 }
 0x308   :  { %1398 = vmatpush.msrb.mxu2 %v4998_v53  ;;  %1465 = vmatpush.msrb.mxu3 %v5001_v51 }
 0x309   :  { %1485 = vmatpush.msra.mxu0 %v4692_v32  ;;  %1512 = vmatpush.msra.mxu1 %v5005_v7  ;;  %v5024_v32 = vld [vmem:[%s6397_s1 + $0x148] sm:$0xff] }
 0x30a   :  { %1399 = vmatpush.msrb.mxu2 %v5011_v59  ;;  %1466 = vmatpush.msrb.mxu3 %v5014_v34 }
 0x30b   :  { %1486 = vmatpush.msra.mxu0 %v4698_v27  ;;  %1513 = vmatpush.msra.mxu1 %v5018_v19  ;;  %v5037_v27 = vld [vmem:[%s6397_s1 + $0x130] sm:$0xff] }
 0x30c   :  { %1400 = vmatpush.msrb.mxu2 %v5024_v32  ;;  %1467 = vmatpush.msrb.mxu3 %v5027_v23 }
 0x30d   :  { %1487 = vmatpush.msra.mxu0 %v4704_v47  ;;  %1514 = vmatpush.msra.mxu1 %v5031_v35  ;;  %v5046_v47 = vld [vmem:[%s6397_s1 + $0x118] sm:$0xff] }
 0x30e   :  { %1401 = vmatpush.msrb.mxu2 %v5037_v27  ;;  %1301 = vmatmul.f32.vlgmr.msra.gmra.mxu3 %v4958_v37 }
 0x30f   :  { %1281 = vmatmul.f32.vlgmr.msra.gmra.mxu2 %v4958_v37  ;;  %1374 = vmatmul.f32.vlgmr.msrb.gmra.mxu0 %v4988_v55 }
 0x310   :  { %1402 = vmatpush.msrb.mxu2 %v5046_v47  ;;  %1468 = vmatpush.msrb.mxu3 %v5049_v16 }
 0x311   :  { %1488 = vmatpush.msra.mxu0 %v4714_v60  ;;  %1515 = vmatpush.msra.mxu1 %v5053_v3  ;;  %v5072_v60 = vld [vmem:[%s6397_s1 + $0xe8] sm:$0xff] }
 0x312   :  { %1403 = vmatpush.msrb.mxu2 %v5059_v28  ;;  %1469 = vmatpush.msrb.mxu3 %v5062_v20  ;;  %v5175_v3 = vld [vmem:[#allocation4 + $0x48] sm:$0xff] }
 0x313   :  { %1489 = vmatpush.msra.mxu0 %v4720_v57  ;;  %1516 = vmatpush.msra.mxu1 %v5066_v41  ;;  %v5085_v57 = vld [vmem:[%s6397_s1 + $0xd0] sm:$0xff]  ;;  %v5159_v41 = vld [vmem:[#allocation4 + $0x60] sm:$0xff]  ;;  %7066 = vst [vmem:[#allocation46_spill] sm:$0xff] %v5175_v3 }
 0x314   :  { %1404 = vmatpush.msrb.mxu2 %v5072_v60  ;;  %1470 = vmatpush.msrb.mxu3 %v5075_v24  ;;  %7063 = vst [vmem:[#allocation45_spill] sm:$0xff] %v5159_v41 }
 0x315   :  { %1490 = vmatpush.msra.mxu0 %v4726_v11  ;;  %1517 = vmatpush.msra.mxu1 %v5079_v46  ;;  %v5098_v11 = vld [vmem:[%s6397_s1 + $0xb8] sm:$0xff] }
 0x316   :  { %1405 = vmatpush.msrb.mxu2 %v5085_v57  ;;  %1471 = vmatpush.msrb.mxu3 %v5088_v29  ;;  %v5143_v46 = vld [vmem:[#allocation4 + $0x78] sm:$0xff] }
 0x317   :  { %1491 = vmatpush.msra.mxu0 %v4732_v52  ;;  %1518 = vmatpush.msra.mxu1 %v5092_v12  ;;  %v5111_v52 = vld [vmem:[%s6397_s1 + $0xa0] sm:$0xff]  ;;  %v5118_v12 = vld [vmem:[#allocation4 + $0x10] sm:$0xff] }
 0x318   :  { %1406 = vmatpush.msrb.mxu2 %v5098_v11  ;;  %1472 = vmatpush.msrb.mxu3 %v5101_v26  ;;  %7059 = vst [vmem:[#allocation34_spill] sm:$0xff] %v5118_v12 }
 0x319   :  { %1492 = vmatpush.msra.mxu0 %v4738_v8  ;;  %1519 = vmatpush.msra.mxu1 %v5105_v54  ;;  %v5124_v8 = vld [vmem:[%s6397_s1 + $0x88] sm:$0xff]  ;;  %v5127_v54 = vld [vmem:[#allocation4 + $0x90] sm:$0xff] }
 0x31a   :  { %1407 = vmatpush.msrb.mxu2 %v5111_v52  ;;  %1473 = vmatpush.msrb.mxu3 %v5114_v17 }
 0x31b   :  { %1493 = vmatpush.msra.mxu0 %v4744_v42  ;;  %1520 = vmatpush.msra.mxu1 %v5118_v12  ;;  %v5134_v42 = vld [vmem:[%s6397_s1 + $0x168] sm:$0xff]  ;;  %v5140_v12 = vld [vmem:[%s6397_s1 + $0x70] sm:$0xff] }
 0x31c   :  { %1408 = vmatpush.msrb.mxu2 %v5124_v8  ;;  %1474 = vmatpush.msrb.mxu3 %v5127_v54  ;;  %7060 = vst [vmem:[#allocation44_spill] sm:$0xff] %v5134_v42 }
 0x31d   :  { %1494 = vmatpush.msra.mxu0 %v4750_v62  ;;  %1638 = vmatpush.msrb.mxu1 %v5134_v42  ;;  %v5150_v62 = vld [vmem:[%s6397_s1 + $0x150] sm:$0xff]  ;;  %v5156_v42 = vld [vmem:[%s6397_s1 + $0x58] sm:$0xff] }
 0x31e   :  { %1409 = vmatpush.msrb.mxu2 %v5140_v12  ;;  %1475 = vmatpush.msrb.mxu3 %v5143_v46  ;;  %7061 = vst [vmem:[#allocation33_spill] sm:$0xff] %v5150_v62 }
 0x31f   :  { %1495 = vmatpush.msra.mxu0 %v4756_v14  ;;  %1639 = vmatpush.msrb.mxu1 %v5150_v62  ;;  %7062 = vst [vmem:[#allocation49_spill] sm:$0xff] %v5156_v42  ;;  %v5166_v14 = vld [vmem:[%s6397_s1 + $0x138] sm:$0xff]  ;;  %v5172_v62 = vld [vmem:[%s6397_s1 + $0x40] sm:$0xff] }
 0x320   :  { %1410 = vmatpush.msrb.mxu2 %v5156_v42  ;;  %1476 = vmatpush.msrb.mxu3 %v5159_v41  ;;  %7064 = vst [vmem:[#allocation37_spill] sm:$0xff] %v5166_v14 }
 0x321   :  { %1496 = vmatpush.msra.mxu0 %v4762_v58  ;;  %1640 = vmatpush.msrb.mxu1 %v5166_v14  ;;  %7065 = vst [vmem:[#allocation51_spill] sm:$0xff] %v5172_v62  ;;  %v5182_v58 = vld [vmem:[%s6397_s1 + $0x120] sm:$0xff]  ;;  %v5188_v14 = vld [vmem:[%s6397_s1 + $0x28] sm:$0xff] }
 0x322   :  { %1411 = vmatpush.msrb.mxu2 %v5172_v62  ;;  %1477 = vmatpush.msrb.mxu3 %v5175_v3  ;;  %7067 = vst [vmem:[#allocation38_spill] sm:$0xff] %v5182_v58  ;;  %v5191_v62 = vld [vmem:[#allocation4 + $0x30] sm:$0xff]  ;;  %v7137_v3 = vld [vmem:[#allocation23_spill] sm:$0xff] }
 0x323   :  { %1497 = vmatpush.msra.mxu0 %v4768_v40  ;;  %1641 = vmatpush.msrb.mxu1 %v5182_v58  ;;  %7068 = vst [vmem:[#allocation53_spill] sm:$0xff] %v5188_v14  ;;  %v5198_v40 = vld [vmem:[%s6397_s1 + $0x108] sm:$0xff]  ;;  %v5204_v58 = vld [vmem:[%s6397_s1 + $0x10] sm:$0xff] }
 0x324   :  { %1412 = vmatpush.msrb.mxu2 %v5188_v14  ;;  %7069 = vst [vmem:[#allocation39_spill] sm:$0xff] %v5191_v62  ;;  %1478 = vmatpush.msrb.mxu3 %v5191_v62  ;;  %v5207_v14 = vld [vmem:[#allocation4 + $0x18] sm:$0xff]  ;;  %v5218_v62 = vld [vmem:[#allocation6 + $0x170] sm:$0xff] }
 0x325   :  { %1498 = vmatpush.msra.mxu0 %v4774_v9  ;;  %7070 = vst [vmem:[#allocation55_spill] sm:$0xff] %v5198_v40  ;;  %1642 = vmatpush.msrb.mxu1 %v5198_v40  ;;  %v5212_v9 = vld [vmem:[#allocation6 + $0x168] sm:$0xff]  ;;  %v5215_v40 = vld [vmem:[#allocation4] sm:$0xff] }
 0x326   :  { %7071 = vst [vmem:[#allocation57_spill] sm:$0xff] %v5204_v58  ;;  %1413 = vmatpush.msrb.mxu2 %v5204_v58  ;;  %1479 = vmatpush.msrb.mxu3 %v5207_v14  ;;  %v5222_v58 = vld [vmem:[#allocation6 + $0x150] sm:$0xff] }
 0x327   :  { %7072 = vst [vmem:[#allocation40_spill] sm:$0xff] %v5207_v14  ;;  %1414 = vmatmul.f32.vlgmr.msrb.gmra.mxu2 %v4988_v55  ;;  %1499 = vmatpush.msra.mxu0 %v4781_v30  ;;  %v5226_v30 = vld [vmem:[#allocation6 + $0x158] sm:$0xff] }
 0x328   :  { %7073 = vst [vmem:[#allocation42_spill] sm:$0xff] %v5212_v9  ;;  %1525 = vmatpush.msra.mxu2 %v5212_v9  ;;  %1480 = vmatpush.msrb.mxu3 %v5215_v40 }
 0x329   :  { %7074 = vst [vmem:[#allocation47_spill] sm:$0xff] %v5215_v40  ;;  %1500 = vmatpush.msra.mxu0 %v4787_v45  ;;  %v5232_v40 = vld [vmem:[%s6397_s1 + $0xf0] sm:$0xff]  ;;  %v5239_v45 = vld [vmem:[#allocation6 + $0x140] sm:$0xff] }
 0x32a   :  { %7075 = vst [vmem:[#allocation59_spill] sm:$0xff] %v5218_v62  ;;  %1545 = vmatpush.msra.mxu3 %v5218_v62  ;;  %1526 = vmatpush.msra.mxu2 %v5222_v58  ;;  %v5235_v62 = vld [vmem:[#allocation6 + $0x138] sm:$0xff] }
 0x32b   :  { %7076 = vst [vmem:[#allocation63_spill] sm:$0xff] %v5222_v58  ;;  %1565 = vmatpush.msrb.mxu0 %v4791_v38  ;;  %1643 = vmatpush.msrb.mxu1 %v5232_v40  ;;  %v5245_v38 = vld [vmem:[%s6397_s1 + $0xd8] sm:$0xff] }
 0x32c   :  { %7077 = vst [vmem:[#allocation73_spill] sm:$0xff] %v5226_v30  ;;  %1546 = vmatpush.msra.mxu3 %v5226_v30  ;;  %1527 = vmatpush.msra.mxu2 %v5235_v62  ;;  %v5248_v30 = vld [vmem:[#allocation6 + $0x120] sm:$0xff] }
 0x32d   :  { %7078 = vst [vmem:[#allocation43_spill] sm:$0xff] %v5232_v40  ;;  %1566 = vmatpush.msrb.mxu0 %v4797_v43  ;;  %1644 = vmatpush.msrb.mxu1 %v5245_v38  ;;  %v5252_v40 = vld [vmem:[#allocation6 + $0x128] sm:$0xff]  ;;  %v5258_v43 = vld [vmem:[%s6397_s1 + $0xc0] sm:$0xff] }
 0x32e   :  { %7079 = vst [vmem:[#allocation67_spill] sm:$0xff] %v5235_v62  ;;  %1547 = vmatpush.msra.mxu3 %v5239_v45  ;;  %1528 = vmatpush.msra.mxu2 %v5248_v30 }
 0x32f   :  { %7080 = vst [vmem:[#allocation52_spill] sm:$0xff] %v5239_v45  ;;  %1567 = vmatpush.msrb.mxu0 %v4803_v13  ;;  %1645 = vmatpush.msrb.mxu1 %v5258_v43  ;;  %v5261_v45 = vld [vmem:[#allocation6 + $0x108] sm:$0xff] }
 0x330   :  { %7081 = vst [vmem:[#allocation65_spill] sm:$0xff] %v5245_v38  ;;  %1548 = vmatpush.msra.mxu3 %v5252_v40  ;;  %1529 = vmatpush.msra.mxu2 %v5261_v45  ;;  %v5265_v38 = vld [vmem:[#allocation6 + $0x110] sm:$0xff]  ;;  %v5271_v13 = vld [vmem:[%s6397_s1 + $0xa8] sm:$0xff] }
 0x331   :  { %7082 = vst [vmem:[#allocation68_spill] sm:$0xff] %v5248_v30  ;;  %1568 = vmatpush.msrb.mxu0 %v4809_v31  ;;  %1646 = vmatpush.msrb.mxu1 %v5271_v13  ;;  %v5284_v31 = vld [vmem:[%s6397_s1 + $0x90] sm:$0xff] }
 0x332   :  { %7083 = vst [vmem:[#allocation80_spill] sm:$0xff] %v5252_v40  ;;  %1549 = vmatpush.msra.mxu3 %v5265_v38  ;;  %v5274_v40 = vld [vmem:[#allocation6 + $0xf0] sm:$0xff] }
 0x333   :  { %7084 = vst [vmem:[#allocation31_spill] sm:$0xff] %v5258_v43  ;;  %1530 = vmatpush.msra.mxu2 %v5274_v40  ;;  %1569 = vmatpush.msrb.mxu0 %v4815_v61  ;;  %v5278_v43 = vld [vmem:[#allocation6 + $0xf8] sm:$0xff] }
 0x334   :  { %7085 = vst [vmem:[#allocation69_spill] sm:$0xff] %v5261_v45  ;;  %1550 = vmatpush.msra.mxu3 %v5278_v43  ;;  %1647 = vmatpush.msrb.mxu1 %v5284_v31  ;;  %v5297_v61 = vld [vmem:[%s6397_s1 + $0x78] sm:$0xff] }
 0x335   :  { %7086 = vst [vmem:[#allocation58_spill] sm:$0xff] %v5265_v38  ;;  %v5287_v38 = vld [vmem:[#allocation6 + $0xd8] sm:$0xff]  ;;  %1570 = vmatpush.msrb.mxu0 %v4821_v18  ;;  %v5310_v18 = vld [vmem:[%s6397_s1 + $0x60] sm:$0xff] }
 0x336   :  { %7087 = vst [vmem:[#allocation35_spill] sm:$0xff] %v5271_v13  ;;  %1531 = vmatpush.msra.mxu2 %v5287_v38  ;;  %v5291_v13 = vld [vmem:[#allocation6 + $0xe0] sm:$0xff]  ;;  %1648 = vmatpush.msrb.mxu1 %v5297_v61 }
 0x337   :  { %7088 = vst [vmem:[#allocation48_spill] sm:$0xff] %v5274_v40  ;;  %1551 = vmatpush.msra.mxu3 %v5291_v13  ;;  %1571 = vmatpush.msrb.mxu0 %v4827_v10  ;;  %v5323_v10 = vld [vmem:[%s6397_s1 + $0x48] sm:$0xff] }
 0x338   :  { %7089 = vst [vmem:[#allocation60_spill] sm:$0xff] %v5278_v43  ;;  %v5300_v43 = vld [vmem:[#allocation6 + $0xc0] sm:$0xff]  ;;  %1649 = vmatpush.msrb.mxu1 %v5310_v18 }
 0x339   :  { %7090 = vst [vmem:[#allocation71_spill] sm:$0xff] %v5284_v31  ;;  %1532 = vmatpush.msra.mxu2 %v5300_v43  ;;  %v5304_v31 = vld [vmem:[#allocation6 + $0xc8] sm:$0xff]  ;;  %1572 = vmatpush.msrb.mxu0 %v4833_v63  ;;  %v5336_v63 = vld [vmem:[%s6397_s1 + $0x30] sm:$0xff] }
 0x33a   :  { %7091 = vst [vmem:[#allocation75_spill] sm:$0xff] %v5287_v38  ;;  %1552 = vmatpush.msra.mxu3 %v5304_v31  ;;  %1650 = vmatpush.msrb.mxu1 %v5323_v10 }
 0x33b   :  { %7092 = vst [vmem:[#allocation62_spill] sm:$0xff] %v5291_v13  ;;  %v5313_v13 = vld [vmem:[#allocation6 + $0xa8] sm:$0xff]  ;;  %1573 = vmatpush.msrb.mxu0 %v4839_v15  ;;  %v5347_v15 = vld [vmem:[%s6397_s1 + $0x18] sm:$0xff] }
 0x33c   :  { %7093 = vst [vmem:[#allocation50_spill] sm:$0xff] %v5297_v61  ;;  %1533 = vmatpush.msra.mxu2 %v5313_v13  ;;  %v5317_v61 = vld [vmem:[#allocation6 + $0xb0] sm:$0xff]  ;;  %1651 = vmatpush.msrb.mxu1 %v5336_v63 }
 0x33d   :  { %7094 = vst [vmem:[#allocation54_spill] sm:$0xff] %v5300_v43  ;;  %1553 = vmatpush.msra.mxu3 %v5317_v61  ;;  %1574 = vmatpush.msrb.mxu0 %v4845_v4  ;;  %v5358_v4 = vld [vmem:[%s6397_s1] sm:$0xff] }
 0x33e   :  { %7095 = vst [vmem:[#allocation64_spill] sm:$0xff] %v5304_v31  ;;  %v5326_v31 = vld [vmem:[#allocation6 + $0x90] sm:$0xff]  ;;  %1652 = vmatpush.msrb.mxu1 %v5347_v15 }
 0x33f   :  { %7096 = vst [vmem:[#allocation77_spill] sm:$0xff] %v5310_v18  ;;  %1534 = vmatpush.msra.mxu2 %v5326_v31  ;;  %v5330_v18 = vld [vmem:[#allocation6 + $0x98] sm:$0xff]  ;;  %1575 = vmatpush.msrb.mxu0 %v4853_v56 }
 0x340   :  { %7097 = vst [vmem:[#allocation81_spill] sm:$0xff] %v5313_v13  ;;  %1554 = vmatpush.msra.mxu3 %v5330_v18  ;;  %1653 = vmatpush.msrb.mxu1 %v5358_v4  ;;  %v5371_v56 = vld [vmem:[#allocation6 + $0x18] sm:$0xff]  ;;  %v7133_v13 = vld [vmem:[#allocation78_spill] sm:$0xff] }
 0x341   :  { %7098 = vst [vmem:[#allocation66_spill] sm:$0xff] %v5317_v61  ;;  %v5339_v61 = vld [vmem:[#allocation6 + $0x78] sm:$0xff]  ;;  %1576 = vmatpush.msrb.mxu0 %v4861_v44  ;;  %v7111_v44 = vld [vmem:[#allocation10_spill] sm:$0xff] }
 0x342   :  { %7099 = vst [vmem:[#allocation56_spill] sm:$0xff] %v5323_v10  ;;  %1535 = vmatpush.msra.mxu2 %v5339_v61  ;;  %1555 = vmatpush.msra.mxu3 %v4848_v5  ;;  %v5350_v10 = vld [vmem:[#allocation6 + $0x60] sm:$0xff]  ;;  %v5361_v5 = vld [vmem:[#allocation6 + $0x48] sm:$0xff] }
 0x343   :  { %7100 = vst [vmem:[#allocation87_spill] sm:$0xff] %v5326_v31  ;;  %1577 = vmatpush.msrb.mxu0 %v4869_v1  ;;  %v7114_v1 = vld [vmem:[#allocation91_spill] sm:$0xff] }
 0x344   :  { %7101 = vst [vmem:[#allocation82_spill] sm:$0xff] %v5330_v18  ;;  %1536 = vmatpush.msra.mxu2 %v5350_v10  ;;  %1556 = vmatpush.msra.mxu3 %v4856_v21  ;;  %v5376_v21 = vld [vmem:[#allocation6] sm:$0xff] }
 0x345   :  { %7102 = vst [vmem:[#allocation12_spill] sm:$0xff] %v5336_v63  ;;  %1578 = vmatpush.msrb.mxu0 %v4877_v6  ;;  %v7116_v63 = vld [vmem:[#allocation27_spill] sm:$0xff]  ;;  %v5389_v6 = vld [vmem:[%s6397_s1 + $0x110] sm:$0xff] }
 0x346   :  { %7103 = vst [vmem:[#allocation83_spill] sm:$0xff] %v5339_v61  ;;  %1537 = vmatpush.msra.mxu2 %v5361_v5  ;;  %1557 = vmatpush.msra.mxu3 %v4864_v2  ;;  %v7112_v2 = vld [vmem:[#allocation90_spill] sm:$0xff] }
 0x347   :  { %7104 = vst [vmem:[#allocation13_spill] sm:$0xff] %v5347_v15  ;;  %v5366_v15 = vld [vmem:[#allocation6 + $0x30] sm:$0xff]  ;;  %1579 = vmatpush.msrb.mxu0 %v7111_v44  ;;  %v5419_v44 = vld [vmem:[%s6397_s1 + $0x98] sm:$0xff] }
 0x348   :  { %7105 = vst [vmem:[#allocation84_spill] sm:$0xff] %v5350_v10  ;;  %1538 = vmatpush.msra.mxu2 %v5366_v15  ;;  %1558 = vmatpush.msra.mxu3 %v4872_v48  ;;  %v7115_v48 = vld [vmem:[#allocation21_spill] sm:$0xff]  ;;  %v7132_v10 = vld [vmem:[#allocation11_spill] sm:$0xff] }
 0x349   :  { %7106 = vst [vmem:[#allocation14_spill] sm:$0xff] %v5358_v4  ;;  %v7113_v4 = vld [vmem:[#allocation18_spill] sm:$0xff]  ;;  %1580 = vmatpush.msrb.mxu0 %v7114_v1  ;;  %v5431_v1 = vld [vmem:[%s6397_s1 + $0x68] sm:$0xff] }
 0x34a   :  { %7107 = vst [vmem:[#allocation85_spill] sm:$0xff] %v5361_v5  ;;  %1539 = vmatpush.msra.mxu2 %v5371_v56  ;;  %1559 = vmatpush.msra.mxu3 %v4880_v50  ;;  %v5395_v50 = vld [vmem:[%s6397_s1 + $0xf8] sm:$0xff] }
 0x34b   :  { %7108 = vst [vmem:[#allocation86_spill] sm:$0xff] %v5366_v15  ;;  %v7131_v15 = vld [vmem:[#allocation72_spill] sm:$0xff] }
 0x34c   :  { %7109 = vst [vmem:[#allocation15_spill] sm:$0xff] %v5371_v56  ;;  %1540 = vmatpush.msra.mxu2 %v5376_v21  ;;  %1560 = vmatpush.msra.mxu3 %v7113_v4  ;;  %v7117_v56 = vld [vmem:[#allocation76_spill] sm:$0xff]  ;;  %v5407_v4 = vld [vmem:[%s6397_s1 + $0xc8] sm:$0xff] }
 0x34d   :  { %7110 = vst [vmem:[#allocation16_spill] sm:$0xff] %v5376_v21 }
 0x34e   :  { %1658 = vmatpush.msrb.mxu2 %v7112_v2  ;;  %7118 = vst [vmem:[#allocation17_spill] sm:$0xff] %v5389_v6  ;;  %v5425_v2 = vld [vmem:[%s6397_s1 + $0x80] sm:$0xff] }
 0x34f   :  { %7119 = vst [vmem:[#allocation19_spill] sm:$0xff] %v5395_v50 }
 0x350   :  { %1659 = vmatpush.msrb.mxu2 %v7115_v48  ;;  %7121 = vst [vmem:[#allocation25_spill] sm:$0xff] %v5407_v4  ;;  %v5437_v48 = vld [vmem:[%s6397_s1 + $0x50] sm:$0xff] }
 0x351   :  { %7123 = vst [vmem:[#allocation32_spill] sm:$0xff] %v5419_v44 }
 0x352   :  { %1660 = vmatpush.msrb.mxu2 %v7116_v63  ;;  %v5401_v63 = vld [vmem:[%s6397_s1 + $0xe0] sm:$0xff]  ;;  %7124 = vst [vmem:[#allocation36_spill] sm:$0xff] %v5425_v2 }
 0x353   :  { %7120 = vst [vmem:[#allocation22_spill] sm:$0xff] %v5401_v63 }
 0x354   :  { %1661 = vmatpush.msrb.mxu2 %v7117_v56  ;;  %v5413_v56 = vld [vmem:[%s6397_s1 + $0xb0] sm:$0xff]  ;;  %7125 = vst [vmem:[#allocation70_spill] sm:$0xff] %v5431_v1 }
 0x355   :  { %7122 = vst [vmem:[#allocation28_spill] sm:$0xff] %v5413_v56 }
 0x356   :  { %1662 = vmatpush.msrb.mxu2 %v5389_v6  ;;  %7126 = vst [vmem:[#allocation88_spill] sm:$0xff] %v5437_v48 }
 0x358   :  { %1663 = vmatpush.msrb.mxu2 %v5395_v50 }
 0x35a   :  { %1664 = vmatpush.msrb.mxu2 %v5401_v63  ;;  %v7130_v63 = vld [vmem:[#allocation79_spill] sm:$0xff] }
 0x35c   :  { %1665 = vmatpush.msrb.mxu2 %v5407_v4 }
 0x35e   :  { %1666 = vmatpush.msrb.mxu2 %v5413_v56 }
 0x360   :  { %1667 = vmatpush.msrb.mxu2 %v5419_v44  ;;  %v5443_v44 = vld [vmem:[%s6397_s1 + $0x38] sm:$0xff] }
 0x361   :  { %7127 = vst [vmem:[#allocation89_spill] sm:$0xff] %v5443_v44 }
 0x362   :  { %1668 = vmatpush.msrb.mxu2 %v5425_v2  ;;  %v5449_v2 = vld [vmem:[%s6397_s1 + $0x20] sm:$0xff] }
 0x363   :  { %7128 = vst [vmem:[#allocation10_spill] sm:$0xff] %v5449_v2 }
 0x364   :  { %1669 = vmatpush.msrb.mxu2 %v5431_v1  ;;  %v5455_v1 = vld [vmem:[%s6397_s1 + $0x8] sm:$0xff] }
 0x365   :  { %7129 = vst [vmem:[#allocation90_spill] sm:$0xff] %v5455_v1 }
 0x366   :  { %1670 = vmatpush.msrb.mxu2 %v5437_v48 }
 0x368   :  { %1671 = vmatpush.msrb.mxu2 %v5443_v44  ;;  %v2518_v44 = vld [vmem:[%s6396_s0 + $0x68] sm:$0xff] }
 0x36a   :  { %1672 = vmatpush.msrb.mxu2 %v5449_v2 }
 0x36c   :  { %1673 = vmatpush.msrb.mxu2 %v5455_v1  ;;  %v2517_v1 = vld [vmem:[%s6396_s0 + $0x60] sm:$0xff] }
 0x375   :  { %v1262_v48 = vpop.f32.mrf.mxu1 }
 0x376   :  { %v1263_v5 = vadd.f32 %v1262_v48, %v7131_v15 }
 0x384   :  { %v5458_v56 = vpop.f32.mrf.mxu0  ;;  %v1395_v4 = vpop.f32.mrf.mxu1 }
 0x385   :  { %v1396_v50 = vadd.f32 %v1395_v4, %v7130_v63  ;;  %v7134_v63 = vld [vmem:[#allocation20_spill] sm:$0xff] }
 0x387   :  { %v1438_v6 = vadd.f32 %v2518_v44, %v1396_v50 }
 0x389   :  { %v2521_v21 = vmul.f32 -1.442695, %v1438_v6  ;;  %v1202_v2 = vpop.f32.mrf.mxu2  ;;  %v1222_v4 = vpop.f32.mrf.mxu3 }
 0x38a   :  { %v1203_v18 = vadd.f32 %v1202_v2, %v7132_v10  ;;  %v1223_v48 = vadd.f32 %v1222_v4, %v7134_v63  ;;  %v7135_v2 = vld [vmem:[#allocation24_spill] sm:$0xff] }
 0x38b   :  { %2625 = vpow2.f32 %v2521_v21 }
 0x38c   :  { %v1305_v61 = vadd.f32 %v1263_v5, %v1203_v18  ;;  %v1375_v31 = vpop.f32.mrf.mxu0 }
 0x38d   :  { %v1376_v43 = vadd.f32 %v1375_v31, %v7133_v13  ;;  %v7136_v13 = vld [vmem:[#allocation74_spill] sm:$0xff] }
 0x38e   :  { %v2514_v38 = vmul.f32 -1.442695, %v1305_v61 }
 0x38f   :  { %v1418_v40 = vadd.f32 %v2517_v1, %v1376_v43 }
 0x390   :  { %2627 = vpow2.f32 %v2514_v38 }
 0x391   :  { %v2626_v50 = vpop.eup %2625  ;;  %v2520_v6 = vmul.f32 -1.442695, %v1418_v40 }
 0x392   :  { %v1282_v44 = vpop.f32.mrf.mxu2  ;;  %v5472_v18 = vadd.f32 1.0, %v2626_v50 }
 0x393   :  { %2629 = vpow2.f32 %v2520_v6  ;;  %v1283_v21 = vadd.f32 %v1282_v44, %v7135_v2 }
 0x394   :  { %2631 = vrcp.f32 %v5472_v18  ;;  %vm1448_vm2 = vweird.f32 %v5472_v18 }
 0x395   :  { %v1325_v5 = vadd.f32 %v1283_v21, %v1223_v48  ;;  %v1302_v21 = vpop.f32.mrf.mxu3 }
 0x396   :  { %v2628_v10 = vpop.eup %2627  ;;  %v1303_v30 = vadd.f32 %v1302_v21, %v7136_v13 }
 0x397   :  { %v1309_v15 = vadd.f32 1.0, %v2628_v10  ;;  %v2515_v45 = vmul.f32 -1.442695, %v1325_v5 }
 0x399   :  { %v2630_v31 = vpop.eup %2629  ;;  %2633 = vrcp.f32 %v1309_v15  ;;  %v1319_v10 = vand.u32 2147483647, %v1309_v15  ;;  %v1321_v48 = vand.u32 2147483648, %v1309_v15  ;;  %vm1315_vm9 = vweird.f32 %v1309_v15 }
 0x39a   :  { %v1422_v38 = vadd.f32 1.0, %v2630_v31  ;;  %2635 = vpow2.f32 %v2515_v45  ;;  %v5475_v40 = vpop.eup %2631 }
 0x39b   :  { %v1444_v4 = vmul.f32 %v5475_v40, %v5472_v18  ;;  %vm1320_vm11 = vcmp.eq.f32.partialorder %v1319_v10, 8.507059e+37  ;;  %v1322_v62 = vor.u32 1.1754944e-38, %v1321_v48  ;;  %vm1449_vm14 = vweird.f32 %v5475_v40 }
 0x39c   :  { %2637 = vrcp.f32 %v1422_v38  ;;  %v1434_v58 = vand.u32 2147483648, %v1422_v38  ;;  %vm1428_vm13 = vweird.f32 %v1422_v38  ;;  %v1454_v10 = vand.u32 2147483648, %v5472_v18  ;;  %vm5494_vm3 = vmor %vm1448_vm2, %vm1449_vm14 }
 0x39d   :  { %v1445_v45 = vsub.f32 1.0, %v1444_v4 }
 0x39f   :  { %v2634_v43 = vpop.eup %2633  ;;  %v1446_v41 = vmul.f32 %v5475_v40, %v1445_v45 }
 0x3a0   :  { %v2636_v61 = vpop.eup %2635  ;;  %v1311_v1 = vmul.f32 %v2634_v43, %v1309_v15  ;;  %vm1316_vm8 = vweird.f32 %v2634_v43 }
 0x3a1   :  { %v1329_v50 = vadd.f32 1.0, %v2636_v61  ;;  %vm1317_vm10 = vmor %vm1315_vm9, %vm1316_vm8 }
 0x3a2   :  { %v2638_v6 = vpop.eup %2637  ;;  %v1312_v44 = vsub.f32 1.0, %v1311_v1  ;;  %v1432_v1 = vand.u32 2147483647, %v1422_v38 }
 0x3a3   :  { %2639 = vrcp.f32 %v1329_v50  ;;  %v1424_v31 = vmul.f32 %v2638_v6, %v1422_v38  ;;  %vm1429_vm12 = vweird.f32 %v2638_v6  ;;  %v1339_v45 = vand.u32 2147483647, %v1329_v50 }
 0x3a4   :  { %v1313_v5 = vmul.f32 %v2634_v43, %v1312_v44  ;;  %v1243_v44 = vadd.f32 %v5458_v56, %v7137_v3  ;;  %vm1430_vm15 = vmor %vm1428_vm13, %vm1429_vm12  ;;  %vm1433_vm0 = vcmp.eq.f32.partialorder %v1432_v1, 8.507059e+37  ;;  %v1341_v56 = vand.u32 2147483648, %v1329_v50 }
 0x3a5   :  { %v1425_v63 = vsub.f32 1.0, %v1424_v31  ;;  %vm1335_vm4 = vweird.f32 %v1329_v50  ;;  %vm1340_vm6 = vcmp.eq.f32.partialorder %v1339_v45, 8.507059e+37  ;;  %v7159_v45 = vld [vmem:[#allocation73_spill] sm:$0xff] }
 0x3a6   :  { %v1314_v2 = vadd.f32 %v2634_v43, %v1313_v5 }
 0x3a7   :  { %v1426_v9 = vmul.f32 %v2638_v6, %v1425_v63 }
 0x3a8   :  { %v1318_v61 = vsel %vm1317_vm10, %v2634_v43, %v1314_v2  ;;  %v1435_v2 = vor.u32 1.1754944e-38, %v1434_v58  ;;  %v1452_v58 = vand.u32 2147483647, %v5472_v18 }
 0x3a9   :  { %v2640_v14 = vpop.eup %2639  ;;  %v1323_v4 = vsel %vm1320_vm11, %v1322_v62, %v1318_v61  ;;  %v1427_v42 = vadd.f32 %v2638_v6, %v1426_v9  ;;  %v2519_v62 = vld [vmem:[%s6396_s0 + $0x70] sm:$0xff] }
 0x3aa   :  { %v1331_v5 = vmul.f32 %v2640_v14, %v1329_v50  ;;  %v1345_v15 = vmul.f32 %v1323_v4, %v1303_v30  ;;  %v1415_v31 = vpop.f32.mrf.mxu2  ;;  %v1447_v30 = vadd.f32 %v5475_v40, %v1446_v41  ;;  %vm1336_vm1 = vweird.f32 %v2640_v14 }
 0x3ab   :  { %v1416_v63 = vadd.f32 %v1415_v31, %v3850_v49  ;;  %v1431_v21 = vsel %vm1430_vm15, %v2638_v6, %v1427_v42  ;;  %vm1337_vm5 = vmor %vm1335_vm4, %vm1336_vm1  ;;  %v1455_v4 = vor.u32 1.1754944e-38, %v1454_v10  ;;  %vm1453_vm7 = vcmp.eq.f32.partialorder %v1452_v58, 8.507059e+37  ;;  %v7158_v10 = vld [vmem:[#allocation67_spill] sm:$0xff]  ;;  %v5629_v58 = vld [vmem:[#allocation6 + $0x160] sm:$0xff] }
 0x3ac   :  { %v1332_v43 = vsub.f32 1.0, %v1331_v5  ;;  %v1346_v48 = vadd.f32 %v1345_v15, %v1243_v44  ;;  %v1436_v9 = vsel %vm1433_vm0, %v1435_v2, %v1431_v21  ;;  %v1342_v44 = vor.u32 1.1754944e-38, %v1341_v56  ;;  %v7163_v42 = vld [vmem:[#allocation33_spill] sm:$0xff] }
 0x3ad   :  { %v1458_v61 = vmul.f32 %v1436_v9, %v1416_v63  ;;  %v1451_v41 = vsel %vm5494_vm3, %v5475_v40, %v1447_v30  ;;  %v7157_v40 = vld [vmem:[#allocation34_spill] sm:$0xff]  ;;  %v5623_v9 = vld [vmem:[#allocation6 + $0x178] sm:$0xff]  ;;  %v7160_v30 = vld [vmem:[#allocation44_spill] sm:$0xff] }
 0x3ae   :  { %v1333_v38 = vmul.f32 %v2640_v14, %v1332_v43  ;;  %2641 = vtanh.f32 %v1346_v48  ;;  %v1456_v63 = vsel %vm1453_vm7, %v1455_v4, %v1451_v41  ;;  %v7166_v41 = vld [vmem:[#allocation37_spill] sm:$0xff]  ;;  %v7167_v4 = vld [vmem:[#allocation48_spill] sm:$0xff] }
 0x3af   :  { %v1459_v1 = vadd.f32 %v2519_v62, %v1458_v61  ;;  %v1461_v43 = vsub.f32 1.0, %v1456_v63  ;;  %v1463_v62 = vmul.f32 %v1456_v63, %v4988_v55  ;;  %v5530_v55 = vld [vmem:[#allocation4 + $0x140] sm:$0xff]  ;;  %v7162_v61 = vld [vmem:[#allocation52_spill] sm:$0xff] }
 0x3b0   :  { %v1334_v6 = vadd.f32 %v2640_v14, %v1333_v38  ;;  %v7161_v38 = vld [vmem:[#allocation68_spill] sm:$0xff] }
 0x3b1   :  { %2643 = vtanh.f32 %v1459_v1  ;;  %v7165_v1 = vld [vmem:[#allocation80_spill] sm:$0xff] }
 0x3b2   :  { %v1338_v5 = vsel %vm1337_vm5, %v2640_v14, %v1334_v6  ;;  %v7164_v6 = vld [vmem:[#allocation69_spill] sm:$0xff]  ;;  %v7171_v63 = vld [vmem:[#allocation60_spill] sm:$0xff] }
 0x3b3   :  { %v1343_v18 = vsel %vm1340_vm6, %v1342_v44, %v1338_v5  ;;  %v5635_v44 = vld [vmem:[#allocation6 + $0x148] sm:$0xff]  ;;  %v7168_v5 = vld [vmem:[#allocation58_spill] sm:$0xff] }
 0x3b4   :  { %v2642_v15 = vpop.eup %2641  ;;  %v1348_v31 = vsub.f32 1.0, %v1343_v18  ;;  %v1350_v50 = vmul.f32 %v1343_v18, %v4958_v37  ;;  %v5518_v37 = vld [vmem:[#allocation4 + $0x170] sm:$0xff] }
 0x3b5   :  { %v5641_v18 = vld [vmem:[#allocation6 + $0x130] sm:$0xff] }
 0x3b6   :  { %v1349_v2 = vmul.f32 %v2642_v15, %v1348_v31  ;;  %v7169_v15 = vld [vmem:[#allocation38_spill] sm:$0xff]  ;;  %v7170_v31 = vld [vmem:[#allocation75_spill] sm:$0xff] }
 0x3b7   :  { %v2644_v48 = vpop.eup %2643 }
 0x3b8   :  { %v5502_v21 = vadd.f32 %v1350_v50, %v1349_v2  ;;  %v1462_v56 = vmul.f32 %v2644_v48, %v1461_v43  ;;  %v5647_v2 = vld [vmem:[#allocation6 + $0x118] sm:$0xff]  ;;  %v7172_v50 = vld [vmem:[#allocation55_spill] sm:$0xff]  ;;  %v7173_v43 = vld [vmem:[#allocation54_spill] sm:$0xff] }
 0x3b9   :  { %v7174_v48 = vld [vmem:[#allocation62_spill] sm:$0xff] }
 0x3ba   :  { %2516 = vst [vmem:[%s6403_s7 + $0x18] sm:$0xff] %v5502_v21  ;;  %1541 = vmatmul.f32.vlgmr.msra.gmra.mxu2 %v5502_v21  ;;  %v5510_v14 = vadd.f32 %v1463_v62, %v1462_v56  ;;  %v5653_v56 = vld [vmem:[#allocation6 + $0x100] sm:$0xff]  ;;  %v7175_v62 = vld [vmem:[#allocation43_spill] sm:$0xff] }
 0x3bb   :  { %1785 = vmatpush.msra.mxu2 %v4968_v0  ;;  %v5524_v0 = vld [vmem:[#allocation4 + $0x158] sm:$0xff] }
 0x3bc   :  { %1481 = vmatmul.f32.vlgmr.msrb.gmra.mxu3 %v5510_v14  ;;  %1501 = vmatmul.f32.vlgmr.msra.gmra.mxu0 %v5510_v14 }
 0x3bd   :  { %1521 = vmatmul.f32.vlgmr.msra.gmra.mxu1 %v5510_v14  ;;  %1678 = vmatpush.msrb.mxu3 %v4998_v53  ;;  %v5552_v53 = vld [vmem:[#allocation4 + $0xf8] sm:$0xff] }
 0x3be   :  { %1745 = vmatpush.msra.mxu0 %v5001_v51  ;;  %1765 = vmatpush.msra.mxu1 %v5518_v37  ;;  %v5562_v51 = vld [vmem:[#allocation4 + $0xe8] sm:$0xff] }
 0x3bf   :  { %1679 = vmatpush.msrb.mxu3 %v5011_v59  ;;  %1786 = vmatpush.msra.mxu2 %v4972_v39  ;;  %v5540_v39 = vld [vmem:[#allocation4 + $0x128] sm:$0xff]  ;;  %v5578_v59 = vld [vmem:[#allocation4 + $0x98] sm:$0xff] }
 0x3c0   :  { %1746 = vmatpush.msra.mxu0 %v5014_v34  ;;  %1766 = vmatpush.msra.mxu1 %v5524_v0  ;;  %v7140_v34 = vld [vmem:[#allocation49_spill] sm:$0xff] }
 0x3c1   :  { %1680 = vmatpush.msrb.mxu3 %v5024_v32  ;;  %1787 = vmatpush.msra.mxu2 %v4975_v25  ;;  %v5546_v25 = vld [vmem:[#allocation4 + $0x110] sm:$0xff]  ;;  %v7141_v32 = vld [vmem:[#allocation41_spill] sm:$0xff] }
 0x3c2   :  { %1674 = vmatmul.f32.vlgmr.msrb.gmra.mxu2 %v5510_v14  ;;  %1747 = vmatpush.msra.mxu0 %v5027_v23  ;;  %v5590_v23 = vld [vmem:[#allocation4 + $0x68] sm:$0xff] }
 0x3c3   :  { %1767 = vmatpush.msra.mxu1 %v5530_v55  ;;  %1681 = vmatpush.msrb.mxu3 %v5037_v27  ;;  %v7143_v27 = vld [vmem:[#allocation51_spill] sm:$0xff] }
 0x3c4   :  { %1561 = vmatmul.f32.vlgmr.msra.gmra.mxu3 %v5502_v21  ;;  %1581 = vmatmul.f32.vlgmr.msrb.gmra.mxu0 %v5502_v21 }
 0x3c5   :  { %1654 = vmatmul.f32.vlgmr.msrb.gmra.mxu1 %v5510_v14  ;;  %1682 = vmatpush.msrb.mxu3 %v5046_v47  ;;  %v7144_v47 = vld [vmem:[#allocation26_spill] sm:$0xff] }
 0x3c6   :  { %1748 = vmatpush.msra.mxu0 %v5049_v16  ;;  %1768 = vmatpush.msra.mxu1 %v5540_v39  ;;  %v5596_v16 = vld [vmem:[#allocation4 + $0x50] sm:$0xff] }
 0x3c7   :  { %1683 = vmatpush.msrb.mxu3 %v5059_v28  ;;  %1788 = vmatpush.msra.mxu2 %v4978_v36  ;;  %v5558_v36 = vld [vmem:[#allocation4 + $0xe0] sm:$0xff]  ;;  %v7146_v28 = vld [vmem:[#allocation53_spill] sm:$0xff] }
 0x3c8   :  { %1749 = vmatpush.msra.mxu0 %v5062_v20  ;;  %1769 = vmatpush.msra.mxu1 %v5546_v25  ;;  %v7147_v20 = vld [vmem:[#allocation30_spill] sm:$0xff] }
 0x3c9   :  { %1684 = vmatpush.msrb.mxu3 %v5072_v60  ;;  %1789 = vmatpush.msra.mxu2 %v4981_v22  ;;  %v5566_v22 = vld [vmem:[#allocation4 + $0xc8] sm:$0xff] }
 0x3ca   :  { %1750 = vmatpush.msra.mxu0 %v5075_v24  ;;  %1770 = vmatpush.msra.mxu1 %v5552_v53  ;;  %v7148_v60 = vld [vmem:[#allocation39_spill] sm:$0xff]  ;;  %v5602_v24 = vld [vmem:[#allocation4 + $0x38] sm:$0xff] }
 0x3cb   :  { %1685 = vmatpush.msrb.mxu3 %v5085_v57  ;;  %1790 = vmatpush.msra.mxu2 %v4985_v33  ;;  %v5572_v33 = vld [vmem:[#allocation4 + $0xb0] sm:$0xff]  ;;  %v7150_v57 = vld [vmem:[#allocation61_spill] sm:$0xff] }
 0x3cc   :  { %1751 = vmatpush.msra.mxu0 %v5088_v29  ;;  %1771 = vmatpush.msra.mxu1 %v5558_v36  ;;  %v7151_v29 = vld [vmem:[#allocation40_spill] sm:$0xff] }
 0x3cd   :  { %1686 = vmatpush.msrb.mxu3 %v5098_v11  ;;  %1791 = vmatpush.msra.mxu2 %v5562_v51  ;;  %v5610_v11 = vld [vmem:[#allocation4 + $0x20] sm:$0xff] }
 0x3ce   :  { %1752 = vmatpush.msra.mxu0 %v5101_v26  ;;  %1772 = vmatpush.msra.mxu1 %v5566_v22  ;;  %v7153_v26 = vld [vmem:[#allocation47_spill] sm:$0xff] }
 0x3cf   :  { %1687 = vmatpush.msrb.mxu3 %v5111_v52  ;;  %1792 = vmatpush.msra.mxu2 %v5005_v7  ;;  %v5584_v7 = vld [vmem:[#allocation4 + $0x80] sm:$0xff]  ;;  %v7155_v52 = vld [vmem:[#allocation63_spill] sm:$0xff] }
 0x3d0   :  { %1753 = vmatpush.msra.mxu0 %v5114_v17  ;;  %1773 = vmatpush.msra.mxu1 %v5572_v33  ;;  %v7156_v17 = vld [vmem:[#allocation59_spill] sm:$0xff] }
 0x3d1   :  { %1688 = vmatpush.msrb.mxu3 %v5124_v8  ;;  %1793 = vmatpush.msra.mxu2 %v5018_v19  ;;  %v7142_v19 = vld [vmem:[#allocation45_spill] sm:$0xff]  ;;  %v5617_v8 = vld [vmem:[#allocation4 + $0x8] sm:$0xff] }
 0x3d2   :  { %1754 = vmatpush.msra.mxu0 %v5127_v54  ;;  %1774 = vmatpush.msra.mxu1 %v5578_v59  ;;  %v7154_v54 = vld [vmem:[#allocation29_spill] sm:$0xff] }
 0x3d3   :  { %1689 = vmatpush.msrb.mxu3 %v5140_v12  ;;  %1794 = vmatpush.msra.mxu2 %v5031_v35  ;;  %v7145_v35 = vld [vmem:[#allocation46_spill] sm:$0xff] }
 0x3d4   :  { %1755 = vmatpush.msra.mxu0 %v5143_v46  ;;  %1775 = vmatpush.msra.mxu1 %v5584_v7  ;;  %v7149_v46 = vld [vmem:[#allocation57_spill] sm:$0xff]  ;;  %v7152_v12 = vld [vmem:[#allocation42_spill] sm:$0xff] }
 0x3d5   :  { %1690 = vmatpush.msrb.mxu3 %v7140_v34  ;;  %1795 = vmatpush.msra.mxu2 %v7141_v32  ;;  %v7176_v34 = vld [vmem:[#allocation81_spill] sm:$0xff]  ;;  %v7177_v32 = vld [vmem:[#allocation64_spill] sm:$0xff] }
 0x3d6   :  { %1756 = vmatpush.msra.mxu0 %v7142_v19  ;;  %1776 = vmatpush.msra.mxu1 %v5590_v23  ;;  %v5659_v19 = vld [vmem:[#allocation6 + $0xe8] sm:$0xff] }
 0x3d7   :  { %1691 = vmatpush.msrb.mxu3 %v7143_v27  ;;  %1796 = vmatpush.msra.mxu2 %v7144_v47  ;;  %v7178_v27 = vld [vmem:[#allocation65_spill] sm:$0xff]  ;;  %v7179_v47 = vld [vmem:[#allocation87_spill] sm:$0xff] }
 0x3d8   :  { %1757 = vmatpush.msra.mxu0 %v7145_v35  ;;  %1777 = vmatpush.msra.mxu1 %v5596_v16  ;;  %v7180_v35 = vld [vmem:[#allocation66_spill] sm:$0xff] }
 0x3d9   :  { %1692 = vmatpush.msrb.mxu3 %v7146_v28  ;;  %1797 = vmatpush.msra.mxu2 %v7147_v20  ;;  %v5665_v28 = vld [vmem:[#allocation6 + $0xd0] sm:$0xff]  ;;  %v7181_v20 = vld [vmem:[#allocation31_spill] sm:$0xff] }
 0x3da   :  { %1758 = vmatpush.msra.mxu0 %v7148_v60  ;;  %1778 = vmatpush.msra.mxu1 %v5602_v24  ;;  %v7182_v60 = vld [vmem:[#allocation83_spill] sm:$0xff] }
 0x3db   :  { %1693 = vmatpush.msrb.mxu3 %v7149_v46  ;;  %1798 = vmatpush.msra.mxu2 %v7150_v57  ;;  %v7183_v46 = vld [vmem:[#allocation82_spill] sm:$0xff]  ;;  %v5671_v57 = vld [vmem:[#allocation6 + $0xb8] sm:$0xff] }
 0x3dc   :  { %1694 = vmatmul.f32.vlgmr.msrb.gmra.mxu3 %v5510_v14  ;;  %1759 = vmatpush.msra.mxu0 %v7151_v29  ;;  %v7184_v29 = vld [vmem:[#allocation35_spill] sm:$0xff] }
 0x3dd   :  { %1805 = vmatpush.msra.mxu3 %v7152_v12  ;;  %1779 = vmatpush.msra.mxu1 %v5610_v11  ;;  %v7185_v12 = vld [vmem:[#allocation84_spill] sm:$0xff] }
 0x3de   :  { %1760 = vmatpush.msra.mxu0 %v7153_v26  ;;  %1799 = vmatpush.msra.mxu2 %v7154_v54  ;;  %v5676_v26 = vld [vmem:[#allocation6 + $0x80] sm:$0xff] }
 0x3df   :  { %1806 = vmatpush.msra.mxu3 %v7155_v52  ;;  %1780 = vmatpush.msra.mxu1 %v5617_v8  ;;  %v5679_v54 = vld [vmem:[#allocation6 + $0xa0] sm:$0xff]  ;;  %v7186_v52 = vld [vmem:[#allocation71_spill] sm:$0xff] }
 0x3e0   :  { %1825 = vmatpush.msrb.mxu0 %v7156_v17  ;;  %1800 = vmatpush.msra.mxu2 %v7157_v40  ;;  %v7187_v17 = vld [vmem:[#allocation85_spill] sm:$0xff]  ;;  %v5684_v40 = vld [vmem:[#allocation6 + $0x68] sm:$0xff] }
 0x3e1   :  { %1807 = vmatpush.msra.mxu3 %v7158_v10  ;;  %1845 = vmatpush.msrb.mxu1 %v5623_v9  ;;  %v5687_v10 = vld [vmem:[#allocation6 + $0x88] sm:$0xff] }
 0x3e2   :  { %1826 = vmatpush.msrb.mxu0 %v7159_v45  ;;  %1918 = vmatpush.msrb.mxu2 %v7160_v30  ;;  %v7188_v45 = vld [vmem:[#allocation50_spill] sm:$0xff] }
 0x3e3   :  { %1808 = vmatpush.msra.mxu3 %v7161_v38  ;;  %1846 = vmatpush.msrb.mxu1 %v5629_v58  ;;  %v7189_v30 = vld [vmem:[#allocation86_spill] sm:$0xff]  ;;  %v5692_v38 = vld [vmem:[#allocation6 + $0x50] sm:$0xff] }
 0x3e4   :  { %1827 = vmatpush.msrb.mxu0 %v7162_v61  ;;  %1919 = vmatpush.msrb.mxu2 %v7163_v42  ;;  %v5695_v61 = vld [vmem:[#allocation6 + $0x70] sm:$0xff]  ;;  %v7190_v42 = vld [vmem:[#allocation77_spill] sm:$0xff] }
 0x3e5   :  { %1809 = vmatpush.msra.mxu3 %v7164_v6  ;;  %1847 = vmatpush.msrb.mxu1 %v5635_v44  ;;  %v7191_v6 = vld [vmem:[#allocation15_spill] sm:$0xff] }
 0x3e6   :  { %1828 = vmatpush.msrb.mxu0 %v7165_v1  ;;  %1920 = vmatpush.msrb.mxu2 %v7166_v41  ;;  %v5700_v1 = vld [vmem:[#allocation6 + $0x38] sm:$0xff] }
 0x3e7   :  { %1810 = vmatpush.msra.mxu3 %v7167_v4  ;;  %1848 = vmatpush.msrb.mxu1 %v5641_v18  ;;  %v5703_v41 = vld [vmem:[#allocation6 + $0x58] sm:$0xff]  ;;  %v7193_v4 = vld [vmem:[#allocation56_spill] sm:$0xff] }
 0x3e8   :  { %1829 = vmatpush.msrb.mxu0 %v7168_v5  ;;  %1921 = vmatpush.msrb.mxu2 %v7169_v15  ;;  %7192 = vst [vmem:[#allocation18_spill] sm:$0xff] %v5703_v41  ;;  %v7194_v5 = vld [vmem:[#allocation16_spill] sm:$0xff]  ;;  %v5708_v15 = vld [vmem:[#allocation6 + $0x20] sm:$0xff] }
 0x3e9   :  { %1811 = vmatpush.msra.mxu3 %v7170_v31  ;;  %1849 = vmatpush.msrb.mxu1 %v5647_v2  ;;  %7195 = vst [vmem:[#allocation91_spill] sm:$0xff] %v5708_v15  ;;  %v5714_v31 = vld [vmem:[%s6397_s1 + $0x170] sm:$0xff] }
 0x3ea   :  { %1830 = vmatpush.msrb.mxu0 %v7171_v63  ;;  %1922 = vmatpush.msrb.mxu2 %v7172_v50  ;;  %7196 = vst [vmem:[#allocation21_spill] sm:$0xff] %v5714_v31  ;;  %v5717_v63 = vld [vmem:[#allocation6 + $0x40] sm:$0xff]  ;;  %v5720_v50 = vld [vmem:[#allocation6 + $0x8] sm:$0xff] }
 0x3eb   :  { %1812 = vmatpush.msra.mxu3 %v7173_v43  ;;  %1850 = vmatpush.msrb.mxu1 %v5653_v56  ;;  %7197 = vst [vmem:[#allocation27_spill] sm:$0xff] %v5717_v63  ;;  %v7199_v43 = vld [vmem:[#allocation12_spill] sm:$0xff] }
 0x3ec   :  { %1831 = vmatpush.msrb.mxu0 %v7174_v48  ;;  %1923 = vmatpush.msrb.mxu2 %v7175_v62  ;;  %7198 = vst [vmem:[#allocation76_spill] sm:$0xff] %v5720_v50  ;;  %v5727_v48 = vld [vmem:[%s6397_s1 + $0x158] sm:$0xff]  ;;  %v5730_v62 = vld [vmem:[#allocation6 + $0x28] sm:$0xff] }
 0x3ed   :  { %1813 = vmatpush.msra.mxu3 %v7176_v34  ;;  %1851 = vmatpush.msrb.mxu1 %v5659_v19  ;;  %7200 = vst [vmem:[#allocation49_spill] sm:$0xff] %v5727_v48  ;;  %v7202_v34 = vld [vmem:[#allocation13_spill] sm:$0xff] }
 0x3ee   :  { %1832 = vmatpush.msrb.mxu0 %v7177_v32  ;;  %1924 = vmatpush.msrb.mxu2 %v7178_v27  ;;  %7201 = vst [vmem:[#allocation41_spill] sm:$0xff] %v5730_v62  ;;  %v5737_v32 = vld [vmem:[%s6397_s1 + $0x140] sm:$0xff]  ;;  %v5740_v27 = vld [vmem:[#allocation6 + $0x10] sm:$0xff] }
 0x3ef   :  { %1814 = vmatpush.msra.mxu3 %v7179_v47  ;;  %1852 = vmatpush.msrb.mxu1 %v5665_v28  ;;  %7203 = vst [vmem:[#allocation45_spill] sm:$0xff] %v5737_v32  ;;  %v7205_v47 = vld [vmem:[#allocation14_spill] sm:$0xff] }
 0x3f0   :  { %1833 = vmatpush.msrb.mxu0 %v7180_v35  ;;  %1925 = vmatpush.msrb.mxu2 %v7181_v20  ;;  %7204 = vst [vmem:[#allocation51_spill] sm:$0xff] %v5740_v27  ;;  %v5747_v35 = vld [vmem:[%s6397_s1 + $0x128] sm:$0xff]  ;;  %v7207_v20 = vld [vmem:[#allocation17_spill] sm:$0xff] }
 0x3f1   :  { %1815 = vmatpush.msra.mxu3 %v7182_v60  ;;  %1853 = vmatpush.msrb.mxu1 %v5671_v57  ;;  %7206 = vst [vmem:[#allocation26_spill] sm:$0xff] %v5747_v35  ;;  %v7208_v60 = vld [vmem:[#allocation19_spill] sm:$0xff] }
 0x3f2   :  { %1834 = vmatpush.msrb.mxu0 %v7183_v46  ;;  %1926 = vmatpush.msrb.mxu2 %v7184_v29  ;;  %v7209_v46 = vld [vmem:[#allocation22_spill] sm:$0xff]  ;;  %v7210_v29 = vld [vmem:[#allocation25_spill] sm:$0xff] }
 0x3f3   :  { %1816 = vmatpush.msra.mxu3 %v7185_v12  ;;  %1854 = vmatpush.msrb.mxu1 %v5679_v54  ;;  %v7211_v12 = vld [vmem:[#allocation28_spill] sm:$0xff] }
 0x3f4   :  { %1835 = vmatpush.msrb.mxu0 %v5676_v26  ;;  %1927 = vmatpush.msrb.mxu2 %v7186_v52  ;;  %v7212_v52 = vld [vmem:[#allocation32_spill] sm:$0xff] }
 0x3f5   :  { %1817 = vmatpush.msra.mxu3 %v7187_v17  ;;  %1855 = vmatpush.msrb.mxu1 %v5687_v10  ;;  %v7213_v17 = vld [vmem:[#allocation36_spill] sm:$0xff] }
 0x3f6   :  { %1836 = vmatpush.msrb.mxu0 %v5684_v40  ;;  %1928 = vmatpush.msrb.mxu2 %v7188_v45  ;;  %v7214_v45 = vld [vmem:[#allocation70_spill] sm:$0xff] }
 0x3f7   :  { %1818 = vmatpush.msra.mxu3 %v7189_v30  ;;  %1856 = vmatpush.msrb.mxu1 %v5695_v61  ;;  %v7215_v30 = vld [vmem:[#allocation88_spill] sm:$0xff] }
 0x3f8   :  { %1837 = vmatpush.msrb.mxu0 %v5692_v38  ;;  %1929 = vmatpush.msrb.mxu2 %v7190_v42  ;;  %v7216_v42 = vld [vmem:[#allocation89_spill] sm:$0xff] }
 0x3f9   :  { %1819 = vmatpush.msra.mxu3 %v7191_v6  ;;  %1857 = vmatpush.msrb.mxu1 %v5703_v41  ;;  %v7217_v6 = vld [vmem:[#allocation10_spill] sm:$0xff] }
 0x3fa   :  { %1838 = vmatpush.msrb.mxu0 %v5700_v1  ;;  %1930 = vmatpush.msrb.mxu2 %v7193_v4  ;;  %v7218_v4 = vld [vmem:[#allocation90_spill] sm:$0xff] }
 0x3fb   :  { %1820 = vmatpush.msra.mxu3 %v7194_v5  ;;  %1858 = vmatpush.msrb.mxu1 %v5717_v63 }
 0x3fc   :  { %1839 = vmatpush.msrb.mxu0 %v5708_v15  ;;  %1931 = vmatpush.msrb.mxu2 %v7199_v43 }
 0x3fd   :  { %1938 = vmatpush.msrb.mxu3 %v5714_v31  ;;  %1859 = vmatpush.msrb.mxu1 %v5730_v62 }
 0x3fe   :  { %1840 = vmatpush.msrb.mxu0 %v5720_v50  ;;  %1932 = vmatpush.msrb.mxu2 %v7202_v34 }
 0x3ff   :  { %1939 = vmatpush.msrb.mxu3 %v5727_v48  ;;  %1860 = vmatpush.msrb.mxu1 %v5740_v27  ;;  %v7222_v27 = vld [vmem:[#allocation79_spill] sm:$0xff] }
 0x400   :  { %1933 = vmatpush.msrb.mxu2 %v7205_v47  ;;  %v7219_v47 = vld [vmem:[#allocation72_spill] sm:$0xff] }
 0x401   :  { %1940 = vmatpush.msrb.mxu3 %v5737_v32  ;;  %v7224_v32 = vld [vmem:[#allocation24_spill] sm:$0xff] }
 0x403   :  { %1941 = vmatpush.msrb.mxu3 %v5747_v35 }
 0x405   :  { %1942 = vmatpush.msrb.mxu3 %v7207_v20 }
 0x407   :  { %1943 = vmatpush.msrb.mxu3 %v7208_v60  ;;  %v7220_v60 = vld [vmem:[#allocation11_spill] sm:$0xff] }
 0x409   :  { %1944 = vmatpush.msrb.mxu3 %v7209_v46 }
 0x40b   :  { %1945 = vmatpush.msrb.mxu3 %v7210_v29 }
 0x40d   :  { %1946 = vmatpush.msrb.mxu3 %v7211_v12  ;;  %v2525_v12 = vld [vmem:[%s6396_s0 + $0x78] sm:$0xff] }
 0x40f   :  { %1947 = vmatpush.msrb.mxu3 %v7212_v52 }
 0x411   :  { %1948 = vmatpush.msrb.mxu3 %v7213_v17  ;;  %v7221_v17 = vld [vmem:[#allocation78_spill] sm:$0xff] }
 0x413   :  { %1949 = vmatpush.msrb.mxu3 %v7214_v45 }
 0x415   :  { %1950 = vmatpush.msrb.mxu3 %v7215_v30 }
 0x417   :  { %1951 = vmatpush.msrb.mxu3 %v7216_v42  ;;  %v2526_v42 = vld [vmem:[%s6396_s0 + $0x80] sm:$0xff] }
 0x419   :  { %1952 = vmatpush.msrb.mxu3 %v7217_v6 }
 0x41b   :  { %1953 = vmatpush.msrb.mxu3 %v7218_v4 }
 0x439   :  { %v1502_v4 = vpop.f32.mrf.mxu0 }
 0x43a   :  { %v1522_v5 = vpop.f32.mrf.mxu1 }
 0x43d   :  { %v1542_v43 = vpop.f32.mrf.mxu2 }
 0x43e   :  { %v1543_v20 = vadd.f32 %v1542_v43, %v7219_v47  ;;  %v7223_v47 = vld [vmem:[#allocation20_spill] sm:$0xff] }
 0x43f   :  { %v1482_v34 = vpop.f32.mrf.mxu3 }
 0x440   :  { %v1483_v46 = vadd.f32 %v1482_v34, %v7220_v60  ;;  %v1503_v60 = vadd.f32 %v1502_v4, %v7223_v47 }
 0x442   :  { %v1585_v29 = vadd.f32 %v1543_v20, %v1483_v46  ;;  %v1655_v52 = vpop.f32.mrf.mxu1 }
 0x443   :  { %v1656_v45 = vadd.f32 %v1655_v52, %v7221_v17 }
 0x444   :  { %v2522_v30 = vmul.f32 -1.442695, %v1585_v29 }
 0x445   :  { %v1675_v6 = vpop.f32.mrf.mxu2  ;;  %v1698_v35 = vadd.f32 %v2525_v12, %v1656_v45 }
 0x446   :  { %v1676_v43 = vadd.f32 %v1675_v6, %v7222_v27  ;;  %2645 = vpow2.f32 %v2522_v30 }
 0x447   :  { %v2528_v34 = vmul.f32 -1.442695, %v1698_v35  ;;  %v1562_v46 = vpop.f32.mrf.mxu3 }
 0x448   :  { %v1718_v20 = vadd.f32 %v2526_v42, %v1676_v43  ;;  %v1563_v62 = vadd.f32 %v1562_v46, %v7224_v32 }
 0x449   :  { %2647 = vpow2.f32 %v2528_v34 }
 0x44a   :  { %v2529_v52 = vmul.f32 -1.442695, %v1718_v20  ;;  %v1605_v29 = vadd.f32 %v1563_v62, %v1503_v60 }
 0x44c   :  { %2649 = vpow2.f32 %v2529_v52  ;;  %v2646_v17 = vpop.eup %2645  ;;  %v2523_v48 = vmul.f32 -1.442695, %v1605_v29  ;;  %v1523_v52 = vadd.f32 %v1522_v5, %v7137_v3 }
 0x44d   :  { %v1589_v50 = vadd.f32 1.0, %v2646_v17 }
 0x44e   :  { %2651 = vpow2.f32 %v2523_v48  ;;  %v1582_v48 = vpop.f32.mrf.mxu0 }
 0x44f   :  { %v2648_v63 = vpop.eup %2647  ;;  %2653 = vrcp.f32 %v1589_v50  ;;  %v1599_v17 = vand.u32 2147483647, %v1589_v50  ;;  %v1601_v43 = vand.u32 2147483648, %v1589_v50  ;;  %v1583_v27 = vadd.f32 %v1582_v48, %v7136_v13 }
 0x450   :  { %v1702_v12 = vadd.f32 1.0, %v2648_v63  ;;  %vm1595_vm9 = vweird.f32 %v1589_v50 }
 0x451   :  { %vm1600_vm10 = vcmp.eq.f32.partialorder %v1599_v17, 8.507059e+37  ;;  %v1602_v47 = vor.u32 1.1754944e-38, %v1601_v43 }
 0x452   :  { %v2650_v45 = vpop.eup %2649  ;;  %2655 = vrcp.f32 %v1702_v12  ;;  %v1712_v46 = vand.u32 2147483647, %v1702_v12  ;;  %vm1708_vm13 = vweird.f32 %v1702_v12 }
 0x453   :  { %v5774_v35 = vadd.f32 1.0, %v2650_v45 }
 0x454   :  { %v2652_v30 = vpop.eup %2651  ;;  %vm5784_vm14 = vcmp.eq.f32.partialorder %v1712_v46, 8.507059e+37 }
 0x455   :  { %2657 = vrcp.f32 %v5774_v35  ;;  %v2654_v42 = vpop.eup %2653  ;;  %v5777_v6 = vadd.f32 1.0, %v2652_v30  ;;  %v1714_v30 = vand.u32 2147483648, %v1702_v12  ;;  %vm1728_vm2 = vweird.f32 %v5774_v35 }
 0x456   :  { %v1591_v4 = vmul.f32 %v2654_v42, %v1589_v50  ;;  %vm1596_vm8 = vweird.f32 %v2654_v42 }
 0x457   :  { %2659 = vrcp.f32 %v5777_v6  ;;  %vm1597_vm11 = vmor %vm1595_vm9, %vm1596_vm8  ;;  %v1715_v50 = vor.u32 1.1754944e-38, %v1714_v30  ;;  %v1621_v43 = vand.u32 2147483648, %v5777_v6  ;;  %vm1615_vm4 = vweird.f32 %v5777_v6 }
 0x458   :  { %v2656_v62 = vpop.eup %2655  ;;  %v1592_v60 = vsub.f32 1.0, %v1591_v4 }
 0x459   :  { %v1704_v34 = vmul.f32 %v2656_v62, %v1702_v12  ;;  %vm1709_vm12 = vweird.f32 %v2656_v62  ;;  %v1619_v12 = vand.u32 2147483647, %v5777_v6 }
 0x45a   :  { %v1593_v20 = vmul.f32 %v2654_v42, %v1592_v60  ;;  %vm1710_vm15 = vmor %vm1708_vm13, %vm1709_vm12 }
 0x45b   :  { %v2658_v63 = vpop.eup %2657  ;;  %v1705_v45 = vsub.f32 1.0, %v1704_v34  ;;  %vm1620_vm6 = vcmp.eq.f32.partialorder %v1619_v12, 8.507059e+37  ;;  %v5837_v12 = vld [vmem:[%s6397_s1 + $0x160] sm:$0xff] }
 0x45c   :  { %v1724_v29 = vmul.f32 %v2658_v63, %v5774_v35  ;;  %v1594_v32 = vadd.f32 %v2654_v42, %v1593_v20  ;;  %vm1729_vm0 = vweird.f32 %v2658_v63 }
 0x45d   :  { %v2660_v4 = vpop.eup %2659  ;;  %v1706_v15 = vmul.f32 %v2656_v62, %v1705_v45  ;;  %vm5798_vm3 = vmor %vm1728_vm2, %vm1729_vm0  ;;  %v1622_v45 = vor.u32 1.1754944e-38, %v1621_v43 }
 0x45e   :  { %v1725_v31 = vsub.f32 1.0, %v1724_v29  ;;  %v1598_v60 = vsel %vm1597_vm11, %v2654_v42, %v1594_v32  ;;  %v1611_v41 = vmul.f32 %v2660_v4, %v5777_v6  ;;  %vm1616_vm1 = vweird.f32 %v2660_v4 }
 0x45f   :  { %v1603_v34 = vsel %vm1600_vm10, %v1602_v47, %v1598_v60  ;;  %v1695_v48 = vpop.f32.mrf.mxu3  ;;  %v1707_v20 = vadd.f32 %v2656_v62, %v1706_v15  ;;  %vm1617_vm5 = vmor %vm1615_vm4, %vm1616_vm1 }
 0x460   :  { %v1726_v3 = vmul.f32 %v2658_v63, %v1725_v31  ;;  %v1625_v17 = vmul.f32 %v1603_v34, %v1583_v27  ;;  %v1612_v13 = vsub.f32 1.0, %v1611_v41  ;;  %v1696_v29 = vadd.f32 %v1695_v48, %v3850_v49  ;;  %v2527_v31 = vld [vmem:[%s6396_s0 + $0x88] sm:$0xff] }
 0x461   :  { %v1711_v32 = vsel %vm1710_vm15, %v2656_v62, %v1707_v20  ;;  %v1734_v27 = vand.u32 2147483648, %v5774_v35  ;;  %v5886_v62 = vld [vmem:[#allocation4 + $0x130] sm:$0xff] }
 0x462   :  { %v1626_v42 = vadd.f32 %v1625_v17, %v1523_v52  ;;  %v1613_v46 = vmul.f32 %v2660_v4, %v1612_v13  ;;  %v1716_v15 = vsel %vm5784_vm14, %v1715_v50, %v1711_v32  ;;  %v1727_v41 = vadd.f32 %v2658_v63, %v1726_v3 }
 0x463   :  { %v1738_v47 = vmul.f32 %v1716_v15, %v1696_v29  ;;  %v1732_v13 = vand.u32 2147483647, %v5774_v35  ;;  %v1735_v5 = vor.u32 1.1754944e-38, %v1734_v27  ;;  %v5854_v15 = vld [vmem:[#allocation4 + $0x138] sm:$0xff]  ;;  %v5876_v27 = vld [vmem:[#allocation4 + $0x120] sm:$0xff] }
 0x464   :  { %2661 = vtanh.f32 %v1626_v42  ;;  %v1614_v52 = vadd.f32 %v2660_v4, %v1613_v46  ;;  %v1731_v3 = vsel %vm5798_vm3, %v2658_v63, %v1727_v41  ;;  %v5840_v46 = vld [vmem:[#allocation4 + $0x160] sm:$0xff]  ;;  %v5861_v41 = vld [vmem:[%s6397_s1 + $0x130] sm:$0xff] }
 0x465   :  { %v1739_v30 = vadd.f32 %v2527_v31, %v1738_v47  ;;  %vm1733_vm7 = vcmp.eq.f32.partialorder %v1732_v13, 8.507059e+37  ;;  %v5843_v31 = vld [vmem:[#allocation4 + $0x150] sm:$0xff]  ;;  %v5883_v47 = vld [vmem:[%s6397_s1 + $0x100] sm:$0xff]  ;;  %v5889_v13 = vld [vmem:[#allocation4 + $0x108] sm:$0xff] }
 0x466   :  { %v1618_v60 = vsel %vm1617_vm5, %v2660_v4, %v1614_v52  ;;  %v1736_v20 = vsel %vm1733_vm7, %v1735_v5, %v1731_v3  ;;  %v5818_v4 = vld [vmem:[#allocation4 + $0x178] sm:$0xff]  ;;  %v5933_v5 = vld [vmem:[%s6397_s1 + $0xa0] sm:$0xff] }
 0x467   :  { %2663 = vtanh.f32 %v1739_v30  ;;  %v1623_v34 = vsel %vm1620_vm6, %v1622_v45, %v1618_v60  ;;  %v1741_v17 = vsub.f32 1.0, %v1736_v20  ;;  %v1743_v42 = vmul.f32 %v1736_v20, %v5510_v14  ;;  %v5830_v14 = vld [vmem:[#allocation4 + $0x168] sm:$0xff]  ;;  %v5899_v52 = vld [vmem:[#allocation4 + $0x118] sm:$0xff]  ;;  %v5902_v45 = vld [vmem:[#allocation4 + $0xf0] sm:$0xff] }
 0x468   :  { %v1628_v48 = vsub.f32 1.0, %v1623_v34  ;;  %v1630_v35 = vmul.f32 %v1623_v34, %v5502_v21  ;;  %v5827_v21 = vld [vmem:[%s6397_s1 + $0x178] sm:$0xff]  ;;  %v5912_v30 = vld [vmem:[#allocation4 + $0x100] sm:$0xff]  ;;  %v5939_v34 = vld [vmem:[#allocation4 + $0xa8] sm:$0xff] }
 0x469   :  { %v5915_v3 = vld [vmem:[#allocation4 + $0xd8] sm:$0xff]  ;;  %v5926_v60 = vld [vmem:[#allocation4 + $0xc0] sm:$0xff] }
 0x46a   :  { %v2662_v50 = vpop.eup %2661  ;;  %v5962_v20 = vld [vmem:[#allocation4 + $0xa0] sm:$0xff] }
 0x46b   :  { %v1629_v6 = vmul.f32 %v2662_v50, %v1628_v48  ;;  %v5952_v48 = vld [vmem:[#allocation4 + $0x90] sm:$0xff]  ;;  %v5965_v50 = vld [vmem:[#allocation4 + $0x78] sm:$0xff] }
 0x46c   :  { %7229 = vst [vmem:[#allocation46_spill] sm:$0xff] %v5952_v48 }
 0x46d   :  { %v2664_v29 = vpop.eup %2663  ;;  %v5808_v32 = vadd.f32 %v1630_v35, %v1629_v6  ;;  %7231 = vst [vmem:[#allocation30_spill] sm:$0xff] %v5965_v50  ;;  %v5975_v6 = vld [vmem:[#allocation4 + $0x88] sm:$0xff]  ;;  %v5978_v35 = vld [vmem:[#allocation4 + $0x60] sm:$0xff] }
 0x46e   :  { %v1742_v43 = vmul.f32 %v2664_v29, %v1741_v17  ;;  %7233 = vst [vmem:[#allocation57_spill] sm:$0xff] %v5978_v35  ;;  %v5988_v17 = vld [vmem:[#allocation4 + $0x70] sm:$0xff]  ;;  %v5991_v29 = vld [vmem:[#allocation4 + $0x48] sm:$0xff] }
 0x46f   :  { %2524 = vst [vmem:[%s6403_s7 + $0x20] sm:$0xff] %v5808_v32  ;;  %1821 = vmatmul.f32.vlgmr.msra.gmra.mxu3 %v5808_v32 }
 0x470   :  { %v5816_v63 = vadd.f32 %v1743_v42, %v1742_v43  ;;  %2065 = vmatpush.msra.mxu3 %v5818_v4  ;;  %7235 = vst [vmem:[#allocation40_spill] sm:$0xff] %v5991_v29  ;;  %v6001_v43 = vld [vmem:[#allocation4 + $0x58] sm:$0xff]  ;;  %v6004_v42 = vld [vmem:[#allocation4 + $0x30] sm:$0xff] }
 0x471   :  { %7237 = vst [vmem:[#allocation47_spill] sm:$0xff] %v6004_v42 }
 0x472   :  { %1761 = vmatmul.f32.vlgmr.msra.gmra.mxu0 %v5816_v63  ;;  %1781 = vmatmul.f32.vlgmr.msra.gmra.mxu1 %v5816_v63 }
 0x473   :  { %1801 = vmatmul.f32.vlgmr.msra.gmra.mxu2 %v5816_v63  ;;  %1958 = vmatpush.msra.mxu0 %v5827_v21 }
 0x474   :  { %2025 = vmatpush.msra.mxu1 %v5830_v14  ;;  %2045 = vmatpush.msra.mxu2 %v5518_v37  ;;  %v5850_v37 = vld [vmem:[%s6397_s1 + $0x148] sm:$0xff] }
 0x475   :  { %1959 = vmatpush.msra.mxu0 %v5837_v12  ;;  %2066 = vmatpush.msra.mxu3 %v5840_v46 }
 0x476   :  { %2026 = vmatpush.msra.mxu1 %v5843_v31  ;;  %2046 = vmatpush.msra.mxu2 %v5524_v0  ;;  %v5864_v0 = vld [vmem:[#allocation4 + $0x148] sm:$0xff] }
 0x477   :  { %1960 = vmatpush.msra.mxu0 %v5850_v37  ;;  %1954 = vmatmul.f32.vlgmr.msrb.gmra.mxu3 %v5816_v63 }
 0x478   :  { %2027 = vmatpush.msra.mxu1 %v5854_v15  ;;  %2047 = vmatpush.msra.mxu2 %v5530_v55  ;;  %v5873_v55 = vld [vmem:[%s6397_s1 + $0x118] sm:$0xff] }
 0x479   :  { %1961 = vmatpush.msra.mxu0 %v5861_v41  ;;  %2067 = vmatpush.msra.mxu3 %v5864_v0 }
 0x47a   :  { %1841 = vmatmul.f32.vlgmr.msrb.gmra.mxu0 %v5808_v32  ;;  %1861 = vmatmul.f32.vlgmr.msrb.gmra.mxu1 %v5808_v32 }
 0x47b   :  { %1934 = vmatmul.f32.vlgmr.msrb.gmra.mxu2 %v5816_v63  ;;  %1962 = vmatpush.msra.mxu0 %v5873_v55 }
 0x47c   :  { %2028 = vmatpush.msra.mxu1 %v5876_v27  ;;  %2048 = vmatpush.msra.mxu2 %v5540_v39  ;;  %v5896_v39 = vld [vmem:[%s6397_s1 + $0xe8] sm:$0xff] }
 0x47d   :  { %1963 = vmatpush.msra.mxu0 %v5883_v47  ;;  %2068 = vmatpush.msra.mxu3 %v5886_v62 }
 0x47e   :  { %2029 = vmatpush.msra.mxu1 %v5889_v13  ;;  %2049 = vmatpush.msra.mxu2 %v5546_v25  ;;  %v5909_v25 = vld [vmem:[%s6397_s1 + $0xd0] sm:$0xff] }
 0x47f   :  { %1964 = vmatpush.msra.mxu0 %v5896_v39  ;;  %2069 = vmatpush.msra.mxu3 %v5899_v52 }
 0x480   :  { %2030 = vmatpush.msra.mxu1 %v5902_v45  ;;  %2050 = vmatpush.msra.mxu2 %v5552_v53  ;;  %v5922_v53 = vld [vmem:[%s6397_s1 + $0xb8] sm:$0xff] }
 0x481   :  { %1965 = vmatpush.msra.mxu0 %v5909_v25  ;;  %2070 = vmatpush.msra.mxu3 %v5912_v30 }
 0x482   :  { %2031 = vmatpush.msra.mxu1 %v5915_v3  ;;  %2051 = vmatpush.msra.mxu2 %v5558_v36  ;;  %v5936_v36 = vld [vmem:[#allocation4 + $0xd0] sm:$0xff] }
 0x483   :  { %1966 = vmatpush.msra.mxu0 %v5922_v53  ;;  %2071 = vmatpush.msra.mxu3 %v5562_v51  ;;  %v5946_v51 = vld [vmem:[%s6397_s1 + $0x88] sm:$0xff] }
 0x484   :  { %2032 = vmatpush.msra.mxu1 %v5926_v60  ;;  %2052 = vmatpush.msra.mxu2 %v5566_v22  ;;  %v5949_v22 = vld [vmem:[#allocation4 + $0xb8] sm:$0xff] }
 0x485   :  { %1967 = vmatpush.msra.mxu0 %v5933_v5  ;;  %2072 = vmatpush.msra.mxu3 %v5936_v36 }
 0x486   :  { %2033 = vmatpush.msra.mxu1 %v5939_v34  ;;  %2053 = vmatpush.msra.mxu2 %v5572_v33  ;;  %v5959_v33 = vld [vmem:[%s6397_s1 + $0x70] sm:$0xff] }
 0x487   :  { %1968 = vmatpush.msra.mxu0 %v5946_v51  ;;  %2073 = vmatpush.msra.mxu3 %v5949_v22  ;;  %7230 = vst [vmem:[#allocation53_spill] sm:$0xff] %v5959_v33 }
 0x488   :  { %2034 = vmatpush.msra.mxu1 %v5952_v48  ;;  %2054 = vmatpush.msra.mxu2 %v5578_v59  ;;  %v5972_v59 = vld [vmem:[%s6397_s1 + $0x58] sm:$0xff] }
 0x489   :  { %1969 = vmatpush.msra.mxu0 %v5959_v33  ;;  %2074 = vmatpush.msra.mxu3 %v5962_v20  ;;  %7232 = vst [vmem:[#allocation39_spill] sm:$0xff] %v5972_v59 }
 0x48a   :  { %2035 = vmatpush.msra.mxu1 %v5965_v50  ;;  %2055 = vmatpush.msra.mxu2 %v5584_v7  ;;  %v5985_v7 = vld [vmem:[%s6397_s1 + $0x40] sm:$0xff] }
 0x48b   :  { %1970 = vmatpush.msra.mxu0 %v5972_v59  ;;  %2075 = vmatpush.msra.mxu3 %v5975_v6  ;;  %7234 = vst [vmem:[#allocation61_spill] sm:$0xff] %v5985_v7  ;;  %v7285_v59 = vld [vmem:[#allocation23_spill] sm:$0xff] }
 0x48c   :  { %2036 = vmatpush.msra.mxu1 %v5978_v35  ;;  %2056 = vmatpush.msra.mxu2 %v5590_v23  ;;  %v5998_v23 = vld [vmem:[%s6397_s1 + $0x28] sm:$0xff]  ;;  %v6034_v35 = vld [vmem:[#allocation6 + $0x170] sm:$0xff] }
 0x48d   :  { %1971 = vmatpush.msra.mxu0 %v5985_v7  ;;  %2076 = vmatpush.msra.mxu3 %v5988_v17  ;;  %7236 = vst [vmem:[#allocation42_spill] sm:$0xff] %v5998_v23  ;;  %v6031_v7 = vld [vmem:[#allocation6 + $0x150] sm:$0xff] }
 0x48e   :  { %2037 = vmatpush.msra.mxu1 %v5991_v29  ;;  %2057 = vmatpush.msra.mxu2 %v5596_v16  ;;  %v6011_v16 = vld [vmem:[%s6397_s1 + $0x10] sm:$0xff]  ;;  %v6014_v29 = vld [vmem:[#allocation4 + $0x40] sm:$0xff]  ;;  %7242 = vst [vmem:[#allocation67_spill] sm:$0xff] %v6031_v7 }
 0x48f   :  { %1972 = vmatpush.msra.mxu0 %v5998_v23  ;;  %2077 = vmatpush.msra.mxu3 %v6001_v43  ;;  %7238 = vst [vmem:[#allocation29_spill] sm:$0xff] %v6011_v16  ;;  %v6018_v23 = vld [vmem:[#allocation4 + $0x18] sm:$0xff] }
 0x490   :  { %2038 = vmatpush.msra.mxu1 %v6004_v42  ;;  %2058 = vmatpush.msra.mxu2 %v5602_v24  ;;  %7239 = vst [vmem:[#allocation63_spill] sm:$0xff] %v6018_v23  ;;  %v6021_v42 = vld [vmem:[#allocation6 + $0x168] sm:$0xff]  ;;  %v6025_v24 = vld [vmem:[#allocation4] sm:$0xff] }
 0x491   :  { %1973 = vmatpush.msra.mxu0 %v6011_v16  ;;  %2078 = vmatpush.msra.mxu3 %v6014_v29  ;;  %7240 = vst [vmem:[#allocation59_spill] sm:$0xff] %v6021_v42  ;;  %v6028_v16 = vld [vmem:[#allocation4 + $0x28] sm:$0xff] }
 0x492   :  { %1974 = vmatmul.f32.vlgmr.msra.gmra.mxu0 %v5816_v63  ;;  %2039 = vmatpush.msra.mxu1 %v6018_v23  ;;  %7241 = vst [vmem:[#allocation34_spill] sm:$0xff] %v6025_v24 }
 0x493   :  { %2085 = vmatpush.msrb.mxu0 %v6021_v42  ;;  %2059 = vmatpush.msra.mxu2 %v5610_v11  ;;  %7243 = vst [vmem:[#allocation73_spill] sm:$0xff] %v6034_v35  ;;  %v6038_v42 = vld [vmem:[#allocation4 + $0x10] sm:$0xff]  ;;  %v6041_v11 = vld [vmem:[#allocation6 + $0x138] sm:$0xff] }
 0x494   :  { %2040 = vmatpush.msra.mxu1 %v6025_v24  ;;  %2079 = vmatpush.msra.mxu3 %v6028_v16  ;;  %7244 = vst [vmem:[#allocation44_spill] sm:$0xff] %v6038_v42  ;;  %v6044_v24 = vld [vmem:[#allocation6 + $0x158] sm:$0xff] }
 0x495   :  { %2086 = vmatpush.msrb.mxu0 %v6031_v7  ;;  %2060 = vmatpush.msra.mxu2 %v5617_v8  ;;  %7245 = vst [vmem:[#allocation68_spill] sm:$0xff] %v6041_v11  ;;  %v3059_v7 = vld [vmem:[%s6397_s1 + $0x168] sm:$0xff]  ;;  %v6051_v8 = vld [vmem:[#allocation6 + $0x120] sm:$0xff] }
 0x496   :  { %2105 = vmatpush.msrb.mxu1 %v6034_v35  ;;  %2080 = vmatpush.msra.mxu3 %v6038_v42  ;;  %7246 = vst [vmem:[#allocation52_spill] sm:$0xff] %v6044_v24  ;;  %v6054_v35 = vld [vmem:[#allocation6 + $0x140] sm:$0xff] }
 0x497   :  { %2087 = vmatpush.msrb.mxu0 %v6041_v11  ;;  %2125 = vmatpush.msrb.mxu2 %v5623_v9  ;;  %7247 = vst [vmem:[#allocation33_spill] sm:$0xff] %v6051_v8  ;;  %v3062_v11 = vld [vmem:[%s6397_s1 + $0x150] sm:$0xff]  ;;  %v6061_v9 = vld [vmem:[#allocation6 + $0x108] sm:$0xff] }
 0x498   :  { %2106 = vmatpush.msrb.mxu1 %v6044_v24  ;;  %2198 = vmatpush.msrb.mxu3 %v3059_v7  ;;  %7248 = vst [vmem:[#allocation69_spill] sm:$0xff] %v6054_v35  ;;  %v6064_v7 = vld [vmem:[#allocation6 + $0x128] sm:$0xff] }
 0x499   :  { %2088 = vmatpush.msrb.mxu0 %v6051_v8  ;;  %2126 = vmatpush.msrb.mxu2 %v5629_v58  ;;  %7249 = vst [vmem:[#allocation80_spill] sm:$0xff] %v6061_v9  ;;  %v3065_v8 = vld [vmem:[%s6397_s1 + $0x138] sm:$0xff]  ;;  %v6071_v58 = vld [vmem:[#allocation6 + $0xf0] sm:$0xff] }
 0x49a   :  { %2107 = vmatpush.msrb.mxu1 %v6054_v35  ;;  %2199 = vmatpush.msrb.mxu3 %v3062_v11  ;;  %7250 = vst [vmem:[#allocation37_spill] sm:$0xff] %v6064_v7  ;;  %v6074_v11 = vld [vmem:[#allocation6 + $0x110] sm:$0xff]  ;;  %v7284_v35 = vld [vmem:[#allocation74_spill] sm:$0xff] }
 0x49b   :  { %2089 = vmatpush.msrb.mxu0 %v6061_v9  ;;  %2127 = vmatpush.msrb.mxu2 %v5635_v44  ;;  %7251 = vst [vmem:[#allocation48_spill] sm:$0xff] %v6071_v58  ;;  %v3068_v9 = vld [vmem:[%s6397_s1 + $0x120] sm:$0xff]  ;;  %v6081_v44 = vld [vmem:[#allocation6 + $0xd8] sm:$0xff] }
 0x49c   :  { %2108 = vmatpush.msrb.mxu1 %v6064_v7  ;;  %2200 = vmatpush.msrb.mxu3 %v3065_v8  ;;  %7252 = vst [vmem:[#allocation58_spill] sm:$0xff] %v6074_v11  ;;  %v6084_v8 = vld [vmem:[#allocation6 + $0xf8] sm:$0xff]  ;;  %v7282_v7 = vld [vmem:[#allocation79_spill] sm:$0xff] }
 0x49d   :  { %2090 = vmatpush.msrb.mxu0 %v6071_v58  ;;  %2128 = vmatpush.msrb.mxu2 %v5641_v18  ;;  %7253 = vst [vmem:[#allocation38_spill] sm:$0xff] %v6081_v44  ;;  %v3071_v58 = vld [vmem:[%s6397_s1 + $0x108] sm:$0xff]  ;;  %v6091_v18 = vld [vmem:[#allocation6 + $0xc0] sm:$0xff] }
 0x49e   :  { %2109 = vmatpush.msrb.mxu1 %v6074_v11  ;;  %2201 = vmatpush.msrb.mxu3 %v3068_v9  ;;  %7254 = vst [vmem:[#allocation75_spill] sm:$0xff] %v6084_v8  ;;  %v6094_v9 = vld [vmem:[#allocation6 + $0xe0] sm:$0xff] }
 0x49f   :  { %2091 = vmatpush.msrb.mxu0 %v6081_v44  ;;  %2129 = vmatpush.msrb.mxu2 %v5647_v2  ;;  %7255 = vst [vmem:[#allocation60_spill] sm:$0xff] %v6091_v18  ;;  %v3074_v44 = vld [vmem:[%s6397_s1 + $0xf0] sm:$0xff]  ;;  %v6101_v2 = vld [vmem:[#allocation6 + $0xa8] sm:$0xff] }
 0x4a0   :  { %2110 = vmatpush.msrb.mxu1 %v6084_v8  ;;  %2202 = vmatpush.msrb.mxu3 %v3071_v58  ;;  %7256 = vst [vmem:[#allocation55_spill] sm:$0xff] %v6094_v9  ;;  %v6104_v58 = vld [vmem:[#allocation6 + $0xc8] sm:$0xff] }
 0x4a1   :  { %2092 = vmatpush.msrb.mxu0 %v6091_v18  ;;  %2130 = vmatpush.msrb.mxu2 %v5653_v56  ;;  %7257 = vst [vmem:[#allocation54_spill] sm:$0xff] %v6101_v2  ;;  %v3077_v18 = vld [vmem:[%s6397_s1 + $0xd8] sm:$0xff]  ;;  %v6111_v56 = vld [vmem:[#allocation6 + $0x90] sm:$0xff] }
 0x4a2   :  { %2111 = vmatpush.msrb.mxu1 %v6094_v9  ;;  %2203 = vmatpush.msrb.mxu3 %v3074_v44  ;;  %7258 = vst [vmem:[#allocation62_spill] sm:$0xff] %v6104_v58  ;;  %v6114_v44 = vld [vmem:[#allocation6 + $0xb0] sm:$0xff] }
 0x4a3   :  { %2093 = vmatpush.msrb.mxu0 %v6101_v2  ;;  %2131 = vmatpush.msrb.mxu2 %v5659_v19  ;;  %7259 = vst [vmem:[#allocation43_spill] sm:$0xff] %v6111_v56  ;;  %v3080_v2 = vld [vmem:[%s6397_s1 + $0xc0] sm:$0xff]  ;;  %v6121_v19 = vld [vmem:[#allocation6 + $0x78] sm:$0xff]  ;;  %v7281_v9 = vld [vmem:[#allocation24_spill] sm:$0xff] }
 0x4a4   :  { %2112 = vmatpush.msrb.mxu1 %v6104_v58  ;;  %2204 = vmatpush.msrb.mxu3 %v3077_v18  ;;  %7260 = vst [vmem:[#allocation81_spill] sm:$0xff] %v6114_v44  ;;  %v6124_v18 = vld [vmem:[#allocation6 + $0x98] sm:$0xff] }
 0x4a5   :  { %2094 = vmatpush.msrb.mxu0 %v6111_v56  ;;  %2132 = vmatpush.msrb.mxu2 %v5665_v28  ;;  %7261 = vst [vmem:[#allocation64_spill] sm:$0xff] %v6121_v19  ;;  %v3083_v56 = vld [vmem:[%s6397_s1 + $0xa8] sm:$0xff]  ;;  %v6131_v28 = vld [vmem:[#allocation6 + $0x60] sm:$0xff] }
 0x4a6   :  { %2113 = vmatpush.msrb.mxu1 %v6114_v44  ;;  %2205 = vmatpush.msrb.mxu3 %v3080_v2  ;;  %7262 = vst [vmem:[#allocation65_spill] sm:$0xff] %v6124_v18  ;;  %v3085_v2 = vld [vmem:[%s6397_s1 + $0x90] sm:$0xff] }
 0x4a7   :  { %2095 = vmatpush.msrb.mxu0 %v6121_v19  ;;  %2133 = vmatpush.msrb.mxu2 %v5671_v57  ;;  %7263 = vst [vmem:[#allocation87_spill] sm:$0xff] %v6131_v28  ;;  %v6139_v19 = vld [vmem:[#allocation6 + $0x48] sm:$0xff]  ;;  %v3087_v57 = vld [vmem:[%s6397_s1 + $0x78] sm:$0xff]  ;;  %v7280_v44 = vld [vmem:[#allocation20_spill] sm:$0xff] }
 0x4a8   :  { %2114 = vmatpush.msrb.mxu1 %v6124_v18  ;;  %2206 = vmatpush.msrb.mxu3 %v3083_v56  ;;  %7264 = vst [vmem:[#allocation66_spill] sm:$0xff] %v6139_v19  ;;  %v3091_v56 = vld [vmem:[%s6397_s1 + $0x48] sm:$0xff] }
 0x4a9   :  { %2096 = vmatpush.msrb.mxu0 %v6131_v28  ;;  %2134 = vmatpush.msrb.mxu2 %v5679_v54  ;;  %v3089_v54 = vld [vmem:[%s6397_s1 + $0x60] sm:$0xff] }
 0x4aa   :  { %2115 = vmatpush.msrb.mxu1 %v5676_v26  ;;  %2207 = vmatpush.msrb.mxu3 %v3085_v2  ;;  %v6147_v26 = vld [vmem:[#allocation6 + $0x30] sm:$0xff]  ;;  %v7270_v2 = vld [vmem:[#allocation21_spill] sm:$0xff] }
 0x4ab   :  { %2097 = vmatpush.msrb.mxu0 %v6139_v19  ;;  %2135 = vmatpush.msrb.mxu2 %v5687_v10  ;;  %7265 = vst [vmem:[#allocation31_spill] sm:$0xff] %v6147_v26  ;;  %v7267_v10 = vld [vmem:[#allocation18_spill] sm:$0xff] }
 0x4ac   :  { %2116 = vmatpush.msrb.mxu1 %v5684_v40  ;;  %2208 = vmatpush.msrb.mxu3 %v3087_v57  ;;  %v6155_v40 = vld [vmem:[#allocation6 + $0x18] sm:$0xff]  ;;  %v7271_v57 = vld [vmem:[#allocation27_spill] sm:$0xff] }
 0x4ad   :  { %2098 = vmatpush.msrb.mxu0 %v6147_v26  ;;  %2136 = vmatpush.msrb.mxu2 %v5695_v61  ;;  %7266 = vst [vmem:[#allocation83_spill] sm:$0xff] %v6155_v40  ;;  %v7269_v61 = vld [vmem:[#allocation91_spill] sm:$0xff] }
 0x4ae   :  { %2117 = vmatpush.msrb.mxu1 %v5692_v38  ;;  %2209 = vmatpush.msrb.mxu3 %v3089_v54  ;;  %v6163_v38 = vld [vmem:[#allocation6] sm:$0xff]  ;;  %v7272_v54 = vld [vmem:[#allocation76_spill] sm:$0xff] }
 0x4af   :  { %2099 = vmatpush.msrb.mxu0 %v6155_v40  ;;  %2137 = vmatpush.msrb.mxu2 %v7267_v10  ;;  %7268 = vst [vmem:[#allocation82_spill] sm:$0xff] %v6163_v38  ;;  %v7273_v10 = vld [vmem:[#allocation49_spill] sm:$0xff] }
 0x4b0   :  { %2118 = vmatpush.msrb.mxu1 %v5700_v1  ;;  %2210 = vmatpush.msrb.mxu3 %v3091_v56  ;;  %v3093_v1 = vld [vmem:[%s6397_s1 + $0x30] sm:$0xff]  ;;  %v7274_v56 = vld [vmem:[#allocation41_spill] sm:$0xff] }
 0x4b1   :  { %2100 = vmatpush.msrb.mxu0 %v6163_v38  ;;  %2138 = vmatpush.msrb.mxu2 %v7271_v57  ;;  %v3094_v38 = vld [vmem:[%s6397_s1 + $0x18] sm:$0xff]  ;;  %v3095_v57 = vld [vmem:[%s6397_s1] sm:$0xff] }
 0x4b2   :  { %2119 = vmatpush.msrb.mxu1 %v7269_v61  ;;  %2211 = vmatpush.msrb.mxu3 %v3093_v1  ;;  %v7275_v61 = vld [vmem:[#allocation45_spill] sm:$0xff]  ;;  %v3096_v1 = vld [vmem:[%s6397_s1 + $0x110] sm:$0xff] }
 0x4b3   :  { %2218 = vmatpush.msra.mxu0 %v7270_v2  ;;  %2139 = vmatpush.msrb.mxu2 %v7274_v56  ;;  %v7276_v2 = vld [vmem:[#allocation51_spill] sm:$0xff] }
 0x4b4   :  { %2120 = vmatpush.msrb.mxu1 %v7272_v54  ;;  %2212 = vmatpush.msrb.mxu3 %v3094_v38  ;;  %v7277_v54 = vld [vmem:[#allocation26_spill] sm:$0xff]  ;;  %v3097_v38 = vld [vmem:[%s6397_s1 + $0xf8] sm:$0xff]  ;;  %v3099_v56 = vld [vmem:[%s6397_s1 + $0xc8] sm:$0xff] }
 0x4b5   :  { %2219 = vmatpush.msra.mxu0 %v7273_v10  ;;  %2140 = vmatpush.msrb.mxu2 %v7276_v2  ;;  %v3098_v10 = vld [vmem:[%s6397_s1 + $0xe0] sm:$0xff]  ;;  %v3101_v2 = vld [vmem:[%s6397_s1 + $0x98] sm:$0xff] }
 0x4b6   :  { %2213 = vmatpush.msrb.mxu3 %v3095_v57  ;;  %v3102_v57 = vld [vmem:[%s6397_s1 + $0x80] sm:$0xff] }
 0x4b7   :  { %2220 = vmatpush.msra.mxu0 %v7275_v61  ;;  %v3100_v61 = vld [vmem:[%s6397_s1 + $0xb0] sm:$0xff] }
 0x4b9   :  { %2221 = vmatpush.msra.mxu0 %v7277_v54  ;;  %v3103_v54 = vld [vmem:[%s6397_s1 + $0x68] sm:$0xff] }
 0x4bb   :  { %2222 = vmatpush.msra.mxu0 %v3096_v1  ;;  %v3104_v1 = vld [vmem:[%s6397_s1 + $0x50] sm:$0xff] }
 0x4bd   :  { %2223 = vmatpush.msra.mxu0 %v3097_v38  ;;  %v3105_v38 = vld [vmem:[%s6397_s1 + $0x38] sm:$0xff] }
 0x4bf   :  { %2224 = vmatpush.msra.mxu0 %v3098_v10  ;;  %v3106_v10 = vld [vmem:[%s6397_s1 + $0x20] sm:$0xff] }
 0x4c1   :  { %2225 = vmatpush.msra.mxu0 %v3099_v56  ;;  %v3107_v56 = vld [vmem:[%s6397_s1 + $0x8] sm:$0xff] }
 0x4c3   :  { %2226 = vmatpush.msra.mxu0 %v3100_v61 }
 0x4c5   :  { %2227 = vmatpush.msra.mxu0 %v3101_v2 }
 0x4c7   :  { %2228 = vmatpush.msra.mxu0 %v3102_v57  ;;  %v7278_v57 = vld [vmem:[#allocation11_spill] sm:$0xff] }
 0x4c9   :  { %2229 = vmatpush.msra.mxu0 %v3103_v54 }
 0x4cb   :  { %2230 = vmatpush.msra.mxu0 %v3104_v1  ;;  %v7279_v1 = vld [vmem:[#allocation72_spill] sm:$0xff] }
 0x4cd   :  { %2231 = vmatpush.msra.mxu0 %v3105_v38 }
 0x4cf   :  { %2232 = vmatpush.msra.mxu0 %v3106_v10 }
 0x4d1   :  { %2233 = vmatpush.msra.mxu0 %v3107_v56  ;;  %v2534_v56 = vld [vmem:[%s6396_s0 + $0x98] sm:$0xff] }
 0x4ef   :  { %v1762_v61 = vpop.f32.mrf.mxu0  ;;  %v1782_v26 = vpop.f32.mrf.mxu1 }
 0x4f0   :  { %v1763_v54 = vadd.f32 %v1762_v61, %v7278_v57  ;;  %v1783_v58 = vadd.f32 %v1782_v26, %v7280_v44 }
 0x4f2   :  { %v1822_v2 = vpop.f32.mrf.mxu3 }
 0x4f3   :  { %v1823_v40 = vadd.f32 %v1822_v2, %v7279_v1 }
 0x4f5   :  { %v1865_v19 = vadd.f32 %v1823_v40, %v1763_v54 }
 0x4f6   :  { %v1802_v28 = vpop.f32.mrf.mxu2 }
 0x4f7   :  { %v2530_v38 = vmul.f32 -1.442695, %v1865_v19  ;;  %v1842_v18 = vpop.f32.mrf.mxu0  ;;  %v2533_v19 = vld [vmem:[%s6396_s0 + $0x90] sm:$0xff]  ;;  %v1803_v50 = vadd.f32 %v1802_v28, %v7285_v59 }
 0x4f8   :  { %v1843_v10 = vadd.f32 %v1842_v18, %v7281_v9  ;;  %v7283_v18 = vld [vmem:[#allocation78_spill] sm:$0xff] }
 0x4f9   :  { %2665 = vpow2.f32 %v2530_v38 }
 0x4fa   :  { %v1885_v8 = vadd.f32 %v1843_v10, %v1783_v58  ;;  %v1955_v11 = vpop.f32.mrf.mxu3 }
 0x4fb   :  { %v1956_v61 = vadd.f32 %v1955_v11, %v7282_v7 }
 0x4fc   :  { %v2531_v57 = vmul.f32 -1.442695, %v1885_v8 }
 0x4fd   :  { %v1998_v2 = vadd.f32 %v2534_v56, %v1956_v61 }
 0x4fe   :  { %2667 = vpow2.f32 %v2531_v57  ;;  %v1935_v40 = vpop.f32.mrf.mxu2 }
 0x4ff   :  { %v2666_v26 = vpop.eup %2665  ;;  %v2537_v54 = vmul.f32 -1.442695, %v1998_v2  ;;  %v1936_v38 = vadd.f32 %v1935_v40, %v7283_v18 }
 0x500   :  { %v1869_v58 = vadd.f32 1.0, %v2666_v26 }
 0x501   :  { %2669 = vpow2.f32 %v2537_v54  ;;  %v1978_v10 = vadd.f32 %v2533_v19, %v1936_v38 }
 0x502   :  { %2671 = vrcp.f32 %v1869_v58  ;;  %v1881_v7 = vand.u32 2147483648, %v1869_v58  ;;  %v1879_v19 = vand.u32 2147483647, %v1869_v58  ;;  %vm1875_vm9 = vweird.f32 %v1869_v58 }
 0x503   :  { %v2536_v9 = vmul.f32 -1.442695, %v1978_v10  ;;  %v1862_v10 = vpop.f32.mrf.mxu1 }
 0x504   :  { %v2668_v44 = vpop.eup %2667  ;;  %v1882_v18 = vor.u32 1.1754944e-38, %v1881_v7  ;;  %v1863_v24 = vadd.f32 %v1862_v10, %v7284_v35  ;;  %vm1880_vm11 = vcmp.eq.f32.partialorder %v1879_v19, 8.507059e+37 }
 0x505   :  { %v1889_v1 = vadd.f32 1.0, %v2668_v44  ;;  %2673 = vpow2.f32 %v2536_v9 }
 0x507   :  { %v2670_v11 = vpop.eup %2669  ;;  %2675 = vrcp.f32 %v1889_v1  ;;  %v1901_v33 = vand.u32 2147483648, %v1889_v1  ;;  %vm1895_vm13 = vweird.f32 %v1889_v1 }
 0x508   :  { %v2672_v8 = vpop.eup %2671  ;;  %v6232_v57 = vadd.f32 1.0, %v2670_v11 }
 0x509   :  { %v1871_v56 = vmul.f32 %v2672_v8, %v1869_v58  ;;  %vm1876_vm8 = vweird.f32 %v2672_v8  ;;  %v1902_v19 = vor.u32 1.1754944e-38, %v1901_v33 }
 0x50a   :  { %2677 = vrcp.f32 %v6232_v57  ;;  %vm1877_vm10 = vmor %vm1875_vm9, %vm1876_vm8  ;;  %vm2008_vm5 = vweird.f32 %v6232_v57 }
 0x50b   :  { %v2674_v61 = vpop.eup %2673  ;;  %v1872_v2 = vsub.f32 1.0, %v1871_v56 }
 0x50c   :  { %v1982_v40 = vadd.f32 1.0, %v2674_v61 }
 0x50d   :  { %v2676_v26 = vpop.eup %2675  ;;  %v1873_v54 = vmul.f32 %v2672_v8, %v1872_v2 }
 0x50e   :  { %v1891_v38 = vmul.f32 %v2676_v26, %v1889_v1  ;;  %2679 = vrcp.f32 %v1982_v40  ;;  %vm1896_vm12 = vweird.f32 %v2676_v26  ;;  %v1992_v28 = vand.u32 2147483647, %v1982_v40 }
 0x50f   :  { %v1874_v9 = vadd.f32 %v2672_v8, %v1873_v54  ;;  %vm1897_vm14 = vmor %vm1895_vm13, %vm1896_vm12  ;;  %vm1988_vm1 = vweird.f32 %v1982_v40 }
 0x510   :  { %v6235_v44 = vpop.eup %2677  ;;  %v1892_v11 = vsub.f32 1.0, %v1891_v38  ;;  %v1899_v38 = vand.u32 2147483647, %v1889_v1  ;;  %vm1993_vm4 = vcmp.eq.f32.partialorder %v1992_v28, 8.507059e+37  ;;  %v3126_v28 = vld [vmem:[#allocation6 + $0x160] sm:$0xff] }
 0x511   :  { %v1878_v23 = vsel %vm1877_vm10, %v2672_v8, %v1874_v9  ;;  %v2004_v2 = vmul.f32 %v6235_v44, %v6232_v57  ;;  %vm2009_vm3 = vweird.f32 %v6235_v44 }
 0x512   :  { %v1893_v56 = vmul.f32 %v2676_v26, %v1892_v11  ;;  %v1883_v61 = vsel %vm1880_vm11, %v1882_v18, %v1878_v23  ;;  %vm1900_vm15 = vcmp.eq.f32.partialorder %v1899_v38, 8.507059e+37  ;;  %v1994_v23 = vand.u32 2147483648, %v1982_v40  ;;  %vm2010_vm6 = vmor %vm2008_vm5, %vm2009_vm3 }
 0x513   :  { %v1905_v54 = vmul.f32 %v1883_v61, %v1863_v24  ;;  %v2005_v8 = vsub.f32 1.0, %v2004_v2  ;;  %v1975_v61 = vpop.f32.mrf.mxu0  ;;  %v2014_v38 = vand.u32 2147483648, %v6232_v57 }
 0x514   :  { %v2680_v58 = vpop.eup %2679  ;;  %v1894_v42 = vadd.f32 %v2676_v26, %v1893_v56  ;;  %v1976_v33 = vadd.f32 %v1975_v61, %v3850_v49  ;;  %v7305_v61 = vld [vmem:[#allocation33_spill] sm:$0xff] }
 0x515   :  { %v1906_v7 = vadd.f32 %v1905_v54, %v1803_v50  ;;  %v1984_v48 = vmul.f32 %v2680_v58, %v1982_v40  ;;  %vm1989_vm0 = vweird.f32 %v2680_v58  ;;  %v2006_v24 = vmul.f32 %v6235_v44, %v2005_v8 }
 0x516   :  { %v1898_v10 = vsel %vm1897_vm14, %v2676_v26, %v1894_v42  ;;  %vm1990_vm2 = vmor %vm1988_vm1, %vm1989_vm0  ;;  %v1995_v50 = vor.u32 1.1754944e-38, %v1994_v23  ;;  %v2535_v26 = vld [vmem:[%s6396_s0 + $0xa0] sm:$0xff] }
 0x517   :  { %2681 = vtanh.f32 %v1906_v7  ;;  %v1985_v9 = vsub.f32 1.0, %v1984_v48  ;;  %v1903_v18 = vsel %vm1900_vm15, %v1902_v19, %v1898_v10  ;;  %v2007_v54 = vadd.f32 %v6235_v44, %v2006_v24  ;;  %v7304_v24 = vld [vmem:[#allocation69_spill] sm:$0xff] }
 0x518   :  { %v1908_v1 = vsub.f32 1.0, %v1903_v18  ;;  %v1910_v40 = vmul.f32 %v1903_v18, %v5808_v32  ;;  %v2012_v10 = vand.u32 2147483647, %v6232_v57  ;;  %v2015_v32 = vor.u32 1.1754944e-38, %v2014_v38  ;;  %v7312_v38 = vld [vmem:[#allocation55_spill] sm:$0xff] }
 0x519   :  { %v1986_v11 = vmul.f32 %v2680_v58, %v1985_v9 }
 0x51a   :  { %vm2013_vm7 = vcmp.eq.f32.partialorder %v2012_v10, 8.507059e+37  ;;  %v3131_v10 = vld [vmem:[#allocation6 + $0xe8] sm:$0xff] }
 0x51b   :  { %v1987_v59 = vadd.f32 %v2680_v58, %v1986_v11  ;;  %v7303_v11 = vld [vmem:[#allocation68_spill] sm:$0xff] }
 0x51d   :  { %v2682_v56 = vpop.eup %2681  ;;  %v1991_v48 = vsel %vm1990_vm2, %v2680_v58, %v1987_v59  ;;  %v2011_v58 = vsel %vm2010_vm6, %v6235_v44, %v2007_v54  ;;  %v7311_v54 = vld [vmem:[#allocation38_spill] sm:$0xff] }
 0x51e   :  { %v1909_v42 = vmul.f32 %v2682_v56, %v1908_v1  ;;  %v1996_v2 = vsel %vm1993_vm4, %v1995_v50, %v1991_v48  ;;  %v2016_v19 = vsel %vm2013_vm7, %v2015_v32, %v2011_v58  ;;  %v3127_v1 = vld [vmem:[#allocation6 + $0x148] sm:$0xff]  ;;  %v7306_v50 = vld [vmem:[#allocation37_spill] sm:$0xff]  ;;  %v7307_v56 = vld [vmem:[#allocation80_spill] sm:$0xff] }
 0x51f   :  { %v2018_v7 = vmul.f32 %v1996_v2, %v1976_v33  ;;  %v2021_v57 = vsub.f32 1.0, %v2016_v19  ;;  %v2023_v23 = vmul.f32 %v2016_v19, %v5816_v63  ;;  %v3109_v63 = vld [vmem:[#allocation4 + $0xe8] sm:$0xff]  ;;  %v3128_v33 = vld [vmem:[#allocation6 + $0x130] sm:$0xff]  ;;  %v7308_v48 = vld [vmem:[#allocation58_spill] sm:$0xff] }
 0x520   :  { %v6252_v8 = vadd.f32 %v1910_v40, %v1909_v42  ;;  %v7309_v42 = vld [vmem:[#allocation48_spill] sm:$0xff]  ;;  %v7310_v2 = vld [vmem:[#allocation75_spill] sm:$0xff]  ;;  %v3130_v40 = vld [vmem:[#allocation6 + $0x100] sm:$0xff] }
 0x521   :  { %v2019_v59 = vadd.f32 %v2535_v26, %v2018_v7  ;;  %v3129_v26 = vld [vmem:[#allocation6 + $0x118] sm:$0xff]  ;;  %v7313_v7 = vld [vmem:[#allocation60_spill] sm:$0xff]  ;;  %v7315_v58 = vld [vmem:[#allocation54_spill] sm:$0xff] }
 0x522   :  { %2532 = vst [vmem:[%s6403_s7 + $0x28] sm:$0xff] %v6252_v8  ;;  %2101 = vmatmul.f32.vlgmr.msrb.gmra.mxu0 %v6252_v8  ;;  %v3132_v32 = vld [vmem:[#allocation6 + $0xd0] sm:$0xff]  ;;  %v7316_v19 = vld [vmem:[#allocation81_spill] sm:$0xff] }
 0x523   :  { %2683 = vtanh.f32 %v2019_v59  ;;  %2345 = vmatpush.msrb.mxu0 %v5818_v4  ;;  %v3108_v4 = vld [vmem:[#allocation4 + $0x170] sm:$0xff]  ;;  %v7314_v59 = vld [vmem:[#allocation62_spill] sm:$0xff] }
 0x525   :  { %2346 = vmatpush.msrb.mxu0 %v5840_v46  ;;  %v3110_v46 = vld [vmem:[#allocation4 + $0x158] sm:$0xff] }
 0x527   :  { %2347 = vmatpush.msrb.mxu0 %v5864_v0  ;;  %v3111_v0 = vld [vmem:[#allocation4 + $0x140] sm:$0xff] }
 0x529   :  { %v2684_v9 = vpop.eup %2683  ;;  %2348 = vmatpush.msrb.mxu0 %v5886_v62  ;;  %v7289_v62 = vld [vmem:[#allocation30_spill] sm:$0xff] }
 0x52a   :  { %v2022_v44 = vmul.f32 %v2684_v9, %v2021_v57  ;;  %v7317_v57 = vld [vmem:[#allocation43_spill] sm:$0xff]  ;;  %v3133_v9 = vld [vmem:[#allocation6 + $0xb8] sm:$0xff] }
 0x52b   :  { %2349 = vmatpush.msrb.mxu0 %v5899_v52  ;;  %v7291_v52 = vld [vmem:[#allocation57_spill] sm:$0xff] }
 0x52c   :  { %v6266_v18 = vadd.f32 %v2023_v23, %v2022_v44  ;;  %v7318_v44 = vld [vmem:[#allocation65_spill] sm:$0xff]  ;;  %v7319_v23 = vld [vmem:[#allocation64_spill] sm:$0xff] }
 0x52d   :  { %2350 = vmatpush.msrb.mxu0 %v5912_v30  ;;  %v7293_v30 = vld [vmem:[#allocation40_spill] sm:$0xff] }
 0x52e   :  { %2041 = vmatmul.f32.vlgmr.msra.gmra.mxu1 %v6266_v18  ;;  %2061 = vmatmul.f32.vlgmr.msra.gmra.mxu2 %v6266_v18 }
 0x52f   :  { %2081 = vmatmul.f32.vlgmr.msra.gmra.mxu3 %v6266_v18  ;;  %2234 = vmatmul.f32.vlgmr.msra.gmra.mxu0 %v6266_v18 }
 0x530   :  { %2238 = vmatpush.msra.mxu1 %v5827_v21  ;;  %2305 = vmatpush.msra.mxu2 %v5830_v14  ;;  %v3112_v21 = vld [vmem:[#allocation4 + $0x128] sm:$0xff]  ;;  %v3113_v14 = vld [vmem:[#allocation4 + $0x110] sm:$0xff] }
 0x531   :  { %2325 = vmatpush.msra.mxu3 %v3108_v4  ;;  %2351 = vmatpush.msrb.mxu0 %v3109_v63  ;;  %v3134_v4 = vld [vmem:[#allocation6 + $0xa0] sm:$0xff] }
 0x532   :  { %2239 = vmatpush.msra.mxu1 %v5837_v12  ;;  %2306 = vmatpush.msra.mxu2 %v5843_v31  ;;  %v3114_v12 = vld [vmem:[#allocation4 + $0xf8] sm:$0xff]  ;;  %v3115_v31 = vld [vmem:[#allocation4 + $0xe0] sm:$0xff] }
 0x533   :  { %2326 = vmatpush.msra.mxu3 %v3110_v46  ;;  %2352 = vmatpush.msrb.mxu0 %v5936_v36  ;;  %v7296_v36 = vld [vmem:[#allocation29_spill] sm:$0xff]  ;;  %v3135_v63 = vld [vmem:[#allocation6 + $0x80] sm:$0xff]  ;;  %v7320_v46 = vld [vmem:[#allocation87_spill] sm:$0xff] }
 0x534   :  { %2240 = vmatpush.msra.mxu1 %v5850_v37  ;;  %2307 = vmatpush.msra.mxu2 %v5854_v15  ;;  %v3116_v37 = vld [vmem:[#allocation4 + $0xc8] sm:$0xff]  ;;  %v3117_v15 = vld [vmem:[#allocation4 + $0xb0] sm:$0xff] }
 0x535   :  { %2327 = vmatpush.msra.mxu3 %v3111_v0  ;;  %2353 = vmatpush.msrb.mxu0 %v5949_v22  ;;  %v7298_v22 = vld [vmem:[#allocation59_spill] sm:$0xff] }
 0x536   :  { %2241 = vmatpush.msra.mxu1 %v5861_v41  ;;  %2141 = vmatmul.f32.vlgmr.msrb.gmra.mxu2 %v6252_v8  ;;  %v7286_v41 = vld [vmem:[#allocation46_spill] sm:$0xff]  ;;  %v3136_v0 = vld [vmem:[#allocation6 + $0x88] sm:$0xff] }
 0x537   :  { %2121 = vmatmul.f32.vlgmr.msrb.gmra.mxu1 %v6252_v8  ;;  %2214 = vmatmul.f32.vlgmr.msrb.gmra.mxu3 %v6266_v18 }
 0x538   :  { %2242 = vmatpush.msra.mxu1 %v5873_v55  ;;  %2308 = vmatpush.msra.mxu2 %v5876_v27  ;;  %v3118_v55 = vld [vmem:[#allocation4 + $0x98] sm:$0xff]  ;;  %v7287_v27 = vld [vmem:[#allocation44_spill] sm:$0xff] }
 0x539   :  { %2328 = vmatpush.msra.mxu3 %v3112_v21  ;;  %2354 = vmatpush.msrb.mxu0 %v5962_v20  ;;  %v7299_v20 = vld [vmem:[#allocation34_spill] sm:$0xff]  ;;  %v3137_v21 = vld [vmem:[#allocation6 + $0x68] sm:$0xff] }
 0x53a   :  { %2243 = vmatpush.msra.mxu1 %v5883_v47  ;;  %2309 = vmatpush.msra.mxu2 %v5889_v13  ;;  %v7288_v47 = vld [vmem:[#allocation53_spill] sm:$0xff]  ;;  %v3119_v13 = vld [vmem:[#allocation4 + $0x80] sm:$0xff] }
 0x53b   :  { %2329 = vmatpush.msra.mxu3 %v3113_v14  ;;  %2355 = vmatpush.msrb.mxu0 %v5975_v6  ;;  %v3124_v6 = vld [vmem:[#allocation4 + $0x8] sm:$0xff]  ;;  %v7321_v14 = vld [vmem:[#allocation66_spill] sm:$0xff] }
 0x53c   :  { %2244 = vmatpush.msra.mxu1 %v5896_v39  ;;  %2310 = vmatpush.msra.mxu2 %v5902_v45  ;;  %v7290_v39 = vld [vmem:[#allocation39_spill] sm:$0xff] }
 0x53d   :  { %2330 = vmatpush.msra.mxu3 %v3114_v12  ;;  %2356 = vmatpush.msrb.mxu0 %v5988_v17  ;;  %v3120_v45 = vld [vmem:[#allocation4 + $0x68] sm:$0xff]  ;;  %v7300_v17 = vld [vmem:[#allocation73_spill] sm:$0xff]  ;;  %v3138_v12 = vld [vmem:[#allocation6 + $0x70] sm:$0xff] }
 0x53e   :  { %2245 = vmatpush.msra.mxu1 %v5909_v25  ;;  %2311 = vmatpush.msra.mxu2 %v5915_v3  ;;  %v7292_v25 = vld [vmem:[#allocation61_spill] sm:$0xff]  ;;  %v3121_v3 = vld [vmem:[#allocation4 + $0x50] sm:$0xff] }
 0x53f   :  { %2331 = vmatpush.msra.mxu3 %v3115_v31  ;;  %2357 = vmatpush.msrb.mxu0 %v6001_v43  ;;  %v3125_v43 = vld [vmem:[#allocation6 + $0x178] sm:$0xff]  ;;  %v3139_v31 = vld [vmem:[#allocation6 + $0x50] sm:$0xff] }
 0x540   :  { %2246 = vmatpush.msra.mxu1 %v5922_v53  ;;  %2312 = vmatpush.msra.mxu2 %v5926_v60  ;;  %v7294_v53 = vld [vmem:[#allocation42_spill] sm:$0xff]  ;;  %v7295_v60 = vld [vmem:[#allocation47_spill] sm:$0xff] }
 0x541   :  { %2332 = vmatpush.msra.mxu3 %v3116_v37  ;;  %2358 = vmatpush.msrb.mxu0 %v6014_v29  ;;  %v7301_v29 = vld [vmem:[#allocation67_spill] sm:$0xff] }
 0x542   :  { %2247 = vmatpush.msra.mxu1 %v5933_v5  ;;  %2313 = vmatpush.msra.mxu2 %v5939_v34  ;;  %v3122_v5 = vld [vmem:[#allocation4 + $0x38] sm:$0xff]  ;;  %v7297_v34 = vld [vmem:[#allocation63_spill] sm:$0xff] }
 0x543   :  { %2333 = vmatpush.msra.mxu3 %v3117_v15  ;;  %2359 = vmatpush.msrb.mxu0 %v6028_v16  ;;  %v7302_v16 = vld [vmem:[#allocation52_spill] sm:$0xff]  ;;  %v7322_v37 = vld [vmem:[#allocation31_spill] sm:$0xff]  ;;  %v3140_v15 = vld [vmem:[#allocation6 + $0x58] sm:$0xff] }
 0x544   :  { %2248 = vmatpush.msra.mxu1 %v5946_v51  ;;  %2314 = vmatpush.msra.mxu2 %v7286_v41  ;;  %v3123_v51 = vld [vmem:[#allocation4 + $0x20] sm:$0xff]  ;;  %v3141_v41 = vld [vmem:[#allocation6 + $0x38] sm:$0xff] }
 0x545   :  { %2334 = vmatpush.msra.mxu3 %v3118_v55  ;;  %2360 = vmatpush.msrb.mxu0 %v7287_v27  ;;  %v7323_v55 = vld [vmem:[#allocation83_spill] sm:$0xff]  ;;  %v3142_v27 = vld [vmem:[#allocation6 + $0x40] sm:$0xff] }
 0x546   :  { %2249 = vmatpush.msra.mxu1 %v7288_v47  ;;  %2315 = vmatpush.msra.mxu2 %v7289_v62  ;;  %v3143_v47 = vld [vmem:[#allocation6 + $0x20] sm:$0xff] }
 0x547   :  { %2335 = vmatpush.msra.mxu3 %v3119_v13  ;;  %v7324_v62 = vld [vmem:[#allocation82_spill] sm:$0xff]  ;;  %v3144_v13 = vld [vmem:[#allocation6 + $0x28] sm:$0xff] }
 0x548   :  { %2250 = vmatpush.msra.mxu1 %v7290_v39  ;;  %2316 = vmatpush.msra.mxu2 %v7291_v52  ;;  %v3145_v39 = vld [vmem:[#allocation6 + $0x8] sm:$0xff]  ;;  %v3146_v52 = vld [vmem:[#allocation6 + $0x10] sm:$0xff] }
 0x549   :  { %2336 = vmatpush.msra.mxu3 %v3120_v45 }
 0x54a   :  { %2251 = vmatpush.msra.mxu1 %v7292_v25  ;;  %2317 = vmatpush.msra.mxu2 %v7293_v30  ;;  %v7325_v30 = vld [vmem:[#allocation72_spill] sm:$0xff] }
 0x54b   :  { %2337 = vmatpush.msra.mxu3 %v3121_v3 }
 0x54c   :  { %2252 = vmatpush.msra.mxu1 %v7294_v53  ;;  %2318 = vmatpush.msra.mxu2 %v7295_v60  ;;  %v7326_v53 = vld [vmem:[#allocation11_spill] sm:$0xff] }
 0x54d   :  { %2338 = vmatpush.msra.mxu3 %v3122_v5 }
 0x54e   :  { %2253 = vmatpush.msra.mxu1 %v7296_v36  ;;  %2319 = vmatpush.msra.mxu2 %v7297_v34  ;;  %v2542_v36 = vld [vmem:[%s6396_s0 + $0xb0] sm:$0xff]  ;;  %v7327_v34 = vld [vmem:[#allocation79_spill] sm:$0xff] }
 0x54f   :  { %2254 = vmatmul.f32.vlgmr.msra.gmra.mxu1 %v6266_v18  ;;  %2339 = vmatpush.msra.mxu3 %v3123_v51 }
 0x550   :  { %2365 = vmatpush.msrb.mxu1 %v7298_v22  ;;  %2320 = vmatpush.msra.mxu2 %v7299_v20 }
 0x551   :  { %2340 = vmatpush.msra.mxu3 %v3124_v6 }
 0x552   :  { %2385 = vmatpush.msrb.mxu2 %v7300_v17  ;;  %2366 = vmatpush.msrb.mxu1 %v7301_v29 }
 0x553   :  { %2405 = vmatpush.msrb.mxu3 %v3125_v43 }
 0x554   :  { %2386 = vmatpush.msrb.mxu2 %v7302_v16  ;;  %2367 = vmatpush.msrb.mxu1 %v7303_v11  ;;  %v7328_v11 = vld [vmem:[#allocation20_spill] sm:$0xff] }
 0x555   :  { %2406 = vmatpush.msrb.mxu3 %v3126_v28 }
 0x556   :  { %2387 = vmatpush.msrb.mxu2 %v7304_v24  ;;  %2368 = vmatpush.msrb.mxu1 %v7305_v61  ;;  %v7329_v24 = vld [vmem:[#allocation24_spill] sm:$0xff] }
 0x557   :  { %2407 = vmatpush.msrb.mxu3 %v3127_v1 }
 0x558   :  { %2388 = vmatpush.msrb.mxu2 %v7306_v50  ;;  %2369 = vmatpush.msrb.mxu1 %v7307_v56 }
 0x559   :  { %2408 = vmatpush.msrb.mxu3 %v3128_v33 }
 0x55a   :  { %2389 = vmatpush.msrb.mxu2 %v7308_v48  ;;  %2370 = vmatpush.msrb.mxu1 %v7309_v42  ;;  %v2541_v42 = vld [vmem:[%s6396_s0 + $0xa8] sm:$0xff] }
 0x55b   :  { %2409 = vmatpush.msrb.mxu3 %v3129_v26  ;;  %v7330_v26 = vld [vmem:[#allocation78_spill] sm:$0xff] }
 0x55c   :  { %2390 = vmatpush.msrb.mxu2 %v7310_v2  ;;  %2371 = vmatpush.msrb.mxu1 %v7311_v54 }
 0x55d   :  { %2410 = vmatpush.msrb.mxu3 %v3130_v40 }
 0x55e   :  { %2391 = vmatpush.msrb.mxu2 %v7312_v38  ;;  %2372 = vmatpush.msrb.mxu1 %v7313_v7 }
 0x55f   :  { %2411 = vmatpush.msrb.mxu3 %v3131_v10 }
 0x560   :  { %2392 = vmatpush.msrb.mxu2 %v7314_v59  ;;  %2373 = vmatpush.msrb.mxu1 %v7315_v58 }
 0x561   :  { %2412 = vmatpush.msrb.mxu3 %v3132_v32 }
 0x562   :  { %2393 = vmatpush.msrb.mxu2 %v7316_v19  ;;  %2374 = vmatpush.msrb.mxu1 %v7317_v57 }
 0x563   :  { %2413 = vmatpush.msrb.mxu3 %v3133_v9 }
 0x564   :  { %2394 = vmatpush.msrb.mxu2 %v7318_v44  ;;  %2375 = vmatpush.msrb.mxu1 %v7319_v23 }
 0x565   :  { %2414 = vmatpush.msrb.mxu3 %v3134_v4 }
 0x566   :  { %2395 = vmatpush.msrb.mxu2 %v3135_v63  ;;  %2376 = vmatpush.msrb.mxu1 %v7320_v46 }
 0x567   :  { %2415 = vmatpush.msrb.mxu3 %v3136_v0 }
 0x568   :  { %2396 = vmatpush.msrb.mxu2 %v3137_v21  ;;  %2377 = vmatpush.msrb.mxu1 %v7321_v14 }
 0x569   :  { %2416 = vmatpush.msrb.mxu3 %v3138_v12 }
 0x56a   :  { %2397 = vmatpush.msrb.mxu2 %v3139_v31  ;;  %2378 = vmatpush.msrb.mxu1 %v7322_v37 }
 0x56b   :  { %2417 = vmatpush.msrb.mxu3 %v3140_v15  ;;  %v7331_v15 = vld [vmem:[#allocation23_spill] sm:$0xff] }
 0x56c   :  { %2398 = vmatpush.msrb.mxu2 %v3141_v41  ;;  %2379 = vmatpush.msrb.mxu1 %v7323_v55 }
 0x56d   :  { %2418 = vmatpush.msrb.mxu3 %v3142_v27 }
 0x56e   :  { %2399 = vmatpush.msrb.mxu2 %v3143_v47  ;;  %2380 = vmatpush.msrb.mxu1 %v7324_v62 }
 0x56f   :  { %2419 = vmatpush.msrb.mxu3 %v3144_v13 }
 0x570   :  { %2400 = vmatpush.msrb.mxu2 %v3145_v39 }
 0x571   :  { %2420 = vmatpush.msrb.mxu3 %v3146_v52 }
 0x59f   :  { %v2102_v45 = vpop.f32.mrf.mxu0 }
 0x5a0   :  { %v2103_v3 = vadd.f32 %v2102_v45, %v7325_v30 }
 0x5ab   :  { %v2042_v25 = vpop.f32.mrf.mxu1 }
 0x5ac   :  { %v2043_v60 = vadd.f32 %v2042_v25, %v7326_v53  ;;  %v2235_v5 = vpop.f32.mrf.mxu0 }
 0x5ad   :  { %v2236_v51 = vadd.f32 %v2235_v5, %v7327_v34 }
 0x5ae   :  { %v2145_v22 = vadd.f32 %v2103_v3, %v2043_v60 }
 0x5af   :  { %v2278_v6 = vadd.f32 %v2542_v36, %v2236_v51 }
 0x5b0   :  { %v2538_v20 = vmul.f32 -1.442695, %v2145_v22 }
 0x5b1   :  { %v2062_v17 = vpop.f32.mrf.mxu2  ;;  %v2545_v43 = vmul.f32 -1.442695, %v2278_v6 }
 0x5b2   :  { %2685 = vpow2.f32 %v2538_v20  ;;  %v2082_v29 = vpop.f32.mrf.mxu3  ;;  %v2063_v28 = vadd.f32 %v2062_v17, %v7328_v11 }
 0x5b3   :  { %2687 = vpow2.f32 %v2545_v43  ;;  %v2083_v41 = vadd.f32 %v2082_v29, %v7331_v15 }
 0x5b4   :  { %v2122_v16 = vpop.f32.mrf.mxu1 }
 0x5b5   :  { %v2123_v61 = vadd.f32 %v2122_v16, %v7329_v24 }
 0x5b7   :  { %v2165_v1 = vadd.f32 %v2123_v61, %v2063_v28 }
 0x5b8   :  { %v2686_v50 = vpop.eup %2685 }
 0x5b9   :  { %v2149_v56 = vadd.f32 1.0, %v2686_v50  ;;  %v2539_v33 = vmul.f32 -1.442695, %v2165_v1  ;;  %v2688_v54 = vpop.eup %2687  ;;  %v2142_v23 = vpop.f32.mrf.mxu2 }
 0x5ba   :  { %v2215_v48 = vpop.f32.mrf.mxu3  ;;  %v6356_v10 = vadd.f32 1.0, %v2688_v54  ;;  %v2143_v21 = vadd.f32 %v2142_v23, %v7284_v35 }
 0x5bb   :  { %2689 = vrcp.f32 %v2149_v56  ;;  %v2216_v2 = vadd.f32 %v2215_v48, %v7330_v26  ;;  %v2161_v57 = vand.u32 2147483648, %v2149_v56  ;;  %v2159_v44 = vand.u32 2147483647, %v2149_v56 }
 0x5bc   :  { %2691 = vpow2.f32 %v2539_v33  ;;  %vm2155_vm9 = vweird.f32 %v2149_v56  ;;  %vm2288_vm5 = vweird.f32 %v6356_v10 }
 0x5bd   :  { %v2258_v40 = vadd.f32 %v2541_v42, %v2216_v2  ;;  %v2162_v46 = vor.u32 1.1754944e-38, %v2161_v57  ;;  %vm2160_vm11 = vcmp.eq.f32.partialorder %v2159_v44, 8.507059e+37  ;;  %v2543_v42 = vld [vmem:[%s6396_s0 + $0xb8] sm:$0xff] }
 0x5bf   :  { %v2544_v38 = vmul.f32 -1.442695, %v2258_v40 }
 0x5c1   :  { %v2690_v7 = vpop.eup %2689  ;;  %2693 = vpow2.f32 %v2544_v38  ;;  %v2294_v38 = vand.u32 2147483648, %v6356_v10 }
 0x5c2   :  { %v2151_v59 = vmul.f32 %v2690_v7, %v2149_v56  ;;  %v2692_v58 = vpop.eup %2691  ;;  %2695 = vrcp.f32 %v6356_v10  ;;  %vm2156_vm8 = vweird.f32 %v2690_v7 }
 0x5c3   :  { %v2169_v32 = vadd.f32 1.0, %v2692_v58  ;;  %vm2157_vm10 = vmor %vm2155_vm9, %vm2156_vm8 }
 0x5c4   :  { %v2152_v19 = vsub.f32 1.0, %v2151_v59  ;;  %v2295_v59 = vor.u32 1.1754944e-38, %v2294_v38 }
 0x5c5   :  { %2697 = vrcp.f32 %v2169_v32  ;;  %v2181_v39 = vand.u32 2147483648, %v2169_v32  ;;  %v2179_v25 = vand.u32 2147483647, %v2169_v32  ;;  %vm2175_vm13 = vweird.f32 %v2169_v32 }
 0x5c6   :  { %v2153_v9 = vmul.f32 %v2690_v7, %v2152_v19 }
 0x5c7   :  { %v2694_v4 = vpop.eup %2693  ;;  %v2182_v36 = vor.u32 1.1754944e-38, %v2181_v39  ;;  %vm2180_vm15 = vcmp.eq.f32.partialorder %v2179_v25, 8.507059e+37 }
 0x5c8   :  { %v2154_v63 = vadd.f32 %v2690_v7, %v2153_v9  ;;  %v2262_v0 = vadd.f32 1.0, %v2694_v4  ;;  %v2696_v12 = vpop.eup %2695 }
 0x5c9   :  { %v2284_v62 = vmul.f32 %v2696_v12, %v6356_v10  ;;  %vm2289_vm4 = vweird.f32 %v2696_v12 }
 0x5ca   :  { %v2158_v14 = vsel %vm2157_vm10, %v2690_v7, %v2154_v63  ;;  %2699 = vrcp.f32 %v2262_v0  ;;  %v2274_v22 = vand.u32 2147483648, %v2262_v0  ;;  %v2272_v29 = vand.u32 2147483647, %v2262_v0  ;;  %vm2290_vm6 = vmor %vm2288_vm5, %vm2289_vm4 }
 0x5cb   :  { %v2163_v31 = vsel %vm2160_vm11, %v2162_v46, %v2158_v14  ;;  %v2698_v37 = vpop.eup %2697  ;;  %v2285_v60 = vsub.f32 1.0, %v2284_v62  ;;  %vm2268_vm1 = vweird.f32 %v2262_v0 }
 0x5cc   :  { %v2185_v55 = vmul.f32 %v2163_v31, %v2143_v21  ;;  %v2171_v27 = vmul.f32 %v2698_v37, %v2169_v32  ;;  %vm2176_vm12 = vweird.f32 %v2698_v37  ;;  %v2255_v16 = vpop.f32.mrf.mxu1  ;;  %v2275_v50 = vor.u32 1.1754944e-38, %v2274_v22 }
 0x5cd   :  { %vm2177_vm14 = vmor %vm2175_vm13, %vm2176_vm12  ;;  %v2286_v28 = vmul.f32 %v2696_v12, %v2285_v60  ;;  %v2256_v33 = vadd.f32 %v2255_v16, %v3850_v49  ;;  %vm2273_vm3 = vcmp.eq.f32.partialorder %v2272_v29, 8.507059e+37  ;;  %v2292_v49 = vand.u32 2147483647, %v6356_v10 }
 0x5ce   :  { %v2186_v47 = vadd.f32 %v2185_v55, %v2083_v41  ;;  %v2172_v13 = vsub.f32 1.0, %v2171_v27 }
 0x5cf   :  { %v2287_v54 = vadd.f32 %v2696_v12, %v2286_v28  ;;  %vm2293_vm7 = vcmp.eq.f32.partialorder %v2292_v49, 8.507059e+37 }
 0x5d0   :  { %2701 = vtanh.f32 %v2186_v47  ;;  %v2700_v52 = vpop.eup %2699  ;;  %v2173_v45 = vmul.f32 %v2698_v37, %v2172_v13 }
 0x5d1   :  { %v2264_v3 = vmul.f32 %v2700_v52, %v2262_v0  ;;  %vm2269_vm0 = vweird.f32 %v2700_v52  ;;  %v2291_v7 = vsel %vm2290_vm6, %v2696_v12, %v2287_v54 }
 0x5d2   :  { %v2174_v5 = vadd.f32 %v2698_v37, %v2173_v45  ;;  %vm2270_vm2 = vmor %vm2268_vm1, %vm2269_vm0  ;;  %v2296_v58 = vsel %vm2293_vm7, %v2295_v59, %v2291_v7 }
 0x5d3   :  { %v2265_v34 = vsub.f32 1.0, %v2264_v3  ;;  %v2301_v32 = vsub.f32 1.0, %v2296_v58  ;;  %v2303_v9 = vmul.f32 %v2296_v58, %v6266_v18 }
 0x5d4   :  { %v2178_v51 = vsel %vm2177_vm14, %v2698_v37, %v2174_v5 }
 0x5d5   :  { %v2183_v6 = vsel %vm2180_vm15, %v2182_v36, %v2178_v51  ;;  %v2266_v17 = vmul.f32 %v2700_v52, %v2265_v34 }
 0x5d6   :  { %v2702_v20 = vpop.eup %2701  ;;  %v2188_v43 = vsub.f32 1.0, %v2183_v6  ;;  %v2190_v56 = vmul.f32 %v2183_v6, %v6252_v8 }
 0x5d7   :  { %v2267_v61 = vadd.f32 %v2700_v52, %v2266_v17 }
 0x5d8   :  { %v2189_v1 = vmul.f32 %v2702_v20, %v2188_v43 }
 0x5d9   :  { %v2271_v48 = vsel %vm2270_vm2, %v2700_v52, %v2267_v61 }
 0x5da   :  { %v2276_v26 = vsel %vm2273_vm3, %v2275_v50, %v2271_v48  ;;  %v6367_v2 = vadd.f32 %v2190_v56, %v2189_v1 }
 0x5db   :  { %v2298_v40 = vmul.f32 %v2276_v26, %v2256_v33 }
 0x5dc   :  { %2540 = vst [vmem:[%s6403_s7 + $0x30] sm:$0xff] %v6367_v2  ;;  %2381 = vmatmul.f32.vlgmr.msrb.gmra.mxu1 %v6367_v2 }
 0x5dd   :  { %v2299_v8 = vadd.f32 %v2543_v42, %v2298_v40 }
 0x5df   :  { %2703 = vtanh.f32 %v2299_v8 }
 0x5e5   :  { %v2704_v19 = vpop.eup %2703 }
 0x5e6   :  { %v2302_v57 = vmul.f32 %v2704_v19, %v2301_v32 }
 0x5e8   :  { %v2304_v44 = vadd.f32 %v2303_v9, %v2302_v57 }
 0x5ea   :  { %2321 = vmatmul.f32.vlgmr.msra.gmra.mxu2 %v2304_v44  ;;  %2476 = vst [vmem:[%s6404_s8] sm:$0xff] %v2304_v44  ;;  %2341 = vmatmul.f32.vlgmr.msra.gmra.mxu3 %v2304_v44 }
 0x5eb   :  { %2361 = vmatmul.f32.vlgmr.msrb.gmra.mxu0 %v2304_v44 }
 0x5f2   :  { %2401 = vmatmul.f32.vlgmr.msrb.gmra.mxu2 %v6367_v2  ;;  %2421 = vmatmul.f32.vlgmr.msrb.gmra.mxu3 %v6367_v2 }
 0x659   :  { %v2382_v10 = vpop.f32.mrf.mxu1 }
 0x65a   :  { %v2383_v4 = vadd.f32 %v2382_v10, %v7325_v30 }
 0x668   :  { %v2362_v25 = vpop.f32.mrf.mxu0 }
 0x669   :  { %v2363_v51 = vadd.f32 %v2362_v25, %v7331_v15 }
 0x66d   :  { %v2322_v23 = vpop.f32.mrf.mxu2  ;;  %v2342_v0 = vpop.f32.mrf.mxu3 }
 0x66e   :  { %v2323_v63 = vadd.f32 %v2322_v23, %v7326_v53  ;;  %v2343_v14 = vadd.f32 %v2342_v0, %v7328_v11 }
 0x670   :  { %v2425_v46 = vadd.f32 %v2383_v4, %v2323_v63 }
 0x672   :  { %v2546_v18 = vmul.f32 -1.442695, %v2425_v46 }
 0x674   :  { %2705 = vpow2.f32 %v2546_v18 }
 0x675   :  { %v2402_v21 = vpop.f32.mrf.mxu2  ;;  %v2422_v45 = vpop.f32.mrf.mxu3 }
 0x676   :  { %v2403_v12 = vadd.f32 %v2402_v21, %v7329_v24  ;;  %v2423_v5 = vadd.f32 %v2422_v45, %v7284_v35 }
 0x678   :  { %v2445_v31 = vadd.f32 %v2403_v12, %v2343_v14 }
 0x67a   :  { %v2706_v37 = vpop.eup %2705  ;;  %v2547_v41 = vmul.f32 -1.442695, %v2445_v31 }
 0x67b   :  { %v2429_v55 = vadd.f32 1.0, %v2706_v37 }
 0x67c   :  { %2707 = vpow2.f32 %v2547_v41 }
 0x67d   :  { %2709 = vrcp.f32 %v2429_v55  ;;  %v2441_v13 = vand.u32 2147483648, %v2429_v55  ;;  %v2439_v52 = vand.u32 2147483647, %v2429_v55  ;;  %vm2435_vm9 = vweird.f32 %v2429_v55 }
 0x67f   :  { %v2442_v3 = vor.u32 1.1754944e-38, %v2441_v13  ;;  %vm2440_vm11 = vcmp.eq.f32.partialorder %v2439_v52, 8.507059e+37 }
 0x682   :  { %v2708_v27 = vpop.eup %2707 }
 0x683   :  { %v2710_v47 = vpop.eup %2709  ;;  %v2449_v30 = vadd.f32 1.0, %v2708_v27 }
 0x684   :  { %v2431_v62 = vmul.f32 %v2710_v47, %v2429_v55  ;;  %vm2436_vm8 = vweird.f32 %v2710_v47 }
 0x685   :  { %2711 = vrcp.f32 %v2449_v30  ;;  %vm2437_vm10 = vmor %vm2435_vm9, %vm2436_vm8  ;;  %v2461_v6 = vand.u32 2147483648, %v2449_v30  ;;  %v2459_v29 = vand.u32 2147483647, %v2449_v30  ;;  %vm2455_vm13 = vweird.f32 %v2449_v30 }
 0x686   :  { %v2432_v53 = vsub.f32 1.0, %v2431_v62 }
 0x687   :  { %v2462_v28 = vor.u32 1.1754944e-38, %v2461_v6  ;;  %vm2460_vm15 = vcmp.eq.f32.partialorder %v2459_v29, 8.507059e+37 }
 0x688   :  { %v2433_v39 = vmul.f32 %v2710_v47, %v2432_v53 }
 0x68a   :  { %v2434_v11 = vadd.f32 %v2710_v47, %v2433_v39 }
 0x68b   :  { %v2712_v24 = vpop.eup %2711 }
 0x68c   :  { %v2451_v60 = vmul.f32 %v2712_v24, %v2449_v30  ;;  %v2438_v36 = vsel %vm2437_vm10, %v2710_v47, %v2434_v11  ;;  %vm2456_vm12 = vweird.f32 %v2712_v24 }
 0x68d   :  { %v2443_v34 = vsel %vm2440_vm11, %v2442_v3, %v2438_v36  ;;  %vm2457_vm14 = vmor %vm2455_vm13, %vm2456_vm12 }
 0x68e   :  { %v2452_v22 = vsub.f32 1.0, %v2451_v60  ;;  %v2465_v20 = vmul.f32 %v2443_v34, %v2423_v5 }
 0x690   :  { %v2453_v17 = vmul.f32 %v2712_v24, %v2452_v22  ;;  %v2466_v43 = vadd.f32 %v2465_v20, %v2363_v51 }
 0x692   :  { %v2454_v16 = vadd.f32 %v2712_v24, %v2453_v17  ;;  %2713 = vtanh.f32 %v2466_v43 }
 0x694   :  { %v2458_v61 = vsel %vm2457_vm14, %v2712_v24, %v2454_v16 }
 0x695   :  { %v2463_v35 = vsel %vm2460_vm15, %v2462_v28, %v2458_v61 }
 0x696   :  { %v2468_v1 = vsub.f32 1.0, %v2463_v35  ;;  %v2470_v15 = vmul.f32 %v2463_v35, %v6367_v2 }
 0x698   :  { %v2714_v50 = vpop.eup %2713 }
 0x699   :  { %v2469_v56 = vmul.f32 %v2714_v50, %v2468_v1 }
 0x69b   :  { %v2471_v33 = vadd.f32 %v2470_v15, %v2469_v56 }
 0x69d   :  { %2548 = vst [vmem:[%s6403_s7 + $0x38] sm:$0xff] %v2471_v33 }
 0x69e   :  { %2549 = vst [vmem:[%s6404_s8 + $0x8] sm:$0xff] %v2471_v33 }
 0x69f   :  { %2487 = vsyncpa [#allocation5], 1 }
 0x6a0   :  { %2488 = vsyncpa [#allocation7], 1 }

</bundles_post_ra>
